<compile_context>
chip_gen: v5e
topology: v5e:2x2
jax: 0.10.0
libtpu: 0.0.40
codegen_flags: <defaults>
</compile_context>

<pallas_src>
import functools

import numpy as np
import jax
import jax.numpy as jnp
from jax.experimental import pallas as pl
from jax.experimental.pallas import tpu as pltpu

LANE = 128   # lane padding for every activation / weight column block
SUB = 8      # sublane tile = per-grid-step batch


# ============================================================================
# 1. The fused Pallas kernel
# ============================================================================
def _pad_rows(x, top, bottom):
    """Zero-pad a [H, B, L] value along the outer (row) dim."""
    if top == 0 and bottom == 0:
        return x
    H, Bb, L = x.shape
    parts = []
    if top:
        parts.append(jnp.zeros((top, Bb, L), x.dtype))
    parts.append(x)
    if bottom:
        parts.append(jnp.zeros((bottom, Bb, L), x.dtype))
    return jnp.concatenate(parts, axis=0)


def _make_kernel(meta, training):
    n_layers = len(meta)

    def kernel(*refs):
        x_ref = refs[0]
        layer_refs = refs[1:1 + 2 * n_layers]          # (M, bias) per layer
        eps_ref = refs[1 + 2 * n_layers] if training else None
        recon_ref, mu_ref, logvar_ref = refs[-3:]

        def apply_layer(l, x):
            cfg = meta[l]
            m_ref, b_ref = layer_refs[2 * l], layer_refs[2 * l + 1]
            Hin, Bb, L = x.shape
            kind, Ho, kh, p = cfg["kind"], cfg["Ho"], cfg["kh"], cfg["pad"]

            if kind == "conv":                      # stride-2 conv, kh=4
                Hp = 2 * Ho + 2                      # even, covers all tap reads
                xp = _pad_rows(x, p, Hp - p - Hin)
                xr = xp.reshape(Hp // 2, 2, Bb, L)   # split rows by parity
                taps = [xr[(t >> 1):(t >> 1) + Ho, t & 1] for t in range(kh)]
            elif kind == "convt":                   # stride-2 convT via row dilation
                xd = jnp.stack([x, jnp.zeros_like(x)], axis=1)
                xd = xd.reshape(2 * Hin, Bb, L)      # data on even rows
                xp = _pad_rows(xd, kh - 1 - p, 2 - p)
                taps = [xp[t:t + Ho] for t in range(kh)]
            else:                                   # "fc": unit-stride row taps
                taps = [x[t:t + 1] for t in range(kh)]

            slab = taps[0] if len(taps) == 1 else jnp.concatenate(taps, axis=-1)
            slab2 = slab.reshape(Ho * Bb, slab.shape[-1]).astype(jnp.bfloat16)
            out = jnp.dot(slab2, m_ref[...], preferred_element_type=jnp.float32)
            out = out + b_ref[...]                  # [1, N] bias broadcast
            if cfg["act"] == "relu":
                out = jnp.maximum(out, 0.0)
            elif cfg["act"] == "sigmoid":
                # exp on the EUP + approximate reciprocal; clamp keeps [0, 1].
                out = jnp.clip(pl.reciprocal(1.0 + jnp.exp(-out), approx=True),
                               0.0, 1.0)
            return out.reshape(Ho, Bb, out.shape[-1])

        h = x_ref[...]                               # [32, B, 128]
        for l in range(4):                           # conv1..conv4 (+relu)
            h = apply_layer(l, h)
        enc = apply_layer(4, h)                      # fused fc11|fc12 -> [1, B, 256]
        mu = enc[:, :, 0:LANE]
        logvar = enc[:, :, LANE:2 * LANE]
        mu_ref[...] = mu[0]
        logvar_ref[...] = logvar[0]

        if training:                                 # reparameterization, explicit eps
            z = mu + eps_ref[...][None] * jnp.exp(0.5 * logvar)
        else:
            z = mu

        d = apply_layer(5, z)                        # fc2 -> [1, B, 384]
        d = jnp.concatenate([d[:, :, LANE * t:LANE * (t + 1)] for t in range(3)],
                            axis=0)                  # -> [3, B, 128]
        for l in range(6, n_layers):                 # ct1..ct4
            d = apply_layer(l, d)
        recon_ref[...] = d                           # [28, B, 128] lane-dense

    return kernel


# ============================================================================
# 2. One-time folding of PyTorch-layout weights into per-layer (M, bias)
# ============================================================================
def _conv_layer(w, b, Hin, Win, stride, pad):
    """nn.Conv2d weight [Cout,Cin,kh,kw]: fold horizontal taps + weights into M."""
    w = np.asarray(w, np.float32)
    b = np.asarray(b, np.float32)
    Cout, Cin, kh, kw = w.shape
    Ho = (Hin + 2 * pad - kh) // stride + 1
    Wo = (Win + 2 * pad - kw) // stride + 1
    M = np.zeros((kh * LANE, LANE), np.float32)
    for t in range(kh):
        for wo in range(Wo):
            for j in range(kw):
                wi = stride * wo + j - pad
                if 0 <= wi < Win:
                    M[t * LANE + wi * Cin: t * LANE + wi * Cin + Cin,
                      wo * Cout: wo * Cout + Cout] += w[:, :, t, j].T
    bias = np.zeros((1, LANE), np.float32)
    for wo in range(Wo):
        bias[0, wo * Cout: wo * Cout + Cout] = b
    meta = dict(kind="conv", Ho=Ho, kh=kh, pad=pad, act="relu")
    return M, bias, meta, Ho, Wo, Cout


def _convt_layer(w, b, Hin, Win, stride, pad, act):
    """nn.ConvTranspose2d weight [Cin,Cout,kh,kw]; vertical tap t uses weight row
    kh-1-t (kernel flip of the dilated-conv equivalent)."""
    w = np.asarray(w, np.float32)
    b = np.asarray(b, np.float32)
    Cin, Cout, kh, kw = w.shape
    Ho = (Hin - 1) * stride - 2 * pad + kh
    Wo = (Win - 1) * stride - 2 * pad + kw
    M = np.zeros((kh * LANE, LANE), np.float32)
    for t in range(kh):
        i = kh - 1 - t
        for wi in range(Win):
            for j in range(kw):
                wo = stride * wi - pad + j
                if 0 <= wo < Wo:
                    M[t * LANE + wi * Cin: t * LANE + wi * Cin + Cin,
                      wo * Cout: wo * Cout + Cout] += w[:, :, i, j]
    bias = np.zeros((1, LANE), np.float32)
    for wo in range(Wo):
        bias[0, wo * Cout: wo * Cout + Cout] = b
    meta = dict(kind="convt", Ho=Ho, kh=kh, pad=pad, act=act)
    return M, bias, meta, Ho, Wo, Cout


def _fc_enc_layer(w11, b11, w12, b12):
    """fc11/fc12 fused.  PyTorch flattens h4 NCHW: feature = c*9 + h*3 + w.
    Our conv4 layout: rows = h, lanes = w*12 + c.  mu -> cols 0:20, logvar 128:148."""
    w11 = np.asarray(w11, np.float32)
    w12 = np.asarray(w12, np.float32)
    M = np.zeros((3 * LANE, 2 * LANE), np.float32)
    bias = np.zeros((1, 2 * LANE), np.float32)
    w11r = w11.reshape(20, 12, 3, 3).transpose(2, 3, 1, 0)   # [h, w, c, out]
    w12r = w12.reshape(20, 12, 3, 3).transpose(2, 3, 1, 0)
    for h in range(3):
        M[h * LANE: h * LANE + 36, 0:20] = w11r[h].reshape(36, 20)
        M[h * LANE: h * LANE + 36, LANE:LANE + 20] = w12r[h].reshape(36, 20)
    bias[0, 0:20] = np.asarray(b11, np.float32)
    bias[0, LANE:LANE + 20] = np.asarray(b12, np.float32)
    meta = dict(kind="fc", Ho=1, kh=3, pad=0, act="none")
    return M, bias, meta


def _fc_dec_layer(w2, b2):
    """fc2: [20] -> [108]; output consumed as 3 rows (h) of lanes w*12 + c."""
    w2 = np.asarray(w2, np.float32)
    b2 = np.asarray(b2, np.float32)
    M = np.zeros((LANE, 3 * LANE), np.float32)
    bias = np.zeros((1, 3 * LANE), np.float32)
    w2r = w2.reshape(12, 3, 3, 20).transpose(1, 2, 0, 3)     # [h, w, c, o]
    b2r = b2.reshape(12, 3, 3).transpose(1, 2, 0)            # [h, w, c]
    for h in range(3):
        M[0:20, h * LANE: h * LANE + 36] = w2r[h].reshape(36, 20).T
        bias[0, h * LANE: h * LANE + 36] = b2r[h].reshape(36)
    meta = dict(kind="fc", Ho=1, kh=1, pad=0, act="none")
    return M, bias, meta


def build_fused_operands(params):
    layers = []
    H = W = 32
    for name in ("conv1", "conv2", "conv3", "conv4"):
        w, b = params[name]
        M, bias, m, Ho, Wo, Cout = _conv_layer(w, b, H, W, 2, 2)
        layers.append((M, bias, m))
        H, W = Ho, Wo
    w11, b11 = params["fc11"]
    w12, b12 = params["fc12"]
    layers.append(_fc_enc_layer(w11, b11, w12, b12))
    layers.append(_fc_dec_layer(*params["fc2"]))
    H = W = 3
    for name, pad, act in (("ct1", 2, "relu"), ("ct2", 1, "relu"),
                           ("ct3", 2, "relu"), ("ct4", 1, "sigmoid")):
        w, b = params[name]
        M, bias, m, Ho, Wo, Cout = _convt_layer(w, b, H, W, 2, pad, act)
        layers.append((M, bias, m))
        H, W = Ho, Wo
    fused = [(jnp.asarray(M, jnp.bfloat16), jnp.asarray(bias, jnp.float32))
             for M, bias, _ in layers]
    meta = tuple(m for _, _, m in layers)
    return fused, meta, W, Cout        # W=28, Cout=3


# ============================================================================
# 3. Forward wrapper (one pallas_call, batch grid, weights VMEM-resident)
# ============================================================================
def vae_cure_cnn_forward(fused, x_nchw, *, meta, out_w, out_c,
                         training=False, eps=None, latent=20):
    B, Cin, Hin, Win = x_nchw.shape
    assert B % SUB == 0, "batch must be a multiple of 8 (one sublane tile per step)"
    xk = jnp.transpose(x_nchw, (2, 0, 3, 1)).reshape(Hin, B, Win * Cin)
    xk = jnp.pad(xk, ((0, 0), (0, 0), (0, LANE - Win * Cin)))

    inputs = [xk]
    in_specs = [pl.BlockSpec((Hin, SUB, LANE), lambda i: (0, i, 0))]
    for m, b in fused:
        inputs += [m, b]
        in_specs.append(pl.BlockSpec(m.shape, lambda i: (0, 0)))   # resident
        in_specs.append(pl.BlockSpec(b.shape, lambda i: (0, 0)))   # resident
    if training:
        assert eps is not None
        eps_pad = jnp.pad(eps.astype(jnp.float32),
                          ((0, 0), (0, LANE - eps.shape[1])))
        inputs.append(eps_pad)
        in_specs.append(pl.BlockSpec((SUB, LANE), lambda i: (i, 0)))

    out_h = meta[-1]["Ho"]
    out_shape = (
        jax.ShapeDtypeStruct((out_h, B, LANE), jnp.float32),   # recon (lane-dense)
        jax.ShapeDtypeStruct((B, LANE), jnp.float32),          # mu   (padded)
        jax.ShapeDtypeStruct((B, LANE), jnp.float32),          # logvar (padded)
    )
    out_specs = (
        pl.BlockSpec((out_h, SUB, LANE), lambda i: (0, i, 0)),
        pl.BlockSpec((SUB, LANE), lambda i: (i, 0)),
        pl.BlockSpec((SUB, LANE), lambda i: (i, 0)),
    )

    recon_k, mu_pad, logvar_pad = pl.pallas_call(
        _make_kernel(meta, training),
        grid=(B // SUB,),
        in_specs=in_specs,
        out_specs=out_specs,
        out_shape=out_shape,
        compiler_params=pltpu.CompilerParams(dimension_semantics=("parallel",)),
    )(*inputs)

    recon = jnp.transpose(
        recon_k[:, :, :out_w * out_c].reshape(out_h, B, out_w, out_c),
        (1, 3, 0, 2))                                        # -> [B, C, H, W]
    return recon, mu_pad[:, :latent], logvar_pad[:, :latent]


# ============================================================================
# 4. Parameter init (PyTorch-default-like, deterministic) + pure-JAX reference
# ============================================================================
def init_params(key):
    def conv_init(k, oc, ic, ks):
        k1, k2 = jax.random.split(k)
        bound = 1.0 / (ic * ks * ks) ** 0.5
        return (jax.random.uniform(k1, (oc, ic, ks, ks), jnp.float32, -bound, bound),
                jax.random.uniform(k2, (oc,), jnp.float32, -bound, bound))

    def convT_init(k, ic, oc, ks):
        k1, k2 = jax.random.split(k)
        bound = 1.0 / (oc * ks * ks) ** 0.5
        return (jax.random.uniform(k1, (ic, oc, ks, ks), jnp.float32, -bound, bound),
                jax.random.uniform(k2, (oc,), jnp.float32, -bound, bound))

    def linear_init(k, out_f, in_f):
        k1, k2 = jax.random.split(k)
        bound = 1.0 / in_f ** 0.5
        return (jax.random.uniform(k1, (out_f, in_f), jnp.float32, -bound, bound),
                jax.random.uniform(k2, (out_f,), jnp.float32, -bound, bound))

    ks = jax.random.split(key, 11)
    return {
        "conv1": conv_init(ks[0], 3, 3, 4),
        "conv2": conv_init(ks[1], 6, 3, 4),
        "conv3": conv_init(ks[2], 9, 6, 4),
        "conv4": conv_init(ks[3], 12, 9, 4),
        "fc11": linear_init(ks[4], 20, 108),
        "fc12": linear_init(ks[5], 20, 108),
        "fc2": linear_init(ks[6], 108, 20),
        "ct1": convT_init(ks[7], 12, 9, 4),
        "ct2": convT_init(ks[8], 9, 6, 4),
        "ct3": convT_init(ks[9], 6, 3, 4),
        "ct4": convT_init(ks[10], 3, 3, 4),
    }


def _ref_conv2d_nhwc(x, w, b, stride, padding, act):
    B, H, W, C = x.shape
    oc, ic, kh, kw = w.shape
    xp = jnp.pad(x, ((0, 0), (padding, padding), (padding, padding), (0, 0)))
    Ho = (H + 2 * padding - kh) // stride + 1
    Wo = (W + 2 * padding - kw) // stride + 1
    cols = []
    for i in range(kh):
        for j in range(kw):
            cols.append(xp[:, i:i + stride * Ho:stride, j:j + stride * Wo:stride, :])
    a = jnp.stack(cols, axis=3).reshape(B * Ho * Wo, kh * kw * ic)
    wmat = jnp.transpose(w, (2, 3, 1, 0)).reshape(kh * kw * ic, oc)
    out = a @ wmat + b
    if act == "relu":
        out = jnp.maximum(out, 0.0)
    elif act == "sigmoid":
        out = jax.nn.sigmoid(out)
    return out.reshape(B, Ho, Wo, oc)


def _ref_convT2d_nhwc(x, w, b, stride, padding, act):
    B, H, W, C = x.shape
    kh = w.shape[2]
    Hd, Wd = (H - 1) * stride + 1, (W - 1) * stride + 1
    xd = jnp.zeros((B, Hd, Wd, C), x.dtype).at[:, ::stride, ::stride, :].set(x)
    w_eq = jnp.transpose(w[:, :, ::-1, ::-1], (1, 0, 2, 3))
    return _ref_conv2d_nhwc(xd, w_eq, b, 1, kh - 1 - padding, act)


def vae_reference_forward(params, x_nchw, eps=None):
    x = jnp.transpose(x_nchw, (0, 2, 3, 1))
    h = _ref_conv2d_nhwc(x, *params["conv1"], 2, 2, "relu")
    h = _ref_conv2d_nhwc(h, *params["conv2"], 2, 2, "relu")
    h = _ref_conv2d_nhwc(h, *params["conv3"], 2, 2, "relu")
    h = _ref_conv2d_nhwc(h, *params["conv4"], 2, 2, "relu")
    B = h.shape[0]
    h_flat = jnp.transpose(h, (0, 3, 1, 2)).reshape(B, 108)     # NCHW flatten
    wm, bm = params["fc11"]
    wl, bl = params["fc12"]
    mu, logvar = h_flat @ wm.T + bm, h_flat @ wl.T + bl
    z = mu if eps is None else mu + eps * jnp.exp(0.5 * logvar)
    w2, b2 = params["fc2"]
    hd = jnp.transpose((z @ w2.T + b2).reshape(B, 12, 3, 3), (0, 2, 3, 1))
    u = _ref_convT2d_nhwc(hd, *params["ct1"], 2, 2, "relu")
    u = _ref_convT2d_nhwc(u, *params["ct2"], 2, 1, "relu")
    u = _ref_convT2d_nhwc(u, *params["ct3"], 2, 2, "relu")
    u = _ref_convT2d_nhwc(u, *params["ct4"], 2, 1, "sigmoid")
    return jnp.transpose(u, (0, 3, 1, 2)), mu, logvar


# ============================================================================
# 5. Run + verify
# ============================================================================
if __name__ == "__main__":
    B = 8
    key_x, key_p, key_e = jax.random.split(jax.random.PRNGKey(0), 3)
    x = jax.random.normal(key_x, (B, 3, 32, 32), jnp.float32)   # NCHW like PyTorch
    params = init_params(key_p)

    fused, meta, out_w, out_c = build_fused_operands(params)

    fwd = jax.jit(functools.partial(vae_cure_cnn_forward, meta=meta,
                                    out_w=out_w, out_c=out_c, training=False))
    recon, mu, logvar = fwd(fused, x)
    jax.block_until_ready((recon, mu, logvar))

    assert recon.shape == (B, 3, 28, 28), recon.shape
    assert mu.shape == (B, 20) and logvar.shape == (B, 20)
    assert bool(jnp.all(jnp.isfinite(recon)))
    assert bool(jnp.all((recon >= 0.0) & (recon <= 1.0)))       # sigmoid range

    # Eval-mode cross-check (bf16 MXU operands vs. pure-f32 reference).
    recon_r, mu_r, logvar_r = jax.jit(vae_reference_forward)(params, x)
    assert float(jnp.max(jnp.abs(recon - recon_r))) < 5e-2
    assert float(jnp.max(jnp.abs(mu - mu_r))) < 5e-2
    assert float(jnp.max(jnp.abs(logvar - logvar_r))) < 5e-2

    # Training-mode (reparameterization) path with an explicit eps.
    eps = jax.random.normal(key_e, (B, 20), jnp.float32)
    fwd_t = jax.jit(functools.partial(vae_cure_cnn_forward, meta=meta,
                                      out_w=out_w, out_c=out_c, training=True))
    recon_t, mu_t, logvar_t = fwd_t(fused, x, eps=eps)
    jax.block_until_ready(recon_t)
    recon_tr, _, _ = jax.jit(vae_reference_forward)(params, x, eps)
    assert float(jnp.max(jnp.abs(recon_t - recon_tr))) < 5e-2
    assert float(jnp.max(jnp.abs(mu_t - mu_r))) < 5e-2

    print("KERNEL_OK")
</pallas_src>

<mosaic_0001>
module attributes {stable_mosaic.version = 11 : i64} {
  func.func @kernel(%arg0: i32, %arg1: memref<32x8x128xf32, #tpu.memory_space<vmem>>, %arg2: memref<512x128xbf16, #tpu.memory_space<vmem>>, %arg3: memref<1x128xf32, #tpu.memory_space<vmem>>, %arg4: memref<512x128xbf16, #tpu.memory_space<vmem>>, %arg5: memref<1x128xf32, #tpu.memory_space<vmem>>, %arg6: memref<512x128xbf16, #tpu.memory_space<vmem>>, %arg7: memref<1x128xf32, #tpu.memory_space<vmem>>, %arg8: memref<512x128xbf16, #tpu.memory_space<vmem>>, %arg9: memref<1x128xf32, #tpu.memory_space<vmem>>, %arg10: memref<384x256xbf16, #tpu.memory_space<vmem>>, %arg11: memref<1x256xf32, #tpu.memory_space<vmem>>, %arg12: memref<128x384xbf16, #tpu.memory_space<vmem>>, %arg13: memref<1x384xf32, #tpu.memory_space<vmem>>, %arg14: memref<512x128xbf16, #tpu.memory_space<vmem>>, %arg15: memref<1x128xf32, #tpu.memory_space<vmem>>, %arg16: memref<512x128xbf16, #tpu.memory_space<vmem>>, %arg17: memref<1x128xf32, #tpu.memory_space<vmem>>, %arg18: memref<512x128xbf16, #tpu.memory_space<vmem>>, %arg19: memref<1x128xf32, #tpu.memory_space<vmem>>, %arg20: memref<512x128xbf16, #tpu.memory_space<vmem>>, %arg21: memref<1x128xf32, #tpu.memory_space<vmem>>, %arg22: memref<28x8x128xf32, #tpu.memory_space<vmem>>, %arg23: memref<8x128xf32, #tpu.memory_space<vmem>>, %arg24: memref<8x128xf32, #tpu.memory_space<vmem>>) attributes {dimension_semantics = [#tpu.dimension_semantics<parallel>], iteration_bounds = array<i64: 1>, scalar_prefetch = 0 : i64, scratch_operands = 0 : i64, tpu.core_type = #tpu.core_type<tc>, window_params = [{transform_indices = @transform_0, window_bounds = array<i64: 32, 8, 128>}, {pipeline_mode = #tpu.pipeline_mode<synchronous>, transform_indices = @transform_1, window_bounds = array<i64: 512, 128>}, {pipeline_mode = #tpu.pipeline_mode<synchronous>, transform_indices = @transform_2, window_bounds = array<i64: 1, 128>}, {pipeline_mode = #tpu.pipeline_mode<synchronous>, transform_indices = @transform_3, window_bounds = array<i64: 512, 128>}, {pipeline_mode = #tpu.pipeline_mode<synchronous>, transform_indices = @transform_4, window_bounds = array<i64: 1, 128>}, {pipeline_mode = #tpu.pipeline_mode<synchronous>, transform_indices = @transform_5, window_bounds = array<i64: 512, 128>}, {pipeline_mode = #tpu.pipeline_mode<synchronous>, transform_indices = @transform_6, window_bounds = array<i64: 1, 128>}, {pipeline_mode = #tpu.pipeline_mode<synchronous>, transform_indices = @transform_7, window_bounds = array<i64: 512, 128>}, {pipeline_mode = #tpu.pipeline_mode<synchronous>, transform_indices = @transform_8, window_bounds = array<i64: 1, 128>}, {pipeline_mode = #tpu.pipeline_mode<synchronous>, transform_indices = @transform_9, window_bounds = array<i64: 384, 256>}, {pipeline_mode = #tpu.pipeline_mode<synchronous>, transform_indices = @transform_10, window_bounds = array<i64: 1, 256>}, {pipeline_mode = #tpu.pipeline_mode<synchronous>, transform_indices = @transform_11, window_bounds = array<i64: 128, 384>}, {pipeline_mode = #tpu.pipeline_mode<synchronous>, transform_indices = @transform_12, window_bounds = array<i64: 1, 384>}, {pipeline_mode = #tpu.pipeline_mode<synchronous>, transform_indices = @transform_13, window_bounds = array<i64: 512, 128>}, {pipeline_mode = #tpu.pipeline_mode<synchronous>, transform_indices = @transform_14, window_bounds = array<i64: 1, 128>}, {pipeline_mode = #tpu.pipeline_mode<synchronous>, transform_indices = @transform_15, window_bounds = array<i64: 512, 128>}, {pipeline_mode = #tpu.pipeline_mode<synchronous>, transform_indices = @transform_16, window_bounds = array<i64: 1, 128>}, {pipeline_mode = #tpu.pipeline_mode<synchronous>, transform_indices = @transform_17, window_bounds = array<i64: 512, 128>}, {pipeline_mode = #tpu.pipeline_mode<synchronous>, transform_indices = @transform_18, window_bounds = array<i64: 1, 128>}, {pipeline_mode = #tpu.pipeline_mode<synchronous>, transform_indices = @transform_19, window_bounds = array<i64: 512, 128>}, {pipeline_mode = #tpu.pipeline_mode<synchronous>, transform_indices = @transform_20, window_bounds = array<i64: 1, 128>}, {transform_indices = @transform_21, window_bounds = array<i64: 28, 8, 128>}, {transform_indices = @transform_22, window_bounds = array<i64: 8, 128>}, {transform_indices = @transform_23, window_bounds = array<i64: 8, 128>}]} {
    %c0 = arith.constant 0 : index
    %c0_0 = arith.constant 0 : index
    %c0_1 = arith.constant 0 : index
    %0 = vector.load %arg1[%c0, %c0_0, %c0_1] : memref<32x8x128xf32, #tpu.memory_space<vmem>>, vector<32x8x128xf32>
    %cst = arith.constant 0.000000e+00 : f32
    %1 = vector.broadcast %cst : f32 to vector<2x8x128xf32>
    %cst_2 = arith.constant 0.000000e+00 : f32
    %2 = vector.broadcast %cst_2 : f32 to vector<2x8x128xf32>
    %3 = tpu.concatenate %1, %0, %2 in 0 : vector<2x8x128xf32>, vector<32x8x128xf32>, vector<2x8x128xf32> -> vector<36x8x128xf32>
    %4 = vector.shape_cast %3 : vector<36x8x128xf32> to vector<18x2x8x128xf32>
    %5 = vector.extract_strided_slice %4 {offsets = [0, 0, 0, 0], sizes = [17, 1, 8, 128], strides = [1, 1, 1, 1]} : vector<18x2x8x128xf32> to vector<17x1x8x128xf32>
    %6 = vector.shape_cast %5 : vector<17x1x8x128xf32> to vector<17x8x128xf32>
    %7 = vector.extract_strided_slice %4 {offsets = [0, 1, 0, 0], sizes = [17, 1, 8, 128], strides = [1, 1, 1, 1]} : vector<18x2x8x128xf32> to vector<17x1x8x128xf32>
    %8 = vector.shape_cast %7 : vector<17x1x8x128xf32> to vector<17x8x128xf32>
    %9 = vector.extract_strided_slice %4 {offsets = [1, 0, 0, 0], sizes = [17, 1, 8, 128], strides = [1, 1, 1, 1]} : vector<18x2x8x128xf32> to vector<17x1x8x128xf32>
    %10 = vector.shape_cast %9 : vector<17x1x8x128xf32> to vector<17x8x128xf32>
    %11 = vector.extract_strided_slice %4 {offsets = [1, 1, 0, 0], sizes = [17, 1, 8, 128], strides = [1, 1, 1, 1]} : vector<18x2x8x128xf32> to vector<17x1x8x128xf32>
    %12 = vector.shape_cast %11 : vector<17x1x8x128xf32> to vector<17x8x128xf32>
    %13 = tpu.concatenate %6, %8, %10, %12 in 2 : vector<17x8x128xf32>, vector<17x8x128xf32>, vector<17x8x128xf32>, vector<17x8x128xf32> -> vector<17x8x512xf32>
    %14 = vector.shape_cast %13 : vector<17x8x512xf32> to vector<136x512xf32>
    %15 = arith.truncf %14 : vector<136x512xf32> to vector<136x512xbf16>
    %c0_3 = arith.constant 0 : index
    %c0_4 = arith.constant 0 : index
    %16 = vector.load %arg2[%c0_3, %c0_4] : memref<512x128xbf16, #tpu.memory_space<vmem>>, vector<512x128xbf16>
    %cst_5 = arith.constant dense<0.000000e+00> : vector<136x128xf32>
    %17 = tpu.matmul %15, %16, %cst_5 {dimension_numbers = #tpu.dot_dimension_numbers<[1], [0], [0], [1], [0, 0, 1, 1], [], []>} : vector<136x512xbf16>, vector<512x128xbf16>, vector<136x128xf32> -> vector<136x128xf32>
    %c0_6 = arith.constant 0 : index
    %c0_7 = arith.constant 0 : index
    %18 = vector.load %arg3[%c0_6, %c0_7] : memref<1x128xf32, #tpu.memory_space<vmem>>, vector<1x128xf32>
    %19 = vector.broadcast %18 : vector<1x128xf32> to vector<136x128xf32>
    %20 = arith.addf %17, %19 : vector<136x128xf32>
    %cst_8 = arith.constant 0.000000e+00 : f32
    %21 = vector.broadcast %cst_8 : f32 to vector<136x128xf32>
    %22 = arith.maximumf %20, %21 : vector<136x128xf32>
    %23 = vector.shape_cast %22 : vector<136x128xf32> to vector<17x8x128xf32>
    %cst_9 = arith.constant 0.000000e+00 : f32
    %24 = vector.broadcast %cst_9 : f32 to vector<2x8x128xf32>
    %cst_10 = arith.constant 0.000000e+00 : f32
    %25 = vector.broadcast %cst_10 : f32 to vector<1x8x128xf32>
    %26 = tpu.concatenate %24, %23, %25 in 0 : vector<2x8x128xf32>, vector<17x8x128xf32>, vector<1x8x128xf32> -> vector<20x8x128xf32>
    %27 = vector.shape_cast %26 : vector<20x8x128xf32> to vector<10x2x8x128xf32>
    %28 = vector.extract_strided_slice %27 {offsets = [0, 0, 0, 0], sizes = [9, 1, 8, 128], strides = [1, 1, 1, 1]} : vector<10x2x8x128xf32> to vector<9x1x8x128xf32>
    %29 = vector.shape_cast %28 : vector<9x1x8x128xf32> to vector<9x8x128xf32>
    %30 = vector.extract_strided_slice %27 {offsets = [0, 1, 0, 0], sizes = [9, 1, 8, 128], strides = [1, 1, 1, 1]} : vector<10x2x8x128xf32> to vector<9x1x8x128xf32>
    %31 = vector.shape_cast %30 : vector<9x1x8x128xf32> to vector<9x8x128xf32>
    %32 = vector.extract_strided_slice %27 {offsets = [1, 0, 0, 0], sizes = [9, 1, 8, 128], strides = [1, 1, 1, 1]} : vector<10x2x8x128xf32> to vector<9x1x8x128xf32>
    %33 = vector.shape_cast %32 : vector<9x1x8x128xf32> to vector<9x8x128xf32>
    %34 = vector.extract_strided_slice %27 {offsets = [1, 1, 0, 0], sizes = [9, 1, 8, 128], strides = [1, 1, 1, 1]} : vector<10x2x8x128xf32> to vector<9x1x8x128xf32>
    %35 = vector.shape_cast %34 : vector<9x1x8x128xf32> to vector<9x8x128xf32>
    %36 = tpu.concatenate %29, %31, %33, %35 in 2 : vector<9x8x128xf32>, vector<9x8x128xf32>, vector<9x8x128xf32>, vector<9x8x128xf32> -> vector<9x8x512xf32>
    %37 = vector.shape_cast %36 : vector<9x8x512xf32> to vector<72x512xf32>
    %38 = arith.truncf %37 : vector<72x512xf32> to vector<72x512xbf16>
    %c0_11 = arith.constant 0 : index
    %c0_12 = arith.constant 0 : index
    %39 = vector.load %arg4[%c0_11, %c0_12] : memref<512x128xbf16, #tpu.memory_space<vmem>>, vector<512x128xbf16>
    %cst_13 = arith.constant dense<0.000000e+00> : vector<72x128xf32>
    %40 = tpu.matmul %38, %39, %cst_13 {dimension_numbers = #tpu.dot_dimension_numbers<[1], [0], [0], [1], [0, 0, 1, 1], [], []>} : vector<72x512xbf16>, vector<512x128xbf16>, vector<72x128xf32> -> vector<72x128xf32>
    %c0_14 = arith.constant 0 : index
    %c0_15 = arith.constant 0 : index
    %41 = vector.load %arg5[%c0_14, %c0_15] : memref<1x128xf32, #tpu.memory_space<vmem>>, vector<1x128xf32>
    %42 = vector.broadcast %41 : vector<1x128xf32> to vector<72x128xf32>
    %43 = arith.addf %40, %42 : vector<72x128xf32>
    %cst_16 = arith.constant 0.000000e+00 : f32
    %44 = vector.broadcast %cst_16 : f32 to vector<72x128xf32>
    %45 = arith.maximumf %43, %44 : vector<72x128xf32>
    %46 = vector.shape_cast %45 : vector<72x128xf32> to vector<9x8x128xf32>
    %cst_17 = arith.constant 0.000000e+00 : f32
    %47 = vector.broadcast %cst_17 : f32 to vector<2x8x128xf32>
    %cst_18 = arith.constant 0.000000e+00 : f32
    %48 = vector.broadcast %cst_18 : f32 to vector<1x8x128xf32>
    %49 = tpu.concatenate %47, %46, %48 in 0 : vector<2x8x128xf32>, vector<9x8x128xf32>, vector<1x8x128xf32> -> vector<12x8x128xf32>
    %50 = vector.shape_cast %49 : vector<12x8x128xf32> to vector<6x2x8x128xf32>
    %51 = vector.extract_strided_slice %50 {offsets = [0, 0, 0, 0], sizes = [5, 1, 8, 128], strides = [1, 1, 1, 1]} : vector<6x2x8x128xf32> to vector<5x1x8x128xf32>
    %52 = vector.shape_cast %51 : vector<5x1x8x128xf32> to vector<5x8x128xf32>
    %53 = vector.extract_strided_slice %50 {offsets = [0, 1, 0, 0], sizes = [5, 1, 8, 128], strides = [1, 1, 1, 1]} : vector<6x2x8x128xf32> to vector<5x1x8x128xf32>
    %54 = vector.shape_cast %53 : vector<5x1x8x128xf32> to vector<5x8x128xf32>
    %55 = vector.extract_strided_slice %50 {offsets = [1, 0, 0, 0], sizes = [5, 1, 8, 128], strides = [1, 1, 1, 1]} : vector<6x2x8x128xf32> to vector<5x1x8x128xf32>
    %56 = vector.shape_cast %55 : vector<5x1x8x128xf32> to vector<5x8x128xf32>
    %57 = vector.extract_strided_slice %50 {offsets = [1, 1, 0, 0], sizes = [5, 1, 8, 128], strides = [1, 1, 1, 1]} : vector<6x2x8x128xf32> to vector<5x1x8x128xf32>
    %58 = vector.shape_cast %57 : vector<5x1x8x128xf32> to vector<5x8x128xf32>
    %59 = tpu.concatenate %52, %54, %56, %58 in 2 : vector<5x8x128xf32>, vector<5x8x128xf32>, vector<5x8x128xf32>, vector<5x8x128xf32> -> vector<5x8x512xf32>
    %60 = vector.shape_cast %59 : vector<5x8x512xf32> to vector<40x512xf32>
    %61 = arith.truncf %60 : vector<40x512xf32> to vector<40x512xbf16>
    %c0_19 = arith.constant 0 : index
    %c0_20 = arith.constant 0 : index
    %62 = vector.load %arg6[%c0_19, %c0_20] : memref<512x128xbf16, #tpu.memory_space<vmem>>, vector<512x128xbf16>
    %cst_21 = arith.constant dense<0.000000e+00> : vector<40x128xf32>
    %63 = tpu.matmul %61, %62, %cst_21 {dimension_numbers = #tpu.dot_dimension_numbers<[1], [0], [0], [1], [0, 0, 1, 1], [], []>} : vector<40x512xbf16>, vector<512x128xbf16>, vector<40x128xf32> -> vector<40x128xf32>
    %c0_22 = arith.constant 0 : index
    %c0_23 = arith.constant 0 : index
    %64 = vector.load %arg7[%c0_22, %c0_23] : memref<1x128xf32, #tpu.memory_space<vmem>>, vector<1x128xf32>
    %65 = vector.broadcast %64 : vector<1x128xf32> to vector<40x128xf32>
    %66 = arith.addf %63, %65 : vector<40x128xf32>
    %cst_24 = arith.constant 0.000000e+00 : f32
    %67 = vector.broadcast %cst_24 : f32 to vector<40x128xf32>
    %68 = arith.maximumf %66, %67 : vector<40x128xf32>
    %69 = vector.shape_cast %68 : vector<40x128xf32> to vector<5x8x128xf32>
    %cst_25 = arith.constant 0.000000e+00 : f32
    %70 = vector.broadcast %cst_25 : f32 to vector<2x8x128xf32>
    %cst_26 = arith.constant 0.000000e+00 : f32
    %71 = vector.broadcast %cst_26 : f32 to vector<1x8x128xf32>
    %72 = tpu.concatenate %70, %69, %71 in 0 : vector<2x8x128xf32>, vector<5x8x128xf32>, vector<1x8x128xf32> -> vector<8x8x128xf32>
    %73 = vector.shape_cast %72 : vector<8x8x128xf32> to vector<4x2x8x128xf32>
    %74 = vector.extract_strided_slice %73 {offsets = [0, 0, 0, 0], sizes = [3, 1, 8, 128], strides = [1, 1, 1, 1]} : vector<4x2x8x128xf32> to vector<3x1x8x128xf32>
    %75 = vector.shape_cast %74 : vector<3x1x8x128xf32> to vector<3x8x128xf32>
    %76 = vector.extract_strided_slice %73 {offsets = [0, 1, 0, 0], sizes = [3, 1, 8, 128], strides = [1, 1, 1, 1]} : vector<4x2x8x128xf32> to vector<3x1x8x128xf32>
    %77 = vector.shape_cast %76 : vector<3x1x8x128xf32> to vector<3x8x128xf32>
    %78 = vector.extract_strided_slice %73 {offsets = [1, 0, 0, 0], sizes = [3, 1, 8, 128], strides = [1, 1, 1, 1]} : vector<4x2x8x128xf32> to vector<3x1x8x128xf32>
    %79 = vector.shape_cast %78 : vector<3x1x8x128xf32> to vector<3x8x128xf32>
    %80 = vector.extract_strided_slice %73 {offsets = [1, 1, 0, 0], sizes = [3, 1, 8, 128], strides = [1, 1, 1, 1]} : vector<4x2x8x128xf32> to vector<3x1x8x128xf32>
    %81 = vector.shape_cast %80 : vector<3x1x8x128xf32> to vector<3x8x128xf32>
    %82 = tpu.concatenate %75, %77, %79, %81 in 2 : vector<3x8x128xf32>, vector<3x8x128xf32>, vector<3x8x128xf32>, vector<3x8x128xf32> -> vector<3x8x512xf32>
    %83 = vector.shape_cast %82 : vector<3x8x512xf32> to vector<24x512xf32>
    %84 = arith.truncf %83 : vector<24x512xf32> to vector<24x512xbf16>
    %c0_27 = arith.constant 0 : index
    %c0_28 = arith.constant 0 : index
    %85 = vector.load %arg8[%c0_27, %c0_28] : memref<512x128xbf16, #tpu.memory_space<vmem>>, vector<512x128xbf16>
    %cst_29 = arith.constant dense<0.000000e+00> : vector<24x128xf32>
    %86 = tpu.matmul %84, %85, %cst_29 {dimension_numbers = #tpu.dot_dimension_numbers<[1], [0], [0], [1], [0, 0, 1, 1], [], []>} : vector<24x512xbf16>, vector<512x128xbf16>, vector<24x128xf32> -> vector<24x128xf32>
    %c0_30 = arith.constant 0 : index
    %c0_31 = arith.constant 0 : index
    %87 = vector.load %arg9[%c0_30, %c0_31] : memref<1x128xf32, #tpu.memory_space<vmem>>, vector<1x128xf32>
    %88 = vector.broadcast %87 : vector<1x128xf32> to vector<24x128xf32>
    %89 = arith.addf %86, %88 : vector<24x128xf32>
    %cst_32 = arith.constant 0.000000e+00 : f32
    %90 = vector.broadcast %cst_32 : f32 to vector<24x128xf32>
    %91 = arith.maximumf %89, %90 : vector<24x128xf32>
    %92 = vector.shape_cast %91 : vector<24x128xf32> to vector<3x8x128xf32>
    %93 = vector.extract_strided_slice %92 {offsets = [0, 0, 0], sizes = [1, 8, 128], strides = [1, 1, 1]} : vector<3x8x128xf32> to vector<1x8x128xf32>
    %94 = vector.extract_strided_slice %92 {offsets = [1, 0, 0], sizes = [1, 8, 128], strides = [1, 1, 1]} : vector<3x8x128xf32> to vector<1x8x128xf32>
    %95 = vector.extract_strided_slice %92 {offsets = [2, 0, 0], sizes = [1, 8, 128], strides = [1, 1, 1]} : vector<3x8x128xf32> to vector<1x8x128xf32>
    %96 = tpu.concatenate %93, %94, %95 in 2 : vector<1x8x128xf32>, vector<1x8x128xf32>, vector<1x8x128xf32> -> vector<1x8x384xf32>
    %97 = vector.shape_cast %96 : vector<1x8x384xf32> to vector<8x384xf32>
    %98 = arith.truncf %97 : vector<8x384xf32> to vector<8x384xbf16>
    %c0_33 = arith.constant 0 : index
    %c0_34 = arith.constant 0 : index
    %99 = vector.load %arg10[%c0_33, %c0_34] : memref<384x256xbf16, #tpu.memory_space<vmem>>, vector<384x256xbf16>
    %cst_35 = arith.constant dense<0.000000e+00> : vector<8x256xf32>
    %100 = tpu.matmul %98, %99, %cst_35 {dimension_numbers = #tpu.dot_dimension_numbers<[1], [0], [0], [1], [0, 0, 1, 1], [], []>} : vector<8x384xbf16>, vector<384x256xbf16>, vector<8x256xf32> -> vector<8x256xf32>
    %c0_36 = arith.constant 0 : index
    %c0_37 = arith.constant 0 : index
    %101 = vector.load %arg11[%c0_36, %c0_37] : memref<1x256xf32, #tpu.memory_space<vmem>>, vector<1x256xf32>
    %102 = vector.broadcast %101 : vector<1x256xf32> to vector<8x256xf32>
    %103 = arith.addf %100, %102 : vector<8x256xf32>
    %104 = vector.shape_cast %103 : vector<8x256xf32> to vector<1x8x256xf32>
    %105 = vector.extract_strided_slice %104 {offsets = [0, 0, 0], sizes = [1, 8, 128], strides = [1, 1, 1]} : vector<1x8x256xf32> to vector<1x8x128xf32>
    %106 = vector.extract_strided_slice %104 {offsets = [0, 0, 128], sizes = [1, 8, 128], strides = [1, 1, 1]} : vector<1x8x256xf32> to vector<1x8x128xf32>
    %107 = vector.shape_cast %105 : vector<1x8x128xf32> to vector<8x128xf32>
    %c0_38 = arith.constant 0 : index
    %c0_39 = arith.constant 0 : index
    %108 = vector.load %arg23[%c0_38, %c0_39] : memref<8x128xf32, #tpu.memory_space<vmem>>, vector<8x128xf32>
    tpu.vector_store %arg23[%c0_38, %c0_39], %107 {strides = array<i32>} : memref<8x128xf32, #tpu.memory_space<vmem>>, vector<8x128xf32>,
    %109 = vector.shape_cast %106 : vector<1x8x128xf32> to vector<8x128xf32>
    %c0_40 = arith.constant 0 : index
    %c0_41 = arith.constant 0 : index
    %110 = vector.load %arg24[%c0_40, %c0_41] : memref<8x128xf32, #tpu.memory_space<vmem>>, vector<8x128xf32>
    tpu.vector_store %arg24[%c0_40, %c0_41], %109 {strides = array<i32>} : memref<8x128xf32, #tpu.memory_space<vmem>>, vector<8x128xf32>,
    %111 = vector.shape_cast %105 : vector<1x8x128xf32> to vector<8x128xf32>
    %112 = arith.truncf %111 : vector<8x128xf32> to vector<8x128xbf16>
    %c0_42 = arith.constant 0 : index
    %c0_43 = arith.constant 0 : index
    %113 = vector.load %arg12[%c0_42, %c0_43] : memref<128x384xbf16, #tpu.memory_space<vmem>>, vector<128x384xbf16>
    %cst_44 = arith.constant dense<0.000000e+00> : vector<8x384xf32>
    %114 = tpu.matmul %112, %113, %cst_44 {dimension_numbers = #tpu.dot_dimension_numbers<[1], [0], [0], [1], [0, 0, 1, 1], [], []>} : vector<8x128xbf16>, vector<128x384xbf16>, vector<8x384xf32> -> vector<8x384xf32>
    %c0_45 = arith.constant 0 : index
    %c0_46 = arith.constant 0 : index
    %115 = vector.load %arg13[%c0_45, %c0_46] : memref<1x384xf32, #tpu.memory_space<vmem>>, vector<1x384xf32>
    %116 = vector.broadcast %115 : vector<1x384xf32> to vector<8x384xf32>
    %117 = arith.addf %114, %116 : vector<8x384xf32>
    %118 = vector.shape_cast %117 : vector<8x384xf32> to vector<1x8x384xf32>
    %119 = vector.extract_strided_slice %118 {offsets = [0, 0, 0], sizes = [1, 8, 128], strides = [1, 1, 1]} : vector<1x8x384xf32> to vector<1x8x128xf32>
    %120 = vector.extract_strided_slice %118 {offsets = [0, 0, 128], sizes = [1, 8, 128], strides = [1, 1, 1]} : vector<1x8x384xf32> to vector<1x8x128xf32>
    %121 = vector.extract_strided_slice %118 {offsets = [0, 0, 256], sizes = [1, 8, 128], strides = [1, 1, 1]} : vector<1x8x384xf32> to vector<1x8x128xf32>
    %122 = tpu.concatenate %119, %120, %121 in 0 : vector<1x8x128xf32>, vector<1x8x128xf32>, vector<1x8x128xf32> -> vector<3x8x128xf32>
    %cst_47 = arith.constant 0.000000e+00 : f32
    %123 = vector.broadcast %cst_47 : f32 to vector<3x8x128xf32>
    %124 = vector.shape_cast %122 : vector<3x8x128xf32> to vector<3x1x8x128xf32>
    %125 = vector.shape_cast %123 : vector<3x8x128xf32> to vector<3x1x8x128xf32>
    %126 = tpu.concatenate %124, %125 in 1 : vector<3x1x8x128xf32>, vector<3x1x8x128xf32> -> vector<3x2x8x128xf32>
    %127 = vector.shape_cast %126 : vector<3x2x8x128xf32> to vector<6x8x128xf32>
    %cst_48 = arith.constant 0.000000e+00 : f32
    %128 = vector.broadcast %cst_48 : f32 to vector<1x8x128xf32>
    %129 = tpu.concatenate %128, %127 in 0 : vector<1x8x128xf32>, vector<6x8x128xf32> -> vector<7x8x128xf32>
    %130 = vector.extract_strided_slice %129 {offsets = [0, 0, 0], sizes = [4, 8, 128], strides = [1, 1, 1]} : vector<7x8x128xf32> to vector<4x8x128xf32>
    %131 = vector.extract_strided_slice %129 {offsets = [1, 0, 0], sizes = [4, 8, 128], strides = [1, 1, 1]} : vector<7x8x128xf32> to vector<4x8x128xf32>
    %132 = vector.extract_strided_slice %129 {offsets = [2, 0, 0], sizes = [4, 8, 128], strides = [1, 1, 1]} : vector<7x8x128xf32> to vector<4x8x128xf32>
    %133 = vector.extract_strided_slice %129 {offsets = [3, 0, 0], sizes = [4, 8, 128], strides = [1, 1, 1]} : vector<7x8x128xf32> to vector<4x8x128xf32>
    %134 = tpu.concatenate %130, %131, %132, %133 in 2 : vector<4x8x128xf32>, vector<4x8x128xf32>, vector<4x8x128xf32>, vector<4x8x128xf32> -> vector<4x8x512xf32>
    %135 = vector.shape_cast %134 : vector<4x8x512xf32> to vector<32x512xf32>
    %136 = arith.truncf %135 : vector<32x512xf32> to vector<32x512xbf16>
    %c0_49 = arith.constant 0 : index
    %c0_50 = arith.constant 0 : index
    %137 = vector.load %arg14[%c0_49, %c0_50] : memref<512x128xbf16, #tpu.memory_space<vmem>>, vector<512x128xbf16>
    %cst_51 = arith.constant dense<0.000000e+00> : vector<32x128xf32>
    %138 = tpu.matmul %136, %137, %cst_51 {dimension_numbers = #tpu.dot_dimension_numbers<[1], [0], [0], [1], [0, 0, 1, 1], [], []>} : vector<32x512xbf16>, vector<512x128xbf16>, vector<32x128xf32> -> vector<32x128xf32>
    %c0_52 = arith.constant 0 : index
    %c0_53 = arith.constant 0 : index
    %139 = vector.load %arg15[%c0_52, %c0_53] : memref<1x128xf32, #tpu.memory_space<vmem>>, vector<1x128xf32>
    %140 = vector.broadcast %139 : vector<1x128xf32> to vector<32x128xf32>
    %141 = arith.addf %138, %140 : vector<32x128xf32>
    %cst_54 = arith.constant 0.000000e+00 : f32
    %142 = vector.broadcast %cst_54 : f32 to vector<32x128xf32>
    %143 = arith.maximumf %141, %142 : vector<32x128xf32>
    %144 = vector.shape_cast %143 : vector<32x128xf32> to vector<4x8x128xf32>
    %cst_55 = arith.constant 0.000000e+00 : f32
    %145 = vector.broadcast %cst_55 : f32 to vector<4x8x128xf32>
    %146 = vector.shape_cast %144 : vector<4x8x128xf32> to vector<4x1x8x128xf32>
    %147 = vector.shape_cast %145 : vector<4x8x128xf32> to vector<4x1x8x128xf32>
    %148 = tpu.concatenate %146, %147 in 1 : vector<4x1x8x128xf32>, vector<4x1x8x128xf32> -> vector<4x2x8x128xf32>
    %149 = vector.shape_cast %148 : vector<4x2x8x128xf32> to vector<8x8x128xf32>
    %cst_56 = arith.constant 0.000000e+00 : f32
    %150 = vector.broadcast %cst_56 : f32 to vector<2x8x128xf32>
    %cst_57 = arith.constant 0.000000e+00 : f32
    %151 = vector.broadcast %cst_57 : f32 to vector<1x8x128xf32>
    %152 = tpu.concatenate %150, %149, %151 in 0 : vector<2x8x128xf32>, vector<8x8x128xf32>, vector<1x8x128xf32> -> vector<11x8x128xf32>
    %153 = vector.extract_strided_slice %152 {offsets = [0, 0, 0], sizes = [8, 8, 128], strides = [1, 1, 1]} : vector<11x8x128xf32> to vector<8x8x128xf32>
    %154 = vector.extract_strided_slice %152 {offsets = [1, 0, 0], sizes = [8, 8, 128], strides = [1, 1, 1]} : vector<11x8x128xf32> to vector<8x8x128xf32>
    %155 = vector.extract_strided_slice %152 {offsets = [2, 0, 0], sizes = [8, 8, 128], strides = [1, 1, 1]} : vector<11x8x128xf32> to vector<8x8x128xf32>
    %156 = vector.extract_strided_slice %152 {offsets = [3, 0, 0], sizes = [8, 8, 128], strides = [1, 1, 1]} : vector<11x8x128xf32> to vector<8x8x128xf32>
    %157 = tpu.concatenate %153, %154, %155, %156 in 2 : vector<8x8x128xf32>, vector<8x8x128xf32>, vector<8x8x128xf32>, vector<8x8x128xf32> -> vector<8x8x512xf32>
    %158 = vector.shape_cast %157 : vector<8x8x512xf32> to vector<64x512xf32>
    %159 = arith.truncf %158 : vector<64x512xf32> to vector<64x512xbf16>
    %c0_58 = arith.constant 0 : index
    %c0_59 = arith.constant 0 : index
    %160 = vector.load %arg16[%c0_58, %c0_59] : memref<512x128xbf16, #tpu.memory_space<vmem>>, vector<512x128xbf16>
    %cst_60 = arith.constant dense<0.000000e+00> : vector<64x128xf32>
    %161 = tpu.matmul %159, %160, %cst_60 {dimension_numbers = #tpu.dot_dimension_numbers<[1], [0], [0], [1], [0, 0, 1, 1], [], []>} : vector<64x512xbf16>, vector<512x128xbf16>, vector<64x128xf32> -> vector<64x128xf32>
    %c0_61 = arith.constant 0 : index
    %c0_62 = arith.constant 0 : index
    %162 = vector.load %arg17[%c0_61, %c0_62] : memref<1x128xf32, #tpu.memory_space<vmem>>, vector<1x128xf32>
    %163 = vector.broadcast %162 : vector<1x128xf32> to vector<64x128xf32>
    %164 = arith.addf %161, %163 : vector<64x128xf32>
    %cst_63 = arith.constant 0.000000e+00 : f32
    %165 = vector.broadcast %cst_63 : f32 to vector<64x128xf32>
    %166 = arith.maximumf %164, %165 : vector<64x128xf32>
    %167 = vector.shape_cast %166 : vector<64x128xf32> to vector<8x8x128xf32>
    %cst_64 = arith.constant 0.000000e+00 : f32
    %168 = vector.broadcast %cst_64 : f32 to vector<8x8x128xf32>
    %169 = vector.shape_cast %167 : vector<8x8x128xf32> to vector<8x1x8x128xf32>
    %170 = vector.shape_cast %168 : vector<8x8x128xf32> to vector<8x1x8x128xf32>
    %171 = tpu.concatenate %169, %170 in 1 : vector<8x1x8x128xf32>, vector<8x1x8x128xf32> -> vector<8x2x8x128xf32>
    %172 = vector.shape_cast %171 : vector<8x2x8x128xf32> to vector<16x8x128xf32>
    %cst_65 = arith.constant 0.000000e+00 : f32
    %173 = vector.broadcast %cst_65 : f32 to vector<1x8x128xf32>
    %174 = tpu.concatenate %173, %172 in 0 : vector<1x8x128xf32>, vector<16x8x128xf32> -> vector<17x8x128xf32>
    %175 = vector.extract_strided_slice %174 {offsets = [0, 0, 0], sizes = [14, 8, 128], strides = [1, 1, 1]} : vector<17x8x128xf32> to vector<14x8x128xf32>
    %176 = vector.extract_strided_slice %174 {offsets = [1, 0, 0], sizes = [14, 8, 128], strides = [1, 1, 1]} : vector<17x8x128xf32> to vector<14x8x128xf32>
    %177 = vector.extract_strided_slice %174 {offsets = [2, 0, 0], sizes = [14, 8, 128], strides = [1, 1, 1]} : vector<17x8x128xf32> to vector<14x8x128xf32>
    %178 = vector.extract_strided_slice %174 {offsets = [3, 0, 0], sizes = [14, 8, 128], strides = [1, 1, 1]} : vector<17x8x128xf32> to vector<14x8x128xf32>
    %179 = tpu.concatenate %175, %176, %177, %178 in 2 : vector<14x8x128xf32>, vector<14x8x128xf32>, vector<14x8x128xf32>, vector<14x8x128xf32> -> vector<14x8x512xf32>
    %180 = vector.shape_cast %179 : vector<14x8x512xf32> to vector<112x512xf32>
    %181 = arith.truncf %180 : vector<112x512xf32> to vector<112x512xbf16>
    %c0_66 = arith.constant 0 : index
    %c0_67 = arith.constant 0 : index
    %182 = vector.load %arg18[%c0_66, %c0_67] : memref<512x128xbf16, #tpu.memory_space<vmem>>, vector<512x128xbf16>
    %cst_68 = arith.constant dense<0.000000e+00> : vector<112x128xf32>
    %183 = tpu.matmul %181, %182, %cst_68 {dimension_numbers = #tpu.dot_dimension_numbers<[1], [0], [0], [1], [0, 0, 1, 1], [], []>} : vector<112x512xbf16>, vector<512x128xbf16>, vector<112x128xf32> -> vector<112x128xf32>
    %c0_69 = arith.constant 0 : index
    %c0_70 = arith.constant 0 : index
    %184 = vector.load %arg19[%c0_69, %c0_70] : memref<1x128xf32, #tpu.memory_space<vmem>>, vector<1x128xf32>
    %185 = vector.broadcast %184 : vector<1x128xf32> to vector<112x128xf32>
    %186 = arith.addf %183, %185 : vector<112x128xf32>
    %cst_71 = arith.constant 0.000000e+00 : f32
    %187 = vector.broadcast %cst_71 : f32 to vector<112x128xf32>
    %188 = arith.maximumf %186, %187 : vector<112x128xf32>
    %189 = vector.shape_cast %188 : vector<112x128xf32> to vector<14x8x128xf32>
    %cst_72 = arith.constant 0.000000e+00 : f32
    %190 = vector.broadcast %cst_72 : f32 to vector<14x8x128xf32>
    %191 = vector.shape_cast %189 : vector<14x8x128xf32> to vector<14x1x8x128xf32>
    %192 = vector.shape_cast %190 : vector<14x8x128xf32> to vector<14x1x8x128xf32>
    %193 = tpu.concatenate %191, %192 in 1 : vector<14x1x8x128xf32>, vector<14x1x8x128xf32> -> vector<14x2x8x128xf32>
    %194 = vector.shape_cast %193 : vector<14x2x8x128xf32> to vector<28x8x128xf32>
    %cst_73 = arith.constant 0.000000e+00 : f32
    %195 = vector.broadcast %cst_73 : f32 to vector<2x8x128xf32>
    %cst_74 = arith.constant 0.000000e+00 : f32
    %196 = vector.broadcast %cst_74 : f32 to vector<1x8x128xf32>
    %197 = tpu.concatenate %195, %194, %196 in 0 : vector<2x8x128xf32>, vector<28x8x128xf32>, vector<1x8x128xf32> -> vector<31x8x128xf32>
    %198 = vector.extract_strided_slice %197 {offsets = [0, 0, 0], sizes = [28, 8, 128], strides = [1, 1, 1]} : vector<31x8x128xf32> to vector<28x8x128xf32>
    %199 = vector.extract_strided_slice %197 {offsets = [1, 0, 0], sizes = [28, 8, 128], strides = [1, 1, 1]} : vector<31x8x128xf32> to vector<28x8x128xf32>
    %200 = vector.extract_strided_slice %197 {offsets = [2, 0, 0], sizes = [28, 8, 128], strides = [1, 1, 1]} : vector<31x8x128xf32> to vector<28x8x128xf32>
    %201 = vector.extract_strided_slice %197 {offsets = [3, 0, 0], sizes = [28, 8, 128], strides = [1, 1, 1]} : vector<31x8x128xf32> to vector<28x8x128xf32>
    %202 = tpu.concatenate %198, %199, %200, %201 in 2 : vector<28x8x128xf32>, vector<28x8x128xf32>, vector<28x8x128xf32>, vector<28x8x128xf32> -> vector<28x8x512xf32>
    %203 = vector.shape_cast %202 : vector<28x8x512xf32> to vector<224x512xf32>
    %204 = arith.truncf %203 : vector<224x512xf32> to vector<224x512xbf16>
    %c0_75 = arith.constant 0 : index
    %c0_76 = arith.constant 0 : index
    %205 = vector.load %arg20[%c0_75, %c0_76] : memref<512x128xbf16, #tpu.memory_space<vmem>>, vector<512x128xbf16>
    %cst_77 = arith.constant dense<0.000000e+00> : vector<224x128xf32>
    %206 = tpu.matmul %204, %205, %cst_77 {dimension_numbers = #tpu.dot_dimension_numbers<[1], [0], [0], [1], [0, 0, 1, 1], [], []>} : vector<224x512xbf16>, vector<512x128xbf16>, vector<224x128xf32> -> vector<224x128xf32>
    %c0_78 = arith.constant 0 : index
    %c0_79 = arith.constant 0 : index
    %207 = vector.load %arg21[%c0_78, %c0_79] : memref<1x128xf32, #tpu.memory_space<vmem>>, vector<1x128xf32>
    %208 = vector.broadcast %207 : vector<1x128xf32> to vector<224x128xf32>
    %209 = arith.addf %206, %208 : vector<224x128xf32>
    %cst_80 = arith.constant 0.000000e+00 : f32
    %210 = vector.broadcast %cst_80 : f32 to vector<224x128xf32>
    %211 = arith.subf %210, %209 : vector<224x128xf32>
    %212 = math.exp %211 : vector<224x128xf32>
    %cst_81 = arith.constant 1.000000e+00 : f32
    %213 = vector.broadcast %cst_81 : f32 to vector<224x128xf32>
    %214 = arith.addf %213, %212 : vector<224x128xf32>
    %215 = tpu.reciprocal %214 {approx = true} : vector<224x128xf32> -> vector<224x128xf32>
    %cst_82 = arith.constant 0.000000e+00 : f32
    %cst_83 = arith.constant 1.000000e+00 : f32
    %216 = vector.broadcast %cst_82 : f32 to vector<224x128xf32>
    %217 = arith.maximumf %216, %215 : vector<224x128xf32>
    %218 = vector.broadcast %cst_83 : f32 to vector<224x128xf32>
    %219 = arith.minimumf %218, %217 : vector<224x128xf32>
    %220 = vector.shape_cast %219 : vector<224x128xf32> to vector<28x8x128xf32>
    %c0_84 = arith.constant 0 : index
    %c0_85 = arith.constant 0 : index
    %c0_86 = arith.constant 0 : index
    %221 = vector.load %arg22[%c0_84, %c0_85, %c0_86] : memref<28x8x128xf32, #tpu.memory_space<vmem>>, vector<28x8x128xf32>
    tpu.vector_store %arg22[%c0_84, %c0_85, %c0_86], %220 {strides = array<i32>} : memref<28x8x128xf32, #tpu.memory_space<vmem>>, vector<28x8x128xf32>,
    return
  }
  func.func @transform_0(%arg0: i32) -> (i32, i32, i32) {
    %c0_i32 = arith.constant 0 : i32
    %c0_i32_0 = arith.constant 0 : i32
    %c0_i32_1 = arith.constant 0 : i32
    return %c0_i32, %arg0, %c0_i32_0 : i32, i32, i32
  }
  func.func @transform_1(%arg0: i32) -> (i32, i32) {
    %c0_i32 = arith.constant 0 : i32
    %c0_i32_0 = arith.constant 0 : i32
    %c0_i32_1 = arith.constant 0 : i32
    return %c0_i32, %c0_i32_0 : i32, i32
  }
  func.func @transform_2(%arg0: i32) -> (i32, i32) {
    %c0_i32 = arith.constant 0 : i32
    %c0_i32_0 = arith.constant 0 : i32
    %c0_i32_1 = arith.constant 0 : i32
    return %c0_i32, %c0_i32_0 : i32, i32
  }
  func.func @transform_3(%arg0: i32) -> (i32, i32) {
    %c0_i32 = arith.constant 0 : i32
    %c0_i32_0 = arith.constant 0 : i32
    %c0_i32_1 = arith.constant 0 : i32
    return %c0_i32, %c0_i32_0 : i32, i32
  }
  func.func @transform_4(%arg0: i32) -> (i32, i32) {
    %c0_i32 = arith.constant 0 : i32
    %c0_i32_0 = arith.constant 0 : i32
    %c0_i32_1 = arith.constant 0 : i32
    return %c0_i32, %c0_i32_0 : i32, i32
  }
  func.func @transform_5(%arg0: i32) -> (i32, i32) {
    %c0_i32 = arith.constant 0 : i32
    %c0_i32_0 = arith.constant 0 : i32
    %c0_i32_1 = arith.constant 0 : i32
    return %c0_i32, %c0_i32_0 : i32, i32
  }
  func.func @transform_6(%arg0: i32) -> (i32, i32) {
    %c0_i32 = arith.constant 0 : i32
    %c0_i32_0 = arith.constant 0 : i32
    %c0_i32_1 = arith.constant 0 : i32
    return %c0_i32, %c0_i32_0 : i32, i32
  }
  func.func @transform_7(%arg0: i32) -> (i32, i32) {
    %c0_i32 = arith.constant 0 : i32
    %c0_i32_0 = arith.constant 0 : i32
    %c0_i32_1 = arith.constant 0 : i32
    return %c0_i32, %c0_i32_0 : i32, i32
  }
  func.func @transform_8(%arg0: i32) -> (i32, i32) {
    %c0_i32 = arith.constant 0 : i32
    %c0_i32_0 = arith.constant 0 : i32
    %c0_i32_1 = arith.constant 0 : i32
    return %c0_i32, %c0_i32_0 : i32, i32
  }
  func.func @transform_9(%arg0: i32) -> (i32, i32) {
    %c0_i32 = arith.constant 0 : i32
    %c0_i32_0 = arith.constant 0 : i32
    %c0_i32_1 = arith.constant 0 : i32
    return %c0_i32, %c0_i32_0 : i32, i32
  }
  func.func @transform_10(%arg0: i32) -> (i32, i32) {
    %c0_i32 = arith.constant 0 : i32
    %c0_i32_0 = arith.constant 0 : i32
    %c0_i32_1 = arith.constant 0 : i32
    return %c0_i32, %c0_i32_0 : i32, i32
  }
  func.func @transform_11(%arg0: i32) -> (i32, i32) {
    %c0_i32 = arith.constant 0 : i32
    %c0_i32_0 = arith.constant 0 : i32
    %c0_i32_1 = arith.constant 0 : i32
    return %c0_i32, %c0_i32_0 : i32, i32
  }
  func.func @transform_12(%arg0: i32) -> (i32, i32) {
    %c0_i32 = arith.constant 0 : i32
    %c0_i32_0 = arith.constant 0 : i32
    %c0_i32_1 = arith.constant 0 : i32
    return %c0_i32, %c0_i32_0 : i32, i32
  }
  func.func @transform_13(%arg0: i32) -> (i32, i32) {
    %c0_i32 = arith.constant 0 : i32
    %c0_i32_0 = arith.constant 0 : i32
    %c0_i32_1 = arith.constant 0 : i32
    return %c0_i32, %c0_i32_0 : i32, i32
  }
  func.func @transform_14(%arg0: i32) -> (i32, i32) {
    %c0_i32 = arith.constant 0 : i32
    %c0_i32_0 = arith.constant 0 : i32
    %c0_i32_1 = arith.constant 0 : i32
    return %c0_i32, %c0_i32_0 : i32, i32
  }
  func.func @transform_15(%arg0: i32) -> (i32, i32) {
    %c0_i32 = arith.constant 0 : i32
    %c0_i32_0 = arith.constant 0 : i32
    %c0_i32_1 = arith.constant 0 : i32
    return %c0_i32, %c0_i32_0 : i32, i32
  }
  func.func @transform_16(%arg0: i32) -> (i32, i32) {
    %c0_i32 = arith.constant 0 : i32
    %c0_i32_0 = arith.constant 0 : i32
    %c0_i32_1 = arith.constant 0 : i32
    return %c0_i32, %c0_i32_0 : i32, i32
  }
  func.func @transform_17(%arg0: i32) -> (i32, i32) {
    %c0_i32 = arith.constant 0 : i32
    %c0_i32_0 = arith.constant 0 : i32
    %c0_i32_1 = arith.constant 0 : i32
    return %c0_i32, %c0_i32_0 : i32, i32
  }
  func.func @transform_18(%arg0: i32) -> (i32, i32) {
    %c0_i32 = arith.constant 0 : i32
    %c0_i32_0 = arith.constant 0 : i32
    %c0_i32_1 = arith.constant 0 : i32
    return %c0_i32, %c0_i32_0 : i32, i32
  }
  func.func @transform_19(%arg0: i32) -> (i32, i32) {
    %c0_i32 = arith.constant 0 : i32
    %c0_i32_0 = arith.constant 0 : i32
    %c0_i32_1 = arith.constant 0 : i32
    return %c0_i32, %c0_i32_0 : i32, i32
  }
  func.func @transform_20(%arg0: i32) -> (i32, i32) {
    %c0_i32 = arith.constant 0 : i32
    %c0_i32_0 = arith.constant 0 : i32
    %c0_i32_1 = arith.constant 0 : i32
    return %c0_i32, %c0_i32_0 : i32, i32
  }
  func.func @transform_21(%arg0: i32) -> (i32, i32, i32) {
    %c0_i32 = arith.constant 0 : i32
    %c0_i32_0 = arith.constant 0 : i32
    %c0_i32_1 = arith.constant 0 : i32
    return %c0_i32, %arg0, %c0_i32_0 : i32, i32, i32
  }
  func.func @transform_22(%arg0: i32) -> (i32, i32) {
    %c0_i32 = arith.constant 0 : i32
    %c0_i32_0 = arith.constant 0 : i32
    return %arg0, %c0_i32 : i32, i32
  }
  func.func @transform_23(%arg0: i32) -> (i32, i32) {
    %c0_i32 = arith.constant 0 : i32
    %c0_i32_0 = arith.constant 0 : i32
    return %arg0, %c0_i32 : i32, i32
  }
}

</mosaic_0001>

<bundles_post_ra>
// kernel: vae_cure_cnn_forward.1
= control target key start
LH: loop header
LB: loop body
LE: loop exit
PB: predicated region body
PF: predicated region fallthrough
CT: control target
= control target key end

     0   :  { %s7993_s0 = inlined_call_operand.vmem [shape: f32[32,8,128], index: 0, kind: input, shape index: {}]   ;;  %s7994_s1 = inlined_call_operand.vmem [shape: bf16[512,128], index: 1, kind: input, shape index: {}]   ;;  %s7995_s2 = inlined_call_operand.vmem [shape: f32[1,128], index: 2, kind: input, shape index: {}]   ;;  %s7996_s3 = inlined_call_operand.vmem [shape: bf16[512,128], index: 3, kind: input, shape index: {}]   ;;  %s7997_s4 = inlined_call_operand.vmem [shape: f32[1,128], index: 4, kind: input, shape index: {}]   ;;  %s7998_s5 = inlined_call_operand.vmem [shape: bf16[512,128], index: 5, kind: input, shape index: {}]   ;;  %s7999_s6 = inlined_call_operand.vmem [shape: f32[1,128], index: 6, kind: input, shape index: {}]   ;;  %s8000_s7 = inlined_call_operand.vmem [shape: bf16[512,128], index: 7, kind: input, shape index: {}]   ;;  %s8001_s8 = inlined_call_operand.vmem [shape: f32[1,128], index: 8, kind: input, shape index: {}]   ;;  %s8002_s9 = inlined_call_operand.vmem [shape: bf16[384,256], index: 9, kind: input, shape index: {}]   ;;  %s8003_s10 = inlined_call_operand.vmem [shape: f32[1,256], index: 10, kind: input, shape index: {}]   ;;  %s8004_s11 = inlined_call_operand.vmem [shape: bf16[128,384], index: 11, kind: input, shape index: {}]   ;;  %s8005_s12 = inlined_call_operand.vmem [shape: f32[1,384], index: 12, kind: input, shape index: {}]   ;;  %s8006_s13 = inlined_call_operand.vmem [shape: bf16[512,128], index: 13, kind: input, shape index: {}]   ;;  %s8007_s14 = inlined_call_operand.vmem [shape: f32[1,128], index: 14, kind: input, shape index: {}]   ;;  %s8008_s15 = inlined_call_operand.vmem [shape: bf16[512,128], index: 15, kind: input, shape index: {}]   ;;  %s8009_s16 = inlined_call_operand.vmem [shape: f32[1,128], index: 16, kind: input, shape index: {}]   ;;  %s8010_s17 = inlined_call_operand.vmem [shape: bf16[512,128], index: 17, kind: input, shape index: {}]   ;;  %s8011_s18 = inlined_call_operand.vmem [shape: f32[1,128], index: 18, kind: input, shape index: {}]   ;;  %s8012_s19 = inlined_call_operand.vmem [shape: bf16[512,128], index: 19, kind: input, shape index: {}]   ;;  %s8013_s20 = inlined_call_operand.vmem [shape: f32[1,128], index: 20, kind: input, shape index: {}]   ;;  %s8014_s21 = inlined_call_operand.vmem [shape: f32[28,8,128], index: 21, kind: output, shape index: {0}]   ;;  %s8015_s22 = inlined_call_operand.hbm [shape: f32[8,128], index: 22, kind: output, shape index: {1}]   ;;  %s8016_s23 = inlined_call_operand.hbm [shape: f32[8,128], index: 23, kind: output, shape index: {2}]  }
   0x1   :  { %8022 = sst [smem:[#allocation8_spill]] %s7993_s0 }
   0x2   :  { %8023 = sst [smem:[#allocation9_spill]] %s7994_s1 }
   0x3   :  { %8024 = sst [smem:[#allocation10_spill]] %s7995_s2 }
   0x4   :  { %8025 = sst [smem:[#allocation11_spill]] %s7996_s3 }
   0x5   :  { %8026 = sst [smem:[#allocation12_spill]] %s7997_s4 }
   0x6   :  { %8027 = sst [smem:[#allocation13_spill]] %s7998_s5 }
   0x7   :  { %8028 = sst [smem:[#allocation14_spill]] %s7999_s6 }
   0x8   :  { %8029 = sst [smem:[#allocation15_spill]] %s8000_s7 }
   0x9   :  { %29 = vsyncpa [#allocation3], 0  ;;  %s8030_s24 = sld [smem:[#allocation9_spill]] }
   0xf   :  { %v5731_v0 = vld [vmem:[%s8030_s24 + $0x38] sm:$0xff]  ;;  %v5730_v4 = vld [vmem:[%s8030_s24 + $0x30] sm:$0xff]  ;;  %v5729_v8 = vld [vmem:[%s8030_s24 + $0x28] sm:$0xff] }
  0x10   :  { %v5739_v1 = vld [vmem:[%s8030_s24 + $0x78] sm:$0xff]  ;;  %400 = vmatpush.bf16.msra.mxu0 %v5731_v0  ;;  %v5738_v5 = vld [vmem:[%s8030_s24 + $0x70] sm:$0xff]  ;;  %v5737_v9 = vld [vmem:[%s8030_s24 + $0x68] sm:$0xff] }
  0x11   :  { %v5747_v2 = vld [vmem:[%s8030_s24 + $0xb8] sm:$0xff]  ;;  %453 = vmatpush.bf16.msra.mxu1 %v5739_v1  ;;  %v5746_v6 = vld [vmem:[%s8030_s24 + $0xb0] sm:$0xff]  ;;  %v5745_v10 = vld [vmem:[%s8030_s24 + $0xa8] sm:$0xff] }
  0x12   :  { %v5755_v3 = vld [vmem:[%s8030_s24 + $0xf8] sm:$0xff]  ;;  %506 = vmatpush.bf16.msra.mxu2 %v5747_v2  ;;  %v5754_v7 = vld [vmem:[%s8030_s24 + $0xf0] sm:$0xff]  ;;  %v5753_v11 = vld [vmem:[%s8030_s24 + $0xe8] sm:$0xff] }
  0x13   :  { %559 = vmatpush.bf16.msra.mxu3 %v5755_v3  ;;  %v5728_v12 = vld [vmem:[%s8030_s24 + $0x20] sm:$0xff]  ;;  %v5727_v16 = vld [vmem:[%s8030_s24 + $0x18] sm:$0xff] }
  0x14   :  { %401 = vmatpush.bf16.msra.mxu0 %v5730_v4  ;;  %v5736_v13 = vld [vmem:[%s8030_s24 + $0x60] sm:$0xff]  ;;  %v5735_v17 = vld [vmem:[%s8030_s24 + $0x58] sm:$0xff] }
  0x15   :  { %454 = vmatpush.bf16.msra.mxu1 %v5738_v5  ;;  %v5744_v14 = vld [vmem:[%s8030_s24 + $0xa0] sm:$0xff]  ;;  %v5743_v18 = vld [vmem:[%s8030_s24 + $0x98] sm:$0xff] }
  0x16   :  { %507 = vmatpush.bf16.msra.mxu2 %v5746_v6  ;;  %v5752_v15 = vld [vmem:[%s8030_s24 + $0xe0] sm:$0xff]  ;;  %v5751_v19 = vld [vmem:[%s8030_s24 + $0xd8] sm:$0xff] }
  0x17   :  { %560 = vmatpush.bf16.msra.mxu3 %v5754_v7 }
  0x18   :  { %402 = vmatpush.bf16.msra.mxu0 %v5729_v8 }
  0x19   :  { %455 = vmatpush.bf16.msra.mxu1 %v5737_v9 }
  0x1a   :  { %508 = vmatpush.bf16.msra.mxu2 %v5745_v10 }
  0x1b   :  { %561 = vmatpush.bf16.msra.mxu3 %v5753_v11 }
  0x1c   :  { %403 = vmatpush.bf16.msra.mxu0 %v5728_v12 }
  0x1d   :  { %456 = vmatpush.bf16.msra.mxu1 %v5736_v13 }
  0x1e   :  { %509 = vmatpush.bf16.msra.mxu2 %v5744_v14 }
  0x1f   :  { %562 = vmatpush.bf16.msra.mxu3 %v5752_v15 }
  0x20   :  { %30 = vsyncpa [#allocation5], 0  ;;  %404 = vmatpush.bf16.msra.mxu0 %v5727_v16  ;;  %v5726_v20 = vld [vmem:[%s8030_s24 + $0x10] sm:$0xff]  ;;  %v5725_v24 = vld [vmem:[%s8030_s24 + $0x8] sm:$0xff]  ;;  %s8031_s27 = sld [smem:[#allocation8_spill]]  ;;  %v6237_v36 = vmov 0.0  }
  0x21   :  { %457 = vmatpush.bf16.msra.mxu1 %v5735_v17  ;;  %v5734_v21 = vld [vmem:[%s8030_s24 + $0x50] sm:$0xff]  ;;  %v5733_v25 = vld [vmem:[%s8030_s24 + $0x48] sm:$0xff]  ;;  %v5724_v28 = vld [vmem:[%s8030_s24] sm:$0xff]  ;;  %s8032_s2 = sld [smem:[#allocation11_spill]]  ;;  %s6240_s4 = smov [#allocation4]  }
  0x22   :  { %510 = vmatpush.bf16.msra.mxu2 %v5743_v18  ;;  %v5742_v22 = vld [vmem:[%s8030_s24 + $0x90] sm:$0xff]  ;;  %v5741_v26 = vld [vmem:[%s8030_s24 + $0x88] sm:$0xff]  ;;  %v5732_v29 = vld [vmem:[%s8030_s24 + $0x40] sm:$0xff]  ;;  %s8034_s6 = sld [smem:[#allocation13_spill]] }
  0x23   :  { %563 = vmatpush.bf16.msra.mxu3 %v5751_v19  ;;  %v5750_v23 = vld [vmem:[%s8030_s24 + $0xd0] sm:$0xff]  ;;  %v5749_v27 = vld [vmem:[%s8030_s24 + $0xc8] sm:$0xff]  ;;  %v5740_v30 = vld [vmem:[%s8030_s24 + $0x80] sm:$0xff]  ;;  %s8035_s30 = sld [smem:[#allocation12_spill]] }
  0x24   :  { %405 = vmatpush.bf16.msra.mxu0 %v5726_v20  ;;  %v5748_v33 = vld [vmem:[%s8030_s24 + $0xc0] sm:$0xff]  ;;  %s8036_s5 = sld [smem:[#allocation15_spill]] }
  0x25   :  { %458 = vmatpush.bf16.msra.mxu1 %v5734_v21  ;;  %s8037_s28 = sld [smem:[#allocation14_spill]] }
  0x26   :  { %511 = vmatpush.bf16.msra.mxu2 %v5742_v22  ;;  %v73_v31 = vld [vmem:[%s8031_s27] sm:$0xff]  ;;  %v74_v32 = vld [vmem:[%s8031_s27 + $0x8] sm:$0xff]  ;;  %v75_v34 = vld [vmem:[%s8031_s27 + $0x10] sm:$0xff] }
  0x27   :  { %564 = vmatpush.bf16.msra.mxu3 %v5750_v23  ;;  %v76_v35 = vld [vmem:[%s8031_s27 + $0x18] sm:$0xff]  ;;  %v105_v37 = vpack.c.bf16 %v73_v31, %v6237_v36  ;;  %v106_v38 = vpack.c.bf16 %v74_v32, %v6237_v36  ;;  %v107_v39 = vpack.c.bf16 %v75_v34, %v73_v31  ;;  %v77_v41 = vld [vmem:[%s8031_s27 + $0x20] sm:$0xff]  ;;  %v78_v42 = vld [vmem:[%s8031_s27 + $0x28] sm:$0xff] }
  0x28   :  { %406 = vmatpush.bf16.msra.mxu0 %v5725_v24  ;;  %v108_v40 = vpack.c.bf16 %v76_v35, %v74_v32  ;;  %v79_v43 = vld [vmem:[%s8031_s27 + $0x30] sm:$0xff]  ;;  %v80_v44 = vld [vmem:[%s8031_s27 + $0x38] sm:$0xff]  ;;  %v109_v45 = vpack.c.bf16 %v77_v41, %v75_v34  ;;  %v110_v46 = vpack.c.bf16 %v78_v42, %v76_v35  ;;  %v81_v49 = vld [vmem:[%s8031_s27 + $0x40] sm:$0xff] }
  0x29   :  { %459 = vmatpush.bf16.msra.mxu1 %v5733_v25  ;;  %v111_v47 = vpack.c.bf16 %v79_v43, %v77_v41  ;;  %v112_v48 = vpack.c.bf16 %v80_v44, %v78_v42  ;;  %v82_v50 = vld [vmem:[%s8031_s27 + $0x48] sm:$0xff]  ;;  %v83_v51 = vld [vmem:[%s8031_s27 + $0x50] sm:$0xff]  ;;  %v84_v52 = vld [vmem:[%s8031_s27 + $0x58] sm:$0xff]  ;;  %v113_v53 = vpack.c.bf16 %v81_v49, %v79_v43 }
  0x2a   :  { %512 = vmatpush.bf16.msra.mxu2 %v5741_v26  ;;  %v114_v54 = vpack.c.bf16 %v82_v50, %v80_v44  ;;  %v115_v55 = vpack.c.bf16 %v83_v51, %v81_v49  ;;  %v116_v56 = vpack.c.bf16 %v84_v52, %v82_v50  ;;  %v5779_v57 = vld [vmem:[%s8032_s2 + $0xb8] sm:$0xff]  ;;  %v85_v61 = vld [vmem:[%s8031_s27 + $0x60] sm:$0xff]  ;;  %v86_v62 = vld [vmem:[%s8031_s27 + $0x68] sm:$0xff] }
  0x2b   :  { %565 = vmatpush.bf16.msra.mxu3 %v5749_v27  ;;  %v5763_v58 = vld [vmem:[%s8032_s2 + $0x38] sm:$0xff]  ;;  %v87_v63 = vld [vmem:[%s8031_s27 + $0x70] sm:$0xff]  ;;  %v117_v1 = vpack.c.bf16 %v85_v61, %v83_v51  ;;  %v118_v2 = vpack.c.bf16 %v86_v62, %v84_v52  ;;  %v89_v9 = vld [vmem:[%s8031_s27 + $0x80] sm:$0xff] }
  0x2c   :  { %407 = vmatpush.bf16.msra.mxu0 %v5724_v28  ;;  %v5787_v59 = vld [vmem:[%s8032_s2 + $0xf8] sm:$0xff]  ;;  %v119_v3 = vpack.c.bf16 %v87_v63, %v85_v61  ;;  %v5778_v5 = vld [vmem:[%s8032_s2 + $0xb0] sm:$0xff]  ;;  %v90_v10 = vld [vmem:[%s8031_s27 + $0x88] sm:$0xff]  ;;  %v121_v13 = vpack.c.bf16 %v89_v9, %v87_v63 }
  0x2d   :  { %460 = vmatpush.bf16.msra.mxu1 %v5732_v29  ;;  %v5771_v60 = vld [vmem:[%s8032_s2 + $0x78] sm:$0xff]  ;;  %v5762_v6 = vld [vmem:[%s8032_s2 + $0x30] sm:$0xff]  ;;  %v5777_v17 = vld [vmem:[%s8032_s2 + $0xa8] sm:$0xff] }
  0x2e   :  { %513 = vmatpush.bf16.msra.mxu2 %v5740_v30  ;;  %v88_v0 = vld [vmem:[%s8031_s27 + $0x78] sm:$0xff]  ;;  %v5786_v7 = vld [vmem:[%s8032_s2 + $0xf0] sm:$0xff]  ;;  %v5761_v18 = vld [vmem:[%s8032_s2 + $0x28] sm:$0xff] }
  0x2f   :  { %566 = vmatpush.bf16.msra.mxu3 %v5748_v33  ;;  %408 = vmatmul.bf16.vlgmr.msra.gmra.mxu0 %v105_v37  ;;  %v120_v4 = vpack.c.bf16 %v88_v0, %v86_v62  ;;  %v5770_v8 = vld [vmem:[%s8032_s2 + $0x70] sm:$0xff]  ;;  %v92_v12 = vld [vmem:[%s8031_s27 + $0x98] sm:$0xff]  ;;  %v122_v14 = vpack.c.bf16 %v90_v10, %v88_v0  ;;  %v5785_v19 = vld [vmem:[%s8032_s2 + $0xe8] sm:$0xff] }
  0x30   :  { %461 = vmatmul.bf16.vlgmr.msra.gmra.mxu1 %v106_v38  ;;  %908 = vmatpush.bf16.msrb.mxu0 %v5763_v58  ;;  %v91_v11 = vld [vmem:[%s8031_s27 + $0x90] sm:$0xff]  ;;  %v124_v16 = vpack.c.bf16 %v92_v12, %v90_v10  ;;  %v5769_v20 = vld [vmem:[%s8032_s2 + $0x68] sm:$0xff]  ;;  %v93_v21 = vld [vmem:[%s8031_s27 + $0xa0] sm:$0xff] }
  0x31   :  { %514 = vmatmul.bf16.vlgmr.msra.gmra.mxu2 %v107_v39  ;;  %941 = vmatpush.bf16.msrb.mxu1 %v5771_v60  ;;  %v123_v15 = vpack.c.bf16 %v91_v11, %v89_v9  ;;  %v94_v22 = vld [vmem:[%s8031_s27 + $0xa8] sm:$0xff]  ;;  %v95_v23 = vld [vmem:[%s8031_s27 + $0xb0] sm:$0xff]  ;;  %v96_v24 = vld [vmem:[%s8031_s27 + $0xb8] sm:$0xff]  ;;  %v125_v25 = vpack.c.bf16 %v93_v21, %v91_v11  ;;  %v6238_v9 = vmov 0.0|0.0  }
  0x32   :  { %567 = vmatmul.bf16.vlgmr.msra.gmra.mxu3 %v108_v40  ;;  %974 = vmatpush.bf16.msrb.mxu2 %v5779_v57  ;;  %v126_v26 = vpack.c.bf16 %v94_v22, %v92_v12  ;;  %v127_v27 = vpack.c.bf16 %v95_v23, %v93_v21  ;;  %v128_v28 = vpack.c.bf16 %v96_v24, %v94_v22  ;;  %v5776_v29 = vld [vmem:[%s8032_s2 + $0xa0] sm:$0xff]  ;;  %v98_v34 = vld [vmem:[%s8031_s27 + $0xc8] sm:$0xff]  ;;  %v99_v35 = vld [vmem:[%s8031_s27 + $0xd0] sm:$0xff] }
  0x33   :  { %1007 = vmatpush.bf16.msrb.mxu3 %v5787_v59  ;;  %v5760_v30 = vld [vmem:[%s8032_s2 + $0x20] sm:$0xff]  ;;  %v100_v37 = vld [vmem:[%s8031_s27 + $0xd8] sm:$0xff]  ;;  %v130_v39 = vpack.c.bf16 %v98_v34, %v96_v24  ;;  %v5758_v43 = vld [vmem:[%s8032_s2 + $0x10] sm:$0xff] }
  0x34   :  { %909 = vmatpush.bf16.msrb.mxu0 %v5762_v6  ;;  %v5784_v31 = vld [vmem:[%s8032_s2 + $0xe0] sm:$0xff]  ;;  %v132_v41 = vpack.c.bf16 %v100_v37, %v98_v34  ;;  %v5759_v42 = vld [vmem:[%s8032_s2 + $0x18] sm:$0xff]  ;;  %v103_v49 = vld [vmem:[%s8031_s27 + $0xf0] sm:$0xff] }
  0x35   :  { %942 = vmatpush.bf16.msrb.mxu1 %v5770_v8  ;;  %v5768_v32 = vld [vmem:[%s8032_s2 + $0x60] sm:$0xff]  ;;  %v5767_v44 = vld [vmem:[%s8032_s2 + $0x58] sm:$0xff]  ;;  %v5774_v59 = vld [vmem:[%s8032_s2 + $0x90] sm:$0xff] }
  0x36   :  { %975 = vmatpush.bf16.msrb.mxu2 %v5778_v5  ;;  %v97_v33 = vld [vmem:[%s8031_s27 + $0xc0] sm:$0xff]  ;;  %v104_v50 = vld [vmem:[%s8031_s27 + $0xf8] sm:$0xff]  ;;  %v5773_v61 = vld [vmem:[%s8032_s2 + $0x88] sm:$0xff] }
  0x37   :  { %1008 = vmatpush.bf16.msrb.mxu3 %v5786_v7  ;;  %v129_v38 = vpack.c.bf16 %v97_v33, %v95_v23  ;;  %v131_v40 = vpack.c.bf16 %v99_v35, %v97_v33  ;;  %v5775_v51 = vld [vmem:[%s8032_s2 + $0x98] sm:$0xff]  ;;  %v5764_v58 = vld [vmem:[%s8032_s2 + $0x40] sm:$0xff]  ;;  %v5782_v63 = vld [vmem:[%s8032_s2 + $0xd0] sm:$0xff] }
  0x38   :  { %910 = vmatpush.bf16.msrb.mxu0 %v5761_v18  ;;  %v5783_v60 = vld [vmem:[%s8032_s2 + $0xd8] sm:$0xff]  ;;  %v5772_v62 = vld [vmem:[%s8032_s2 + $0x80] sm:$0xff] }
  0x39   :  { %943 = vmatpush.bf16.msrb.mxu1 %v5769_v20  ;;  %v5780_v7 = vld [vmem:[%s8032_s2 + $0xc0] sm:$0xff] }
  0x3a   :  { %976 = vmatpush.bf16.msrb.mxu2 %v5777_v17 }
  0x3b   :  { %1009 = vmatpush.bf16.msrb.mxu3 %v5785_v19 }
  0x3c   :  { %911 = vmatpush.bf16.msrb.mxu0 %v5760_v30 }
  0x3d   :  { %944 = vmatpush.bf16.msrb.mxu1 %v5768_v32 }
  0x3e   :  { %977 = vmatpush.bf16.msrb.mxu2 %v5776_v29 }
  0x3f   :  { %413 = vmatmul.bf16.gmra.mxu0 %v109_v45  ;;  %1010 = vmatpush.bf16.msrb.mxu3 %v5784_v31  ;;  %v5757_v45 = vld [vmem:[%s8032_s2 + $0x8] sm:$0xff] }
  0x40   :  { %466 = vmatmul.bf16.gmra.mxu1 %v110_v46  ;;  %912 = vmatpush.bf16.msrb.mxu0 %v5759_v42  ;;  %v5766_v46 = vld [vmem:[%s8032_s2 + $0x50] sm:$0xff] }
  0x41   :  { %519 = vmatmul.bf16.gmra.mxu2 %v111_v47  ;;  %945 = vmatpush.bf16.msrb.mxu1 %v5767_v44  ;;  %v101_v47 = vld [vmem:[%s8031_s27 + $0xe0] sm:$0xff] }
  0x42   :  { %572 = vmatmul.bf16.gmra.mxu3 %v112_v48  ;;  %v102_v48 = vld [vmem:[%s8031_s27 + $0xe8] sm:$0xff]  ;;  %v133_v52 = vpack.c.bf16 %v101_v47, %v99_v35  ;;  %978 = vmatpush.bf16.msrb.mxu2 %v5775_v51  ;;  %s8033_s27 = sld [smem:[#allocation10_spill]] }
  0x43   :  { %v136_v57 = vpack.c.bf16 %v104_v50, %v102_v48  ;;  %1011 = vmatpush.bf16.msrb.mxu3 %v5783_v60 }
  0x44   :  { %913 = vmatpush.bf16.msrb.mxu0 %v5758_v43 }
  0x45   :  { %946 = vmatpush.bf16.msrb.mxu1 %v5766_v46 }
  0x46   :  { %979 = vmatpush.bf16.msrb.mxu2 %v5774_v59 }
  0x47   :  { %1012 = vmatpush.bf16.msrb.mxu3 %v5782_v63 }
  0x48   :  { %914 = vmatpush.bf16.msrb.mxu0 %v5757_v45  ;;  %v6648_v0 = vld [vmem:[%s8033_s27] ss:$0 sm:$0xff] }
  0x4a   :  { %980 = vmatpush.bf16.msrb.mxu2 %v5773_v61 }
  0x4e   :  { %981 = vmatpush.bf16.msrb.mxu2 %v5772_v62 }
  0x4f   :  { %418 = vmatmul.bf16.gmra.mxu0 %v113_v53  ;;  %v134_v53 = vpack.c.bf16 %v102_v48, %v100_v37 }
  0x50   :  { %471 = vmatmul.bf16.gmra.mxu1 %v114_v54  ;;  %v5756_v54 = vld [vmem:[%s8032_s2] sm:$0xff] }
  0x51   :  { %524 = vmatmul.bf16.gmra.mxu2 %v115_v55  ;;  %v5765_v55 = vld [vmem:[%s8032_s2 + $0x48] sm:$0xff]  ;;  %915 = vmatpush.bf16.msrb.mxu0 %v5756_v54 }
  0x52   :  { %577 = vmatmul.bf16.gmra.mxu3 %v116_v56  ;;  %v135_v56 = vpack.c.bf16 %v103_v49, %v101_v47  ;;  %947 = vmatpush.bf16.msrb.mxu1 %v5765_v55 }
  0x56   :  { %948 = vmatpush.bf16.msrb.mxu1 %v5764_v58 }
  0x5f   :  { %423 = vmatmul.bf16.gmra.mxu0 %v117_v1  ;;  %v137_v1 = vpack.c.bf16 %v103_v49, %v103_v49 }
  0x60   :  { %476 = vmatmul.bf16.gmra.mxu1 %v118_v2  ;;  %v138_v2 = vpack.c.bf16 %v104_v50, %v104_v50 }
  0x61   :  { %529 = vmatmul.bf16.gmra.mxu2 %v119_v3  ;;  %v5781_v3 = vld [vmem:[%s8032_s2 + $0xc8] sm:$0xff] }
  0x62   :  { %582 = vmatmul.bf16.gmra.mxu3 %v120_v4 }
  0x63   :  { %1013 = vmatpush.bf16.msrb.mxu3 %v5781_v3 }
  0x67   :  { %1014 = vmatpush.bf16.msrb.mxu3 %v5780_v7 }
  0x6f   :  { %428 = vmatmul.bf16.gmra.mxu0 %v121_v13 }
  0x70   :  { %481 = vmatmul.bf16.gmra.mxu1 %v122_v14 }
  0x71   :  { %534 = vmatmul.bf16.gmra.mxu2 %v123_v15 }
  0x72   :  { %587 = vmatmul.bf16.gmra.mxu3 %v124_v16 }
  0x7f   :  { %433 = vmatmul.bf16.gmra.mxu0 %v125_v25 }
  0x80   :  { %486 = vmatmul.bf16.gmra.mxu1 %v126_v26 }
  0x81   :  { %539 = vmatmul.bf16.gmra.mxu2 %v127_v27 }
  0x82   :  { %592 = vmatmul.bf16.gmra.mxu3 %v128_v28 }
  0x8f   :  { %438 = vmatmul.bf16.gmra.mxu0 %v129_v38 }
  0x90   :  { %491 = vmatmul.bf16.gmra.mxu1 %v130_v39 }
  0x91   :  { %544 = vmatmul.bf16.gmra.mxu2 %v131_v40 }
  0x92   :  { %597 = vmatmul.bf16.gmra.mxu3 %v132_v41 }
  0x9f   :  { %443 = vmatmul.bf16.gmra.mxu0 %v133_v52 }
  0xa0   :  { %496 = vmatmul.bf16.gmra.mxu1 %v134_v53 }
  0xa1   :  { %549 = vmatmul.bf16.gmra.mxu2 %v135_v56 }
  0xa2   :  { %602 = vmatmul.bf16.gmra.mxu3 %v136_v57 }
  0xac   :  { %v409_v4 = vpop.f32.mrf.mxu0 }
  0xad   :  { %v462_v5 = vpop.f32.mrf.mxu1  ;;  %v410_v6 = vadd.f32 %v6648_v0, %v409_v4 }
  0xaf   :  { %448 = vmatmul.bf16.gmra.mxu0 %v137_v1  ;;  %v463_v8 = vadd.f32 %v462_v5, %v410_v6 }
  0xb0   :  { %501 = vmatmul.bf16.gmra.mxu1 %v138_v2 }
  0xb1   :  { %554 = vmatmul.bf16.gmra.mxu2 %v6238_v9 }
  0xb2   :  { %607 = vmatmul.bf16.gmra.mxu3 %v6238_v9 }
  0xb4   :  { %v515_v10 = vpop.f32.mrf.mxu2  ;;  %v411_v13 = vpop.f32.mrf.mxu0 }
  0xb5   :  { %v568_v11 = vpop.f32.mrf.mxu3  ;;  %v516_v12 = vadd.f32 %v515_v10, %v463_v8  ;;  %v464_v14 = vpop.f32.mrf.mxu1  ;;  %v412_v16 = vadd.f32 %v6648_v0, %v411_v13 }
  0xb7   :  { %v569_v15 = vadd.f32 %v568_v11, %v516_v12  ;;  %v465_v18 = vadd.f32 %v464_v14, %v412_v16 }
  0xb9   :  { %v612_v17 = vmax.f32 %v569_v15, 0.0 }
  0xbb   :  { %v629_v24 = vpack.c.bf16 %v612_v17, %v6237_v36 }
  0xbc   :  { %v517_v19 = vpop.f32.mrf.mxu2  ;;  %v414_v22 = vpop.f32.mrf.mxu0 }
  0xbd   :  { %v570_v20 = vpop.f32.mrf.mxu3  ;;  %v518_v21 = vadd.f32 %v517_v19, %v465_v18  ;;  %v467_v23 = vpop.f32.mrf.mxu1  ;;  %v415_v25 = vadd.f32 %v6648_v0, %v414_v22 }
  0xbf   :  { %v571_v26 = vadd.f32 %v570_v20, %v518_v21  ;;  %916 = vmatmul.bf16.vlgmr.msrb.gmra.mxu0 %v629_v24  ;;  %v468_v28 = vadd.f32 %v467_v23, %v415_v25 }
  0xc1   :  { %v613_v27 = vmax.f32 %v571_v26, 0.0 }
  0xc3   :  { %v630_v29 = vpack.c.bf16 %v613_v27, %v6237_v36 }
  0xc4   :  { %v520_v30 = vpop.f32.mrf.mxu2  ;;  %v416_v33 = vpop.f32.mrf.mxu0 }
  0xc5   :  { %v573_v31 = vpop.f32.mrf.mxu3  ;;  %v521_v32 = vadd.f32 %v520_v30, %v468_v28  ;;  %949 = vmatmul.bf16.vlgmr.msrb.gmra.mxu1 %v630_v29  ;;  %v469_v34 = vpop.f32.mrf.mxu1  ;;  %v417_v37 = vadd.f32 %v6648_v0, %v416_v33 }
  0xc7   :  { %v574_v35 = vadd.f32 %v573_v31, %v521_v32  ;;  %v470_v40 = vadd.f32 %v469_v34, %v417_v37 }
  0xc9   :  { %v614_v38 = vmax.f32 %v574_v35, 0.0 }
  0xcb   :  { %v631_v39 = vpack.c.bf16 %v614_v38, %v612_v17 }
  0xcc   :  { %v522_v41 = vpop.f32.mrf.mxu2  ;;  %v419_v44 = vpop.f32.mrf.mxu0 }
  0xcd   :  { %v575_v42 = vpop.f32.mrf.mxu3  ;;  %v523_v43 = vadd.f32 %v522_v41, %v470_v40  ;;  %982 = vmatmul.bf16.vlgmr.msrb.gmra.mxu2 %v631_v39  ;;  %v472_v45 = vpop.f32.mrf.mxu1  ;;  %v420_v46 = vadd.f32 %v6648_v0, %v419_v44 }
  0xcf   :  { %v576_v47 = vadd.f32 %v575_v42, %v523_v43  ;;  %v473_v49 = vadd.f32 %v472_v45, %v420_v46 }
  0xd1   :  { %v615_v48 = vmax.f32 %v576_v47, 0.0 }
  0xd3   :  { %v632_v50 = vpack.c.bf16 %v615_v48, %v613_v27 }
  0xd4   :  { %v525_v51 = vpop.f32.mrf.mxu2  ;;  %v421_v54 = vpop.f32.mrf.mxu0 }
  0xd5   :  { %v578_v52 = vpop.f32.mrf.mxu3  ;;  %v526_v53 = vadd.f32 %v525_v51, %v473_v49  ;;  %1015 = vmatmul.bf16.vlgmr.msrb.gmra.mxu3 %v632_v50  ;;  %v474_v55 = vpop.f32.mrf.mxu1  ;;  %v422_v57 = vadd.f32 %v6648_v0, %v421_v54 }
  0xd7   :  { %v579_v56 = vadd.f32 %v578_v52, %v526_v53  ;;  %v475_v59 = vadd.f32 %v474_v55, %v422_v57 }
  0xd9   :  { %v616_v58 = vmax.f32 %v579_v56, 0.0 }
  0xdb   :  { %v633_v60 = vpack.c.bf16 %v616_v58, %v614_v38 }
  0xdc   :  { %v527_v61 = vpop.f32.mrf.mxu2  ;;  %v424_v1 = vpop.f32.mrf.mxu0 }
  0xdd   :  { %v580_v62 = vpop.f32.mrf.mxu3  ;;  %v528_v63 = vadd.f32 %v527_v61, %v475_v59  ;;  %921 = vmatmul.bf16.gmra.mxu0 %v633_v60  ;;  %v477_v2 = vpop.f32.mrf.mxu1  ;;  %v425_v3 = vadd.f32 %v6648_v0, %v424_v1 }
  0xdf   :  { %v581_v4 = vadd.f32 %v580_v62, %v528_v63  ;;  %v478_v6 = vadd.f32 %v477_v2, %v425_v3 }
  0xe1   :  { %v617_v5 = vmax.f32 %v581_v4, 0.0 }
  0xe3   :  { %v634_v7 = vpack.c.bf16 %v617_v5, %v615_v48 }
  0xe4   :  { %v530_v8 = vpop.f32.mrf.mxu2  ;;  %v426_v12 = vpop.f32.mrf.mxu0 }
  0xe5   :  { %v583_v10 = vpop.f32.mrf.mxu3  ;;  %v531_v11 = vadd.f32 %v530_v8, %v478_v6  ;;  %954 = vmatmul.bf16.gmra.mxu1 %v634_v7  ;;  %v479_v13 = vpop.f32.mrf.mxu1  ;;  %v427_v15 = vadd.f32 %v6648_v0, %v426_v12 }
  0xe7   :  { %v584_v14 = vadd.f32 %v583_v10, %v531_v11  ;;  %v480_v17 = vadd.f32 %v479_v13, %v427_v15 }
  0xe9   :  { %v618_v16 = vmax.f32 %v584_v14, 0.0 }
  0xeb   :  { %v635_v18 = vpack.c.bf16 %v618_v16, %v616_v58 }
  0xec   :  { %v532_v19 = vpop.f32.mrf.mxu2  ;;  %v429_v22 = vpop.f32.mrf.mxu0 }
  0xed   :  { %v585_v20 = vpop.f32.mrf.mxu3  ;;  %v533_v21 = vadd.f32 %v532_v19, %v480_v17  ;;  %987 = vmatmul.bf16.gmra.mxu2 %v635_v18  ;;  %v482_v23 = vpop.f32.mrf.mxu1  ;;  %v430_v24 = vadd.f32 %v6648_v0, %v429_v22 }
  0xef   :  { %v586_v25 = vadd.f32 %v585_v20, %v533_v21  ;;  %v483_v27 = vadd.f32 %v482_v23, %v430_v24  ;;  %v5795_v24 = vld [vmem:[%s8034_s6 + $0x38] sm:$0xff] }
  0xf0   :  { %1320 = vmatpush.bf16.msra.mxu0 %v5795_v24 }
  0xf1   :  { %v619_v26 = vmax.f32 %v586_v25, 0.0 }
  0xf3   :  { %v636_v28 = vpack.c.bf16 %v619_v26, %v617_v5 }
  0xf4   :  { %v535_v29 = vpop.f32.mrf.mxu2  ;;  %v431_v32 = vpop.f32.mrf.mxu0 }
  0xf5   :  { %v588_v30 = vpop.f32.mrf.mxu3  ;;  %v536_v31 = vadd.f32 %v535_v29, %v483_v27  ;;  %1020 = vmatmul.bf16.gmra.mxu3 %v636_v28  ;;  %v484_v33 = vpop.f32.mrf.mxu1  ;;  %v432_v35 = vadd.f32 %v6648_v0, %v431_v32  ;;  %v5794_v28 = vld [vmem:[%s8034_s6 + $0x30] sm:$0xff] }
  0xf6   :  { %1321 = vmatpush.bf16.msra.mxu0 %v5794_v28 }
  0xf7   :  { %v589_v34 = vadd.f32 %v588_v30, %v536_v31  ;;  %v485_v38 = vadd.f32 %v484_v33, %v432_v35  ;;  %v5793_v35 = vld [vmem:[%s8034_s6 + $0x28] sm:$0xff] }
  0xf9   :  { %v620_v37 = vmax.f32 %v589_v34, 0.0 }
  0xfa   :  { %1322 = vmatpush.bf16.msra.mxu0 %v5793_v35 }
  0xfb   :  { %v637_v39 = vpack.c.bf16 %v620_v37, %v618_v16 }
  0xfc   :  { %v537_v40 = vpop.f32.mrf.mxu2  ;;  %v434_v43 = vpop.f32.mrf.mxu0 }
  0xfd   :  { %v590_v41 = vpop.f32.mrf.mxu3  ;;  %v538_v42 = vadd.f32 %v537_v40, %v485_v38  ;;  %926 = vmatmul.bf16.gmra.mxu0 %v637_v39  ;;  %v487_v44 = vpop.f32.mrf.mxu1  ;;  %v435_v45 = vadd.f32 %v6648_v0, %v434_v43 }
  0xff   :  { %v591_v46 = vadd.f32 %v590_v41, %v538_v42  ;;  %v488_v48 = vadd.f32 %v487_v44, %v435_v45  ;;  %v5792_v41 = vld [vmem:[%s8034_s6 + $0x20] sm:$0xff]  ;;  %v5802_v42 = vld [vmem:[%s8034_s6 + $0x70] sm:$0xff] }
 0x100   :  { %1323 = vmatpush.bf16.msra.mxu0 %v5792_v41 }
 0x101   :  { %v621_v47 = vmax.f32 %v591_v46, 0.0 }
 0x103   :  { %v638_v49 = vpack.c.bf16 %v621_v47, %v619_v26 }
 0x104   :  { %v540_v50 = vpop.f32.mrf.mxu2  ;;  %v436_v53 = vpop.f32.mrf.mxu0 }
 0x105   :  { %v593_v51 = vpop.f32.mrf.mxu3  ;;  %v541_v52 = vadd.f32 %v540_v50, %v488_v48  ;;  %959 = vmatmul.bf16.gmra.mxu1 %v638_v49  ;;  %v489_v54 = vpop.f32.mrf.mxu1  ;;  %v437_v56 = vadd.f32 %v6648_v0, %v436_v53  ;;  %v5801_v53 = vld [vmem:[%s8034_s6 + $0x68] sm:$0xff] }
 0x107   :  { %v594_v55 = vadd.f32 %v593_v51, %v541_v52  ;;  %v490_v58 = vadd.f32 %v489_v54, %v437_v56  ;;  %v5791_v52 = vld [vmem:[%s8034_s6 + $0x18] sm:$0xff] }
 0x108   :  { %1324 = vmatpush.bf16.msra.mxu0 %v5791_v52 }
 0x109   :  { %v622_v57 = vmax.f32 %v594_v55, 0.0 }
 0x10b   :  { %v639_v59 = vpack.c.bf16 %v622_v57, %v620_v37  ;;  %v5803_v37 = vld [vmem:[%s8034_s6 + $0x78] sm:$0xff] }
 0x10c   :  { %v542_v60 = vpop.f32.mrf.mxu2  ;;  %v439_v63 = vpop.f32.mrf.mxu0  ;;  %1343 = vmatpush.bf16.msra.mxu1 %v5803_v37 }
 0x10d   :  { %v595_v61 = vpop.f32.mrf.mxu3  ;;  %v543_v62 = vadd.f32 %v542_v60, %v490_v58  ;;  %992 = vmatmul.bf16.gmra.mxu2 %v639_v59  ;;  %v492_v1 = vpop.f32.mrf.mxu1  ;;  %v440_v2 = vadd.f32 %v6648_v0, %v439_v63 }
 0x10f   :  { %v596_v3 = vadd.f32 %v595_v61, %v543_v62  ;;  %v493_v5 = vadd.f32 %v492_v1, %v440_v2  ;;  %v5789_v2 = vld [vmem:[%s8034_s6 + $0x8] sm:$0xff] }
 0x110   :  { %1344 = vmatpush.bf16.msra.mxu1 %v5802_v42 }
 0x111   :  { %v623_v4 = vmax.f32 %v596_v3, 0.0  ;;  %v5799_v3 = vld [vmem:[%s8034_s6 + $0x58] sm:$0xff] }
 0x113   :  { %v640_v6 = vpack.c.bf16 %v623_v4, %v621_v47 }
 0x114   :  { %v545_v7 = vpop.f32.mrf.mxu2  ;;  %v441_v11 = vpop.f32.mrf.mxu0  ;;  %1345 = vmatpush.bf16.msra.mxu1 %v5801_v53 }
 0x115   :  { %v598_v8 = vpop.f32.mrf.mxu3  ;;  %v546_v10 = vadd.f32 %v545_v7, %v493_v5  ;;  %1025 = vmatmul.bf16.gmra.mxu3 %v640_v6  ;;  %v494_v12 = vpop.f32.mrf.mxu1  ;;  %v442_v14 = vadd.f32 %v6648_v0, %v441_v11  ;;  %v5788_v6 = vld [vmem:[%s8034_s6] sm:$0xff]  ;;  %v5798_v7 = vld [vmem:[%s8034_s6 + $0x50] sm:$0xff] }
 0x117   :  { %v599_v13 = vadd.f32 %v598_v8, %v546_v10  ;;  %v495_v17 = vadd.f32 %v494_v12, %v442_v14  ;;  %v5797_v12 = vld [vmem:[%s8034_s6 + $0x48] sm:$0xff]  ;;  %v5796_v14 = vld [vmem:[%s8034_s6 + $0x40] sm:$0xff] }
 0x119   :  { %v624_v15 = vmax.f32 %v599_v13, 0.0  ;;  %v5811_v13 = vld [vmem:[%s8034_s6 + $0xb8] sm:$0xff] }
 0x11a   :  { %1366 = vmatpush.bf16.msra.mxu2 %v5811_v13 }
 0x11b   :  { %v641_v16 = vpack.c.bf16 %v624_v15, %v622_v57  ;;  %v5790_v57 = vld [vmem:[%s8034_s6 + $0x10] sm:$0xff] }
 0x11c   :  { %v547_v18 = vpop.f32.mrf.mxu2  ;;  %v444_v21 = vpop.f32.mrf.mxu0  ;;  %1325 = vmatpush.bf16.msra.mxu0 %v5790_v57 }
 0x11d   :  { %v600_v19 = vpop.f32.mrf.mxu3  ;;  %v548_v20 = vadd.f32 %v547_v18, %v495_v17  ;;  %931 = vmatmul.bf16.gmra.mxu0 %v641_v16  ;;  %v497_v22 = vpop.f32.mrf.mxu1  ;;  %v445_v23 = vadd.f32 %v6648_v0, %v444_v21  ;;  %v5819_v16 = vld [vmem:[%s8034_s6 + $0xf8] sm:$0xff]  ;;  %v5809_v17 = vld [vmem:[%s8034_s6 + $0xa8] sm:$0xff]  ;;  %v5808_v18 = vld [vmem:[%s8034_s6 + $0xa0] sm:$0xff] }
 0x11e   :  { %1389 = vmatpush.bf16.msra.mxu3 %v5819_v16  ;;  %v5807_v21 = vld [vmem:[%s8034_s6 + $0x98] sm:$0xff] }
 0x11f   :  { %v601_v25 = vadd.f32 %v600_v19, %v548_v20  ;;  %v498_v27 = vadd.f32 %v497_v22, %v445_v23  ;;  %v5818_v19 = vld [vmem:[%s8034_s6 + $0xf0] sm:$0xff]  ;;  %v5817_v22 = vld [vmem:[%s8034_s6 + $0xe8] sm:$0xff]  ;;  %v6753_v23 = vld [vmem:[%s8035_s30] ss:$0 sm:$0xff] }
 0x120   :  { %1326 = vmatpush.bf16.msra.mxu0 %v5789_v2 }
 0x121   :  { %v625_v26 = vmax.f32 %v601_v25, 0.0  ;;  %v5806_v25 = vld [vmem:[%s8034_s6 + $0x90] sm:$0xff] }
 0x122   :  { %1390 = vmatpush.bf16.msra.mxu3 %v5818_v19 }
 0x123   :  { %v642_v29 = vpack.c.bf16 %v625_v26, %v623_v4 }
 0x124   :  { %v550_v30 = vpop.f32.mrf.mxu2  ;;  %v446_v33 = vpop.f32.mrf.mxu0  ;;  %1327 = vmatpush.bf16.msra.mxu0 %v5788_v6 }
 0x125   :  { %v603_v31 = vpop.f32.mrf.mxu3  ;;  %v551_v32 = vadd.f32 %v550_v30, %v498_v27  ;;  %964 = vmatmul.bf16.gmra.mxu1 %v642_v29  ;;  %v499_v34 = vpop.f32.mrf.mxu1  ;;  %v447_v39 = vadd.f32 %v6648_v0, %v446_v33  ;;  %v5805_v30 = vld [vmem:[%s8034_s6 + $0x88] sm:$0xff] }
 0x126   :  { %1391 = vmatpush.bf16.msra.mxu3 %v5817_v22 }
 0x127   :  { %v604_v38 = vadd.f32 %v603_v31, %v551_v32  ;;  %v500_v45 = vadd.f32 %v499_v34, %v447_v39  ;;  %v5815_v31 = vld [vmem:[%s8034_s6 + $0xd8] sm:$0xff]  ;;  %v5814_v39 = vld [vmem:[%s8034_s6 + $0xd0] sm:$0xff] }
 0x129   :  { %v626_v40 = vmax.f32 %v604_v38, 0.0  ;;  %v5804_v38 = vld [vmem:[%s8034_s6 + $0x80] sm:$0xff] }
 0x12b   :  { %v643_v43 = vpack.c.bf16 %v626_v40, %v624_v15  ;;  %v645_v44 = vpack.c.bf16 %v626_v40, %v626_v40  ;;  %v5810_v15 = vld [vmem:[%s8034_s6 + $0xb0] sm:$0xff] }
 0x12c   :  { %v552_v46 = vpop.f32.mrf.mxu2  ;;  %v449_v49 = vpop.f32.mrf.mxu0  ;;  %1367 = vmatpush.bf16.msra.mxu2 %v5810_v15 }
 0x12d   :  { %v605_v47 = vpop.f32.mrf.mxu3  ;;  %v553_v48 = vadd.f32 %v552_v46, %v500_v45  ;;  %936 = vmatmul.bf16.gmra.mxu0 %v645_v44  ;;  %997 = vmatmul.bf16.gmra.mxu2 %v643_v43  ;;  %v502_v50 = vpop.f32.mrf.mxu1  ;;  %v450_v51 = vadd.f32 %v6648_v0, %v449_v49  ;;  %v5800_v0 = vld [vmem:[%s8034_s6 + $0x60] sm:$0xff]  ;;  %v5813_v45 = vld [vmem:[%s8034_s6 + $0xc8] sm:$0xff] }
 0x12e   :  { %1346 = vmatpush.bf16.msra.mxu1 %v5800_v0  ;;  %v5812_v49 = vld [vmem:[%s8034_s6 + $0xc0] sm:$0xff] }
 0x12f   :  { %v606_v54 = vadd.f32 %v605_v47, %v553_v48  ;;  %v503_v56 = vadd.f32 %v502_v50, %v450_v51 }
 0x130   :  { %1368 = vmatpush.bf16.msra.mxu2 %v5809_v17 }
 0x131   :  { %v627_v55 = vmax.f32 %v606_v54, 0.0 }
 0x132   :  { %1347 = vmatpush.bf16.msra.mxu1 %v5799_v3 }
 0x133   :  { %v646_v58 = vpack.c.bf16 %v627_v55, %v627_v55  ;;  %v644_v59 = vpack.c.bf16 %v627_v55, %v625_v26  ;;  %v5816_v26 = vld [vmem:[%s8034_s6 + $0xe0] sm:$0xff] }
 0x134   :  { %v555_v60 = vpop.f32.mrf.mxu2  ;;  %v451_v63 = vpop.f32.mrf.mxu0  ;;  %1369 = vmatpush.bf16.msra.mxu2 %v5808_v18  ;;  %1392 = vmatpush.bf16.msra.mxu3 %v5816_v26 }
 0x135   :  { %v608_v61 = vpop.f32.mrf.mxu3  ;;  %v556_v62 = vadd.f32 %v555_v60, %v503_v56  ;;  %969 = vmatmul.bf16.gmra.mxu1 %v646_v58  ;;  %1030 = vmatmul.bf16.gmra.mxu3 %v644_v59  ;;  %v504_v1 = vpop.f32.mrf.mxu1 }
 0x136   :  { %1348 = vmatpush.bf16.msra.mxu1 %v5798_v7 }
 0x137   :  { %v609_v4 = vadd.f32 %v608_v61, %v556_v62 }
 0x138   :  { %1370 = vmatpush.bf16.msra.mxu2 %v5807_v21  ;;  %1393 = vmatpush.bf16.msra.mxu3 %v5815_v31 }
 0x139   :  { %v628_v5 = vmax.f32 %v609_v4, 0.0 }
 0x13a   :  { %1349 = vmatpush.bf16.msra.mxu1 %v5797_v12 }
 0x13b   :  { %v647_v8 = vpack.c.bf16 %v628_v5, %v628_v5 }
 0x13c   :  { %v557_v10 = vpop.f32.mrf.mxu2  ;;  %v917_v20 = vpop.f32.mrf.mxu0  ;;  %1371 = vmatpush.bf16.msra.mxu2 %v5806_v25  ;;  %1394 = vmatpush.bf16.msra.mxu3 %v5814_v39 }
 0x13d   :  { %v610_v11 = vpop.f32.mrf.mxu3  ;;  %1002 = vmatmul.bf16.gmra.mxu2 %v647_v8  ;;  %v918_v28 = vadd.f32 %v6753_v23, %v917_v20 }
 0x13e   :  { %1350 = vmatpush.bf16.msra.mxu1 %v5796_v14 }
 0x140   :  { %1372 = vmatpush.bf16.msra.mxu2 %v5805_v30  ;;  %1395 = vmatpush.bf16.msra.mxu3 %v5813_v45 }
 0x142   :  { %v950_v24 = vpop.f32.mrf.mxu1 }
 0x143   :  { %v951_v29 = vadd.f32 %v950_v24, %v918_v28 }
 0x144   :  { %v919_v33 = vpop.f32.mrf.mxu0  ;;  %1373 = vmatpush.bf16.msra.mxu2 %v5804_v38  ;;  %1396 = vmatpush.bf16.msra.mxu3 %v5812_v49 }
 0x145   :  { %1035 = vmatmul.bf16.gmra.mxu3 %v6238_v9  ;;  %v920_v40 = vadd.f32 %v6753_v23, %v919_v33 }
 0x14a   :  { %v952_v37 = vpop.f32.mrf.mxu1 }
 0x14b   :  { %v953_v43 = vadd.f32 %v952_v37, %v920_v40 }
 0x150   :  { %v983_v27 = vpop.f32.mrf.mxu2 }
 0x151   :  { %v984_v32 = vadd.f32 %v983_v27, %v951_v29 }
 0x158   :  { %v1016_v34 = vpop.f32.mrf.mxu3  ;;  %v985_v42 = vpop.f32.mrf.mxu2 }
 0x159   :  { %v1017_v35 = vadd.f32 %v1016_v34, %v984_v32  ;;  %v986_v46 = vadd.f32 %v985_v42, %v953_v43 }
 0x15a   :  { %v922_v52 = vpop.f32.mrf.mxu0 }
 0x15b   :  { %v1040_v41 = vmax.f32 %v1017_v35, 0.0  ;;  %v923_v55 = vadd.f32 %v6753_v23, %v922_v52 }
 0x15d   :  { %v1049_v44 = vpack.c.bf16 %v1040_v41, %v6237_v36 }
 0x15f   :  { %1328 = vmatmul.bf16.vlgmr.msra.gmra.mxu0 %v1049_v44 }
 0x160   :  { %v1018_v47 = vpop.f32.mrf.mxu3 }
 0x161   :  { %v1019_v48 = vadd.f32 %v1018_v47, %v986_v46 }
 0x162   :  { %v955_v53 = vpop.f32.mrf.mxu1  ;;  %v924_v0 = vpop.f32.mrf.mxu0 }
 0x163   :  { %v1041_v50 = vmax.f32 %v1019_v48, 0.0  ;;  %v956_v56 = vadd.f32 %v955_v53, %v923_v55  ;;  %v925_v61 = vadd.f32 %v6753_v23, %v924_v0 }
 0x165   :  { %v1050_v51 = vpack.c.bf16 %v1041_v50, %v6237_v36 }
 0x167   :  { %1351 = vmatmul.bf16.vlgmr.msra.gmra.mxu1 %v1050_v51 }
 0x16a   :  { %v957_v60 = vpop.f32.mrf.mxu1 }
 0x16b   :  { %v958_v1 = vadd.f32 %v957_v60, %v925_v61 }
 0x170   :  { %v988_v54 = vpop.f32.mrf.mxu2 }
 0x171   :  { %v989_v57 = vadd.f32 %v988_v54, %v956_v56 }
 0x178   :  { %v1021_v58 = vpop.f32.mrf.mxu3  ;;  %v990_v63 = vpop.f32.mrf.mxu2 }
 0x179   :  { %v1022_v59 = vadd.f32 %v1021_v58, %v989_v57  ;;  %v991_v3 = vadd.f32 %v990_v63, %v958_v1 }
 0x17a   :  { %v927_v8 = vpop.f32.mrf.mxu0 }
 0x17b   :  { %v1042_v62 = vmax.f32 %v1022_v59, 0.0  ;;  %v928_v13 = vadd.f32 %v6753_v23, %v927_v8  ;;  %v5823_v8 = vld [vmem:[%s8036_s5 + $0x18] sm:$0xff] }
 0x17d   :  { %v1051_v2 = vpack.c.bf16 %v1042_v62, %v1040_v41 }
 0x17f   :  { %1374 = vmatmul.bf16.vlgmr.msra.gmra.mxu2 %v1051_v2  ;;  %v5827_v2 = vld [vmem:[%s8036_s5 + $0x38] sm:$0xff] }
 0x180   :  { %v1023_v4 = vpop.f32.mrf.mxu3  ;;  %1684 = vmatpush.bf16.msrb.mxu0 %v5827_v2 }
 0x181   :  { %v1024_v5 = vadd.f32 %v1023_v4, %v991_v3  ;;  %v5826_v3 = vld [vmem:[%s8036_s5 + $0x30] sm:$0xff] }
 0x182   :  { %v960_v10 = vpop.f32.mrf.mxu1  ;;  %v929_v11 = vpop.f32.mrf.mxu0 }
 0x183   :  { %v1043_v6 = vmax.f32 %v1024_v5, 0.0  ;;  %v961_v14 = vadd.f32 %v960_v10, %v928_v13  ;;  %v930_v20 = vadd.f32 %v6753_v23, %v929_v11  ;;  %v5834_v5 = vld [vmem:[%s8036_s5 + $0x70] sm:$0xff]  ;;  %v5833_v10 = vld [vmem:[%s8036_s5 + $0x68] sm:$0xff] }
 0x184   :  { %1685 = vmatpush.bf16.msrb.mxu0 %v5826_v3  ;;  %v5822_v11 = vld [vmem:[%s8036_s5 + $0x10] sm:$0xff]  ;;  %v5821_v13 = vld [vmem:[%s8036_s5 + $0x8] sm:$0xff] }
 0x185   :  { %v1052_v7 = vpack.c.bf16 %v1043_v6, %v1041_v50 }
 0x187   :  { %1397 = vmatmul.bf16.vlgmr.msra.gmra.mxu3 %v1052_v7  ;;  %v5824_v7 = vld [vmem:[%s8036_s5 + $0x20] sm:$0xff] }
 0x18a   :  { %v962_v18 = vpop.f32.mrf.mxu1 }
 0x18b   :  { %v963_v24 = vadd.f32 %v962_v18, %v930_v20  ;;  %v5828_v18 = vld [vmem:[%s8036_s5 + $0x40] sm:$0xff] }
 0x18c   :  { %v6842_v20 = vld [vmem:[%s8037_s28] ss:$0 sm:$0xff]  ;;  %s6239_s28 = smov [#allocation2]  }
 0x18d   :  { %s4383_s29 = sshll.u32 %s6239_s28, 4  ;;  %s4384_s29 = int_to_ptr.vmem [resolvable:$true] %s4383_s29 }
 0x190   :  { %v993_v12 = vpop.f32.mrf.mxu2 }
 0x191   :  { %v994_v15 = vadd.f32 %v993_v12, %v961_v14  ;;  %v5832_v12 = vld [vmem:[%s8036_s5 + $0x60] sm:$0xff]  ;;  %v5831_v14 = vld [vmem:[%s8036_s5 + $0x58] sm:$0xff] }
 0x198   :  { %v1026_v16 = vpop.f32.mrf.mxu3  ;;  %v995_v22 = vpop.f32.mrf.mxu2 }
 0x199   :  { %v1027_v17 = vadd.f32 %v1026_v16, %v994_v15  ;;  %v996_v26 = vadd.f32 %v995_v22, %v963_v24  ;;  %v5820_v15 = vld [vmem:[%s8036_s5] sm:$0xff]  ;;  %v5830_v16 = vld [vmem:[%s8036_s5 + $0x50] sm:$0xff] }
 0x19a   :  { %v932_v19 = vpop.f32.mrf.mxu0 }
 0x19b   :  { %v1044_v21 = vmax.f32 %v1027_v17, 0.0  ;;  %v933_v39 = vadd.f32 %v6753_v23, %v932_v19  ;;  %v5829_v17 = vld [vmem:[%s8036_s5 + $0x48] sm:$0xff] }
 0x19d   :  { %v1053_v25 = vpack.c.bf16 %v1044_v21, %v1042_v62 }
 0x19f   :  { %1333 = vmatmul.bf16.gmra.mxu0 %v1053_v25  ;;  %v5843_v25 = vld [vmem:[%s8036_s5 + $0xb8] sm:$0xff] }
 0x1a0   :  { %v1028_v27 = vpop.f32.mrf.mxu3  ;;  %1720 = vmatpush.bf16.msrb.mxu2 %v5843_v25 }
 0x1a1   :  { %v1029_v28 = vadd.f32 %v1028_v27, %v996_v26  ;;  %v5851_v26 = vld [vmem:[%s8036_s5 + $0xf8] sm:$0xff] }
 0x1a2   :  { %v934_v29 = vpop.f32.mrf.mxu0  ;;  %v965_v30 = vpop.f32.mrf.mxu1  ;;  %1738 = vmatpush.bf16.msrb.mxu3 %v5851_v26 }
 0x1a3   :  { %v1045_v31 = vmax.f32 %v1029_v28, 0.0  ;;  %v966_v40 = vadd.f32 %v965_v30, %v933_v39  ;;  %v935_v46 = vadd.f32 %v6753_v23, %v934_v29 }
 0x1a5   :  { %v1054_v32 = vpack.c.bf16 %v1045_v31, %v1043_v6  ;;  %v5825_v6 = vld [vmem:[%s8036_s5 + $0x28] sm:$0xff] }
 0x1a6   :  { %1686 = vmatpush.bf16.msrb.mxu0 %v5825_v6 }
 0x1a7   :  { %1356 = vmatmul.bf16.gmra.mxu1 %v1054_v32 }
 0x1aa   :  { %v937_v33 = vpop.f32.mrf.mxu0  ;;  %v967_v34 = vpop.f32.mrf.mxu1  ;;  %1687 = vmatpush.bf16.msrb.mxu0 %v5824_v7 }
 0x1ab   :  { %v968_v48 = vadd.f32 %v967_v34, %v935_v46  ;;  %v938_v55 = vadd.f32 %v6753_v23, %v937_v33  ;;  %v5835_v23 = vld [vmem:[%s8036_s5 + $0x78] sm:$0xff]  ;;  %v5840_v46 = vld [vmem:[%s8036_s5 + $0xa0] sm:$0xff] }
 0x1ac   :  { %1702 = vmatpush.bf16.msrb.mxu1 %v5835_v23 }
 0x1ae   :  { %1688 = vmatpush.bf16.msrb.mxu0 %v5823_v8 }
 0x1b0   :  { %v998_v35 = vpop.f32.mrf.mxu2  ;;  %1703 = vmatpush.bf16.msrb.mxu1 %v5834_v5 }
 0x1b1   :  { %v999_v41 = vadd.f32 %v998_v35, %v966_v40  ;;  %v5842_v35 = vld [vmem:[%s8036_s5 + $0xb0] sm:$0xff] }
 0x1b2   :  { %v939_v37 = vpop.f32.mrf.mxu0  ;;  %v970_v38 = vpop.f32.mrf.mxu1  ;;  %1689 = vmatpush.bf16.msrb.mxu0 %v5822_v11  ;;  %1721 = vmatpush.bf16.msrb.mxu2 %v5842_v35  ;;  %v5865_v35 = vld [vmem:[%s8002_s9 + $0x64] sm:$0xf0] }
 0x1b3   :  { %v971_v57 = vadd.f32 %v970_v38, %v938_v55  ;;  %v5850_v37 = vld [vmem:[%s8036_s5 + $0xf0] sm:$0xff] }
 0x1b4   :  { %1704 = vmatpush.bf16.msrb.mxu1 %v5833_v10  ;;  %1739 = vmatpush.bf16.msrb.mxu3 %v5850_v37  ;;  %v5046_v37 = vld [vmem:[%s8002_s9 + $0xf0] sm:$0xf] }
 0x1b6   :  { %1690 = vmatpush.bf16.msrb.mxu0 %v5821_v13 }
 0x1b8   :  { %v1000_v42 = vpop.f32.mrf.mxu2  ;;  %v1031_v43 = vpop.f32.mrf.mxu3  ;;  %1705 = vmatpush.bf16.msrb.mxu1 %v5832_v12 }
 0x1b9   :  { %v1032_v44 = vadd.f32 %v1031_v43, %v999_v41  ;;  %v1001_v51 = vadd.f32 %v1000_v42, %v968_v48  ;;  %v5841_v41 = vld [vmem:[%s8036_s5 + $0xa8] sm:$0xff] }
 0x1ba   :  { %v972_v45 = vpop.f32.mrf.mxu1  ;;  %1691 = vmatpush.bf16.msrb.mxu0 %v5820_v15  ;;  %v5849_v42 = vld [vmem:[%s8036_s5 + $0xe8] sm:$0xff]  ;;  %1722 = vmatpush.bf16.msrb.mxu2 %v5841_v41 }
 0x1bb   :  { %v1046_v47 = vmax.f32 %v1032_v44, 0.0  ;;  %1740 = vmatpush.bf16.msrb.mxu3 %v5849_v42  ;;  %v5038_v42 = vld [vmem:[%s8002_s9 + $0xe0] sm:$0xf] }
 0x1bc   :  { %1706 = vmatpush.bf16.msrb.mxu1 %v5831_v14 }
 0x1bd   :  { %v1055_v49 = vpack.c.bf16 %v1046_v47, %v1044_v21  ;;  %v1057_v50 = vpack.c.bf16 %v1046_v47, %v1046_v47  ;;  %v5848_v47 = vld [vmem:[%s8036_s5 + $0xe0] sm:$0xff] }
 0x1be   :  { %1723 = vmatpush.bf16.msrb.mxu2 %v5840_v46  ;;  %v4984_v46 = vld [vmem:[%s8002_s9 + $0x78] sm:$0xf0] }
 0x1bf   :  { %1338 = vmatmul.bf16.gmra.mxu0 %v1057_v50  ;;  %1379 = vmatmul.bf16.gmra.mxu2 %v1055_v49  ;;  %v5839_v50 = vld [vmem:[%s8036_s5 + $0x98] sm:$0xff] }
 0x1c0   :  { %v1003_v52 = vpop.f32.mrf.mxu2  ;;  %v1033_v53 = vpop.f32.mrf.mxu3  ;;  %1707 = vmatpush.bf16.msrb.mxu1 %v5830_v16  ;;  %1741 = vmatpush.bf16.msrb.mxu3 %v5848_v47 }
 0x1c1   :  { %v1034_v54 = vadd.f32 %v1033_v53, %v1001_v51  ;;  %v1004_v59 = vadd.f32 %v1003_v52, %v971_v57  ;;  %v5847_v51 = vld [vmem:[%s8036_s5 + $0xd8] sm:$0xff]  ;;  %v5838_v52 = vld [vmem:[%s8036_s5 + $0x90] sm:$0xff]  ;;  %v5845_v57 = vld [vmem:[%s8036_s5 + $0xc8] sm:$0xff] }
 0x1c2   :  { %1724 = vmatpush.bf16.msrb.mxu2 %v5839_v50  ;;  %v5846_v53 = vld [vmem:[%s8036_s5 + $0xd0] sm:$0xff]  ;;  %v5879_v50 = vld [vmem:[%s8002_s9 + $0xd4] sm:$0xf0] }
 0x1c3   :  { %v1047_v56 = vmax.f32 %v1034_v54, 0.0  ;;  %v5837_v54 = vld [vmem:[%s8036_s5 + $0x88] sm:$0xff] }
 0x1c4   :  { %1708 = vmatpush.bf16.msrb.mxu1 %v5829_v17  ;;  %1742 = vmatpush.bf16.msrb.mxu3 %v5847_v51  ;;  %v5864_v51 = vld [vmem:[%s8002_s9 + $0x64] sm:$0xf] }
 0x1c5   :  { %v1058_v0 = vpack.c.bf16 %v1047_v56, %v1047_v56  ;;  %v1056_v58 = vpack.c.bf16 %v1047_v56, %v1045_v31  ;;  %v5836_v56 = vld [vmem:[%s8036_s5 + $0x80] sm:$0xff] }
 0x1c6   :  { %1725 = vmatpush.bf16.msrb.mxu2 %v5838_v52  ;;  %v4976_v52 = vld [vmem:[%s8002_s9 + $0x68] sm:$0xf0] }
 0x1c7   :  { %1361 = vmatmul.bf16.gmra.mxu1 %v1058_v0  ;;  %1402 = vmatmul.bf16.gmra.mxu3 %v1056_v58 }
 0x1c8   :  { %v1036_v60 = vpop.f32.mrf.mxu3  ;;  %v1005_v61 = vpop.f32.mrf.mxu2  ;;  %1709 = vmatpush.bf16.msrb.mxu1 %v5828_v18  ;;  %1743 = vmatpush.bf16.msrb.mxu3 %v5846_v53 }
 0x1c9   :  { %v1037_v62 = vadd.f32 %v1036_v60, %v1004_v59  ;;  %v5844_v59 = vld [vmem:[%s8036_s5 + $0xc0] sm:$0xff] }
 0x1ca   :  { %1726 = vmatpush.bf16.msrb.mxu2 %v5837_v54  ;;  %v4958_v54 = vld [vmem:[%s8002_s9 + $0x40] sm:$0xf] }
 0x1cb   :  { %v1048_v63 = vmax.f32 %v1037_v62, 0.0 }
 0x1cc   :  { %1744 = vmatpush.bf16.msrb.mxu3 %v5845_v57  ;;  %v5862_v57 = vld [vmem:[%s8002_s9 + $0x54] sm:$0xf] }
 0x1cd   :  { %v1059_v1 = vpack.c.bf16 %v1048_v63, %v1048_v63 }
 0x1ce   :  { %1727 = vmatpush.bf16.msrb.mxu2 %v5836_v56  ;;  %v5861_v56 = vld [vmem:[%s8002_s9 + $0x44] sm:$0xf0] }
 0x1cf   :  { %1384 = vmatmul.bf16.gmra.mxu2 %v1059_v1 }
 0x1d0   :  { %v1038_v4 = vpop.f32.mrf.mxu3  ;;  %1745 = vmatpush.bf16.msrb.mxu3 %v5844_v59  ;;  %v5022_v59 = vld [vmem:[%s8002_s9 + $0xc0] sm:$0xf] }
 0x1d7   :  { %1407 = vmatmul.bf16.gmra.mxu3 %v6238_v9 }
 0x1dc   :  { %v1329_v19 = vpop.f32.mrf.mxu0 }
 0x1dd   :  { %v1330_v24 = vadd.f32 %v6842_v20, %v1329_v19 }
 0x1e4   :  { %v1352_v21 = vpop.f32.mrf.mxu1  ;;  %v1331_v29 = vpop.f32.mrf.mxu0 }
 0x1e5   :  { %v1353_v27 = vadd.f32 %v1352_v21, %v1330_v24  ;;  %v1332_v33 = vadd.f32 %v6842_v20, %v1331_v29 }
 0x1ec   :  { %v1354_v32 = vpop.f32.mrf.mxu1 }
 0x1ed   :  { %v1355_v39 = vadd.f32 %v1354_v32, %v1332_v33  ;;  %v5867_v32 = vld [vmem:[%s8002_s9 + $0x74] sm:$0xf0]  ;;  %v4974_v33 = vld [vmem:[%s8002_s9 + $0x60] sm:$0xf] }
 0x202   :  { %v1375_v22 = vpop.f32.mrf.mxu2 }
 0x203   :  { %v1376_v28 = vadd.f32 %v1375_v22, %v1353_v27 }
 0x20a   :  { %v1398_v30 = vpop.f32.mrf.mxu3  ;;  %v1377_v38 = vpop.f32.mrf.mxu2 }
 0x20b   :  { %v1399_v31 = vadd.f32 %v1398_v30, %v1376_v28  ;;  %v1378_v43 = vadd.f32 %v1377_v38, %v1355_v39  ;;  %v5883_v38 = vld [vmem:[%s8002_s9 + $0xf4] sm:$0xf0]  ;;  %v4975_v39 = vor.u32 %v5865_v35, %v4974_v33  ;;  %v5102_v35 = vld [vmem:[%s8002_s9 + $0x160] sm:$0xf] }
 0x20c   :  { %v5047_v41 = vor.u32 %v5883_v38, %v5046_v37  ;;  %v5871_v33 = vld [vmem:[%s8002_s9 + $0x94] sm:$0xf0]  ;;  %v5897_v37 = vld [vmem:[%s8002_s9 + $0x164] sm:$0xf0]  ;;  %v5856_v38 = vld [vmem:[%s8002_s9 + $0x24] sm:$0xf] }
 0x20d   :  { %v1412_v34 = vmax.f32 %v1399_v31, 0.0 }
 0x20e   :  { %2069 = vmatpush.bf16.msra.mxu1 %v5047_v41  ;;  %v5880_v41 = vld [vmem:[%s8002_s9 + $0xe4] sm:$0xf] }
 0x20f   :  { %v1417_v40 = vpack.c.bf16 %v1412_v34, %v6237_v36 }
 0x211   :  { %1692 = vmatmul.bf16.vlgmr.msrb.gmra.mxu0 %v1417_v40  ;;  %v4966_v40 = vld [vmem:[%s8002_s9 + $0x50] sm:$0xf] }
 0x212   :  { %v1400_v44 = vpop.f32.mrf.mxu3 }
 0x213   :  { %v1401_v45 = vadd.f32 %v1400_v44, %v1378_v43  ;;  %v5881_v43 = vld [vmem:[%s8002_s9 + $0xe4] sm:$0xf0]  ;;  %v5863_v44 = vld [vmem:[%s8002_s9 + $0x54] sm:$0xf0] }
 0x214   :  { %v5039_v47 = vor.u32 %v5881_v43, %v5038_v42  ;;  %v4967_v53 = vor.u32 %v5863_v44, %v4966_v40  ;;  %v4944_v40 = vld [vmem:[%s8002_s9 + $0x28] sm:$0xf0] }
 0x215   :  { %v1413_v48 = vmax.f32 %v1401_v45, 0.0  ;;  %v5866_v45 = vld [vmem:[%s8002_s9 + $0x74] sm:$0xf]  ;;  %v5040_v42 = vld [vmem:[%s8002_s9 + $0xe8] sm:$0xf0]  ;;  %v4947_v43 = vor.u32 %v5856_v38, %v4944_v40 }
 0x216   :  { %2070 = vmatpush.bf16.msra.mxu1 %v5039_v47  ;;  %v5043_v44 = vor.u32 %v5880_v41, %v5040_v42  ;;  %v5094_v47 = vld [vmem:[%s8002_s9 + $0x150] sm:$0xf]  ;;  %v5054_v40 = vld [vmem:[%s8002_s9 + $0x100] sm:$0xf]  ;;  %v5885_v41 = vld [vmem:[%s8002_s9 + $0x104] sm:$0xf0] }
 0x217   :  { %v1418_v49 = vpack.c.bf16 %v1413_v48, %v6237_v36  ;;  %v5868_v42 = vld [vmem:[%s8002_s9 + $0x84] sm:$0xf] }
 0x219   :  { %1710 = vmatmul.bf16.vlgmr.msrb.gmra.mxu1 %v1418_v49  ;;  %v5030_v49 = vld [vmem:[%s8002_s9 + $0xd0] sm:$0xf] }
 0x21c   :  { %v1334_v55 = vpop.f32.mrf.mxu0 }
 0x21d   :  { %v1335_v2 = vadd.f32 %v6842_v20, %v1334_v55  ;;  %v4979_v55 = vor.u32 %v5864_v51, %v4976_v52  ;;  %v5854_v51 = vld [vmem:[%s8002_s9 + $0x14] sm:$0xf]  ;;  %v4936_v52 = vld [vmem:[%s8002_s9 + $0x18] sm:$0xf0] }
 0x224   :  { %v1357_v0 = vpop.f32.mrf.mxu1  ;;  %v1336_v58 = vpop.f32.mrf.mxu0 }
 0x225   :  { %v1358_v23 = vadd.f32 %v1357_v0, %v1335_v2  ;;  %v1337_v8 = vadd.f32 %v6842_v20, %v1336_v58  ;;  %v4968_v0 = vld [vmem:[%s8002_s9 + $0x58] sm:$0xf0]  ;;  %v5031_v58 = vor.u32 %v5879_v50, %v5030_v49  ;;  %v5895_v49 = vld [vmem:[%s8002_s9 + $0x154] sm:$0xf0] }
 0x226   :  { %v5095_v50 = vor.u32 %v5895_v49, %v5094_v47  ;;  %v5888_v47 = vld [vmem:[%s8002_s9 + $0x124] sm:$0xf] }
 0x227   :  { %2071 = vmatpush.bf16.msra.mxu1 %v5031_v58 }
 0x22c   :  { %v1359_v60 = vpop.f32.mrf.mxu1 }
 0x22d   :  { %v1360_v11 = vadd.f32 %v1359_v60, %v1337_v8  ;;  %v5877_v60 = vld [vmem:[%s8002_s9 + $0xc4] sm:$0xf0]  ;;  %v5014_v8 = vld [vmem:[%s8002_s9 + $0xb0] sm:$0xf] }
 0x22e   :  { %v5023_v2 = vor.u32 %v5877_v60, %v5022_v59  ;;  %v5086_v60 = vld [vmem:[%s8002_s9 + $0x140] sm:$0xf] }
 0x230   :  { %2072 = vmatpush.bf16.msra.mxu1 %v5023_v2  ;;  %v5876_v2 = vld [vmem:[%s8002_s9 + $0xc4] sm:$0xf] }
 0x23c   :  { %v1339_v61 = vpop.f32.mrf.mxu0 }
 0x23d   :  { %v1340_v18 = vadd.f32 %v6842_v20, %v1339_v61  ;;  %v4982_v20 = vld [vmem:[%s8002_s9 + $0x70] sm:$0xf]  ;;  %v4959_v61 = vor.u32 %v5861_v56, %v4958_v54  ;;  %v4939_v54 = vor.u32 %v5854_v51, %v4936_v52  ;;  %v5898_v56 = vld [vmem:[%s8002_s9 + $0x174] sm:$0xf]  ;;  %v5064_v52 = vld [vmem:[%s8002_s9 + $0x118] sm:$0xf0] }
 0x23e   :  { %v5886_v51 = vld [vmem:[%s8002_s9 + $0x114] sm:$0xf] }
 0x242   :  { %v1380_v62 = vpop.f32.mrf.mxu2 }
 0x243   :  { %v1381_v3 = vadd.f32 %v1380_v62, %v1358_v23  ;;  %v4971_v62 = vor.u32 %v5862_v57, %v4968_v0  ;;  %v5112_v57 = vld [vmem:[%s8002_s9 + $0x178] sm:$0xf0] }
 0x244   :  { %v1341_v63 = vpop.f32.mrf.mxu0  ;;  %v1362_v1 = vpop.f32.mrf.mxu1  ;;  %v5115_v58 = vor.u32 %v5898_v56, %v5112_v57  ;;  %v5884_v56 = vld [vmem:[%s8002_s9 + $0x104] sm:$0xf]  ;;  %v5056_v57 = vld [vmem:[%s8002_s9 + $0x108] sm:$0xf0] }
 0x245   :  { %v1363_v21 = vadd.f32 %v1362_v1, %v1340_v18  ;;  %v4950_v63 = vld [vmem:[%s8002_s9 + $0x30] sm:$0xf]  ;;  %v5859_v1 = vld [vmem:[%s8002_s9 + $0x34] sm:$0xf0]  ;;  %v5006_v18 = vld [vmem:[%s8002_s9 + $0xa0] sm:$0xf] }
 0x246   :  { %v4951_v23 = vor.u32 %v5859_v1, %v4950_v63  ;;  %v4928_v1 = vld [vmem:[%s8002_s9 + $0x8] sm:$0xf0] }
 0x24a   :  { %v1382_v4 = vpop.f32.mrf.mxu2  ;;  %v1403_v5 = vpop.f32.mrf.mxu3 }
 0x24b   :  { %v1404_v6 = vadd.f32 %v1403_v5, %v1381_v3  ;;  %v1383_v14 = vadd.f32 %v1382_v4, %v1360_v11  ;;  %v4942_v3 = vld [vmem:[%s8002_s9 + $0x20] sm:$0xf]  ;;  %v5857_v4 = vld [vmem:[%s8002_s9 + $0x24] sm:$0xf0]  ;;  %v5875_v11 = vld [vmem:[%s8002_s9 + $0xb4] sm:$0xf0] }
 0x24c   :  { %v1364_v7 = vpop.f32.mrf.mxu1  ;;  %v4943_v5 = vor.u32 %v5857_v4, %v4942_v3 }
 0x24d   :  { %v1414_v10 = vmax.f32 %v1404_v6, 0.0  ;;  %v4934_v6 = vld [vmem:[%s8002_s9 + $0x10] sm:$0xf]  ;;  %v5855_v7 = vld [vmem:[%s8002_s9 + $0x14] sm:$0xf0] }
 0x24f   :  { %v1419_v12 = vpack.c.bf16 %v1414_v10, %v1412_v34  ;;  %v1421_v13 = vpack.c.bf16 %v1414_v10, %v1414_v10  ;;  %v4983_v34 = vor.u32 %v5867_v32, %v4982_v20  ;;  %v4935_v10 = vor.u32 %v5855_v7, %v4934_v6  ;;  %v4998_v32 = vld [vmem:[%s8002_s9 + $0x90] sm:$0xf]  ;;  %v5104_v6 = vld [vmem:[%s8002_s9 + $0x168] sm:$0xf0] }
 0x251   :  { %1697 = vmatmul.bf16.gmra.mxu0 %v1421_v13  ;;  %1728 = vmatmul.bf16.vlgmr.msrb.gmra.mxu2 %v1419_v12  ;;  %v5860_v12 = vld [vmem:[%s8002_s9 + $0x44] sm:$0xf]  ;;  %v4960_v13 = vld [vmem:[%s8002_s9 + $0x48] sm:$0xf0] }
 0x252   :  { %v1385_v15 = vpop.f32.mrf.mxu2  ;;  %v1405_v16 = vpop.f32.mrf.mxu3  ;;  %2056 = vmatpush.bf16.msra.mxu0 %v4983_v34  ;;  %v4999_v34 = vor.u32 %v5871_v33, %v4998_v32  ;;  %v5870_v32 = vld [vmem:[%s8002_s9 + $0x94] sm:$0xf] }
 0x253   :  { %v1406_v17 = vadd.f32 %v1405_v16, %v1383_v14  ;;  %v1386_v25 = vadd.f32 %v1385_v15, %v1363_v21  ;;  %v5015_v14 = vor.u32 %v5875_v11, %v5014_v8  ;;  %v4963_v15 = vor.u32 %v5860_v12, %v4960_v13  ;;  %v4926_v16 = vld [vmem:[%s8002_s9] sm:$0xf]  ;;  %v5873_v21 = vld [vmem:[%s8002_s9 + $0xa4] sm:$0xf0]  ;;  %v5078_v8 = vld [vmem:[%s8002_s9 + $0x130] sm:$0xf] }
 0x254   :  { %v5874_v11 = vld [vmem:[%s8002_s9 + $0xb4] sm:$0xf]  ;;  %v5016_v13 = vld [vmem:[%s8002_s9 + $0xb8] sm:$0xf0] }
 0x255   :  { %v1415_v19 = vmax.f32 %v1406_v17, 0.0  ;;  %v5853_v17 = vld [vmem:[%s8002_s9 + $0x4] sm:$0xf0]  ;;  %2073 = vmatpush.bf16.msra.mxu1 %v5015_v14  ;;  %v5894_v14 = vld [vmem:[%s8002_s9 + $0x154] sm:$0xf] }
 0x256   :  { %2057 = vmatpush.bf16.msra.mxu0 %v4975_v39  ;;  %v5103_v39 = vor.u32 %v5897_v37, %v5102_v35  ;;  %v5890_v35 = vld [vmem:[%s8002_s9 + $0x134] sm:$0xf]  ;;  %v5080_v37 = vld [vmem:[%s8002_s9 + $0x138] sm:$0xf0] }
 0x257   :  { %v1420_v22 = vpack.c.bf16 %v1415_v19, %v1413_v48  ;;  %v1422_v24 = vpack.c.bf16 %v1415_v19, %v1415_v19  ;;  %v4987_v48 = vor.u32 %v5866_v45, %v4984_v46  ;;  %v4927_v19 = vor.u32 %v5853_v17, %v4926_v16  ;;  %v4990_v45 = vld [vmem:[%s8002_s9 + $0x80] sm:$0xf]  ;;  %v5869_v46 = vld [vmem:[%s8002_s9 + $0x84] sm:$0xf0] }
 0x258   :  { %v5019_v16 = vor.u32 %v5874_v11, %v5016_v13 }
 0x259   :  { %1715 = vmatmul.bf16.gmra.mxu1 %v1422_v24  ;;  %1746 = vmatmul.bf16.vlgmr.msrb.gmra.mxu3 %v1420_v22  ;;  %v5110_v22 = vld [vmem:[%s8002_s9 + $0x170] sm:$0xf]  ;;  %v5899_v24 = vld [vmem:[%s8002_s9 + $0x174] sm:$0xf0] }
 0x25a   :  { %v1387_v26 = vpop.f32.mrf.mxu2  ;;  %v1408_v27 = vpop.f32.mrf.mxu3  ;;  %2095 = vmatpush.bf16.msra.mxu3 %v4987_v48  ;;  %2058 = vmatpush.bf16.msra.mxu0 %v4967_v53  ;;  %v4991_v48 = vor.u32 %v5869_v46, %v4990_v45  ;;  %v5878_v53 = vld [vmem:[%s8002_s9 + $0xd4] sm:$0xf]  ;;  %v5055_v45 = vor.u32 %v5885_v41, %v5054_v40  ;;  %v4992_v46 = vld [vmem:[%s8002_s9 + $0x88] sm:$0xf0]  ;;  %v5920_v40 = vld [vmem:[%s8004_s11 + $0xa0] sm:$0xf0] }
 0x25b   :  { %v1409_v28 = vadd.f32 %v1408_v27, %v1386_v25  ;;  %v5007_v25 = vor.u32 %v5873_v21, %v5006_v18  ;;  %v5111_v26 = vor.u32 %v5899_v24, %v5110_v22  ;;  %v5858_v27 = vld [vmem:[%s8002_s9 + $0x34] sm:$0xf]  ;;  %v5889_v21 = vld [vmem:[%s8002_s9 + $0x124] sm:$0xf0]  ;;  %v5872_v22 = vld [vmem:[%s8002_s9 + $0xa4] sm:$0xf]  ;;  %v4995_v49 = vor.u32 %v5868_v42, %v4992_v46 }
 0x25d   :  { %v1416_v29 = vmax.f32 %v1409_v28, 0.0  ;;  %v4952_v28 = vld [vmem:[%s8002_s9 + $0x38] sm:$0xf0]  ;;  %2082 = vmatpush.bf16.msra.mxu2 %v5111_v26  ;;  %2074 = vmatpush.bf16.msra.mxu1 %v5007_v25  ;;  %v5008_v26 = vld [vmem:[%s8002_s9 + $0xa8] sm:$0xf0] }
 0x25e   :  { %2096 = vmatpush.bf16.msra.mxu3 %v4979_v55  ;;  %2059 = vmatpush.bf16.msra.mxu0 %v4959_v61  ;;  %v5032_v55 = vld [vmem:[%s8002_s9 + $0xd8] sm:$0xf0]  ;;  %v5893_v61 = vld [vmem:[%s8002_s9 + $0x144] sm:$0xf0] }
 0x25f   :  { %v1423_v30 = vpack.c.bf16 %v1416_v29, %v1416_v29  ;;  %v5882_v29 = vld [vmem:[%s8002_s9 + $0xf4] sm:$0xf]  ;;  %v5035_v0 = vor.u32 %v5878_v53, %v5032_v55  ;;  %v5087_v63 = vor.u32 %v5893_v61, %v5086_v60  ;;  %v5067_v53 = vor.u32 %v5886_v51, %v5064_v52  ;;  %v5166_v52 = vld [vmem:[%s8004_s11 + $0x60] sm:$0xf] }
 0x260   :  { %v5059_v60 = vor.u32 %v5884_v56, %v5056_v57  ;;  %v5168_v56 = vld [vmem:[%s8004_s11 + $0x6c] sm:$0xf0]  ;;  %v5174_v57 = vld [vmem:[%s8004_s11 + $0x68] sm:$0xf] }
 0x261   :  { %1733 = vmatmul.bf16.gmra.mxu2 %v1423_v30  ;;  %v4955_v30 = vor.u32 %v5858_v27, %v4952_v28  ;;  %2075 = vmatpush.bf16.msra.mxu1 %v4999_v34  ;;  %v5892_v27 = vld [vmem:[%s8002_s9 + $0x144] sm:$0xf]  ;;  %v5088_v28 = vld [vmem:[%s8002_s9 + $0x148] sm:$0xf0]  ;;  %v5000_v34 = vld [vmem:[%s8002_s9 + $0x98] sm:$0xf0] }
 0x262   :  { %v1410_v31 = vpop.f32.mrf.mxu3  ;;  %2097 = vmatpush.bf16.msra.mxu3 %v4971_v62  ;;  %2060 = vmatpush.bf16.msra.mxu0 %v4951_v23  ;;  %v5852_v62 = vld [vmem:[%s8002_s9 + $0x4] sm:$0xf]  ;;  %v5024_v23 = vld [vmem:[%s8002_s9 + $0xc8] sm:$0xf0]  ;;  %v5003_v38 = vor.u32 %v5870_v32, %v5000_v34  ;;  %v5919_v34 = vld [vmem:[%s8004_s11 + $0x98] sm:$0xf0] }
 0x263   :  { %v5048_v31 = vld [vmem:[%s8002_s9 + $0xf8] sm:$0xf0]  ;;  %2083 = vmatpush.bf16.msra.mxu2 %v5103_v39  ;;  %v4931_v3 = vor.u32 %v5852_v62, %v4928_v1  ;;  %v5027_v4 = vor.u32 %v5876_v2, %v5024_v23  ;;  %v5083_v39 = vor.u32 %v5890_v35, %v5080_v37  ;;  %v5202_v1 = vld [vmem:[%s8004_s11 + $0xa8] sm:$0xf]  ;;  %v5922_v2 = vld [vmem:[%s8004_s11 + $0xb0] sm:$0xf0] }
 0x264   :  { %v5051_v20 = vor.u32 %v5882_v29, %v5048_v31  ;;  %v5011_v29 = vor.u32 %v5872_v22, %v5008_v26  ;;  %v5062_v31 = vld [vmem:[%s8002_s9 + $0x110] sm:$0xf]  ;;  %v5921_v23 = vld [vmem:[%s8004_s11 + $0xac] sm:$0xf]  ;;  %v5918_v35 = vld [vmem:[%s8004_s11 + $0x94] sm:$0xf] }
 0x265   :  { %2076 = vmatpush.bf16.msra.mxu1 %v4991_v48  ;;  %v5072_v48 = vld [vmem:[%s8002_s9 + $0x128] sm:$0xf0] }
 0x266   :  { %2061 = vmatpush.bf16.msra.mxu0 %v4943_v5  ;;  %2098 = vmatpush.bf16.msra.mxu3 %v4963_v15  ;;  %v5896_v5 = vld [vmem:[%s8002_s9 + $0x164] sm:$0xf]  ;;  %v5096_v15 = vld [vmem:[%s8002_s9 + $0x158] sm:$0xf0] }
 0x267   :  { %2084 = vmatpush.bf16.msra.mxu2 %v5095_v50  ;;  %v5107_v7 = vor.u32 %v5896_v5, %v5104_v6  ;;  %v5099_v17 = vor.u32 %v5894_v14, %v5096_v15  ;;  %v5075_v50 = vor.u32 %v5888_v47, %v5072_v48  ;;  %v5203_v5 = vor.u32 %v5922_v2, %v5202_v1  ;;  %v5180_v47 = vld [vmem:[%s8004_s11 + $0x84] sm:$0xf0]  ;;  %v5186_v48 = vld [vmem:[%s8004_s11 + $0x80] sm:$0xf]  ;;  %v5156_v2 = vld [vmem:[%s8004_s11 + $0x54] sm:$0xf0] }
 0x269   :  { %1751 = vmatmul.bf16.gmra.mxu3 %v6238_v9  ;;  %2121 = vmatpush.bf16.msrb.mxu1 %v5115_v58 }
 0x26a   :  { %2062 = vmatpush.bf16.msra.mxu0 %v4935_v10  ;;  %2099 = vmatpush.bf16.msra.mxu3 %v4955_v30  ;;  %v5891_v10 = vld [vmem:[%s8002_s9 + $0x134] sm:$0xf0]  ;;  %v5091_v30 = vor.u32 %v5892_v27, %v5088_v28 }
 0x26b   :  { %2085 = vmatpush.bf16.msra.mxu2 %v5087_v63  ;;  %v5079_v12 = vor.u32 %v5891_v10, %v5078_v8  ;;  %v5210_v8 = vld [vmem:[%s8004_s11 + $0xb0] sm:$0xf]  ;;  %v5923_v10 = vld [vmem:[%s8004_s11 + $0xb8] sm:$0xf0] }
 0x26c   :  { %v5211_v14 = vor.u32 %v5923_v10, %v5210_v8  ;;  %v5144_v10 = vld [vmem:[%s8004_s11 + $0x3c] sm:$0xf0] }
 0x26d   :  { %2122 = vmatpush.bf16.msrb.mxu1 %v5107_v7 }
 0x26e   :  { %2063 = vmatpush.bf16.msra.mxu0 %v4927_v19  ;;  %2100 = vmatpush.bf16.msra.mxu3 %v4947_v43  ;;  %v5070_v19 = vld [vmem:[%s8002_s9 + $0x120] sm:$0xf] }
 0x26f   :  { %2086 = vmatpush.bf16.msra.mxu2 %v5079_v12  ;;  %v5071_v25 = vor.u32 %v5889_v21, %v5070_v19 }
 0x271   :  { %2123 = vmatpush.bf16.msrb.mxu1 %v5099_v17 }
 0x272   :  { %2108 = vmatpush.bf16.msrb.mxu0 %v5051_v20  ;;  %2101 = vmatpush.bf16.msra.mxu3 %v4939_v54  ;;  %v5887_v20 = vld [vmem:[%s8002_s9 + $0x114] sm:$0xf0]  ;;  %v6067_v54 = vld [vmem:[%s8001_s8] ss:$0 sm:$0xff] }
 0x273   :  { %2087 = vmatpush.bf16.msra.mxu2 %v5071_v25  ;;  %v5063_v33 = vor.u32 %v5887_v20, %v5062_v31 }
 0x275   :  { %2124 = vmatpush.bf16.msrb.mxu1 %v5091_v30 }
 0x276   :  { %2109 = vmatpush.bf16.msrb.mxu0 %v5043_v44  ;;  %2102 = vmatpush.bf16.msra.mxu3 %v4931_v3 }
 0x277   :  { %2088 = vmatpush.bf16.msra.mxu2 %v5063_v33  ;;  %v5190_v33 = vld [vmem:[%s8004_s11 + $0x90] sm:$0xf] }
 0x278   :  { %v5191_v37 = vor.u32 %v5919_v34, %v5190_v33 }
 0x279   :  { %2125 = vmatpush.bf16.msrb.mxu1 %v5083_v39  ;;  %v5198_v39 = vld [vmem:[%s8004_s11 + $0x98] sm:$0xf] }
 0x27a   :  { %2110 = vmatpush.bf16.msrb.mxu0 %v5035_v0  ;;  %v5199_v42 = vor.u32 %v5920_v40, %v5198_v39  ;;  %v5955_v39 = vld [vmem:[%s8006_s13 + $0xf8] sm:$0xff]  ;;  %v5930_v40 = vld [vmem:[%s8006_s13 + $0x30] sm:$0xff] }
 0x27b   :  { %2089 = vmatpush.bf16.msra.mxu2 %v5055_v45  ;;  %v5915_v45 = vld [vmem:[%s8004_s11 + $0x7c] sm:$0xf] }
 0x27d   :  { %2126 = vmatpush.bf16.msrb.mxu1 %v5075_v50  ;;  %v5183_v50 = vor.u32 %v5915_v45, %v5180_v47  ;;  %v5929_v45 = vld [vmem:[%s8006_s13 + $0x28] sm:$0xff] }
 0x27e   :  { %2111 = vmatpush.bf16.msrb.mxu0 %v5027_v4  ;;  %v5945_v47 = vld [vmem:[%s8006_s13 + $0xa8] sm:$0xff] }
 0x27f   :  { %2305 = vmatpush.bf16.msrb.mxu2 %v5203_v5 }
 0x281   :  { %2127 = vmatpush.bf16.msrb.mxu1 %v5067_v53  ;;  %v5913_v53 = vld [vmem:[%s8004_s11 + $0x68] sm:$0xf0] }
 0x282   :  { %2112 = vmatpush.bf16.msrb.mxu0 %v5019_v16 }
 0x283   :  { %2306 = vmatpush.bf16.msrb.mxu2 %v5191_v37  ;;  %v5939_v37 = vld [vmem:[%s8006_s13 + $0x78] sm:$0xff] }
 0x285   :  { %2128 = vmatpush.bf16.msrb.mxu1 %v5059_v60 }
 0x286   :  { %2113 = vmatpush.bf16.msrb.mxu0 %v5011_v29 }
 0x28a   :  { %2114 = vmatpush.bf16.msrb.mxu0 %v5003_v38  ;;  %v5192_v38 = vld [vmem:[%s8004_s11 + $0x9c] sm:$0xf0] }
 0x28b   :  { %v5195_v41 = vor.u32 %v5918_v35, %v5192_v38  ;;  %v5931_v35 = vld [vmem:[%s8006_s13 + $0x38] sm:$0xff] }
 0x28c   :  { %v5947_v38 = vld [vmem:[%s8006_s13 + $0xb8] sm:$0xff] }
 0x28e   :  { %v7080_v59 = vpop.f32.mrf.mxu0  ;;  %2115 = vmatpush.bf16.msrb.mxu0 %v4995_v49  ;;  %v5917_v49 = vld [vmem:[%s8004_s11 + $0x88] sm:$0xf0] }
 0x28f   :  { %v1694_v61 = vadd.f32 %v6067_v54, %v7080_v59  ;;  %v5204_v59 = vld [vmem:[%s8004_s11 + $0xb4] sm:$0xf0]  ;;  %v5187_v51 = vor.u32 %v5917_v49, %v5186_v48  ;;  %v5953_v48 = vld [vmem:[%s8006_s13 + $0xe8] sm:$0xff] }
 0x290   :  { %v5207_v7 = vor.u32 %v5921_v23, %v5204_v59  ;;  %v5162_v23 = vld [vmem:[%s8004_s11 + $0x50] sm:$0xf] }
 0x291   :  { %v5142_v59 = vld [vmem:[%s8004_s11 + $0x30] sm:$0xf] }
 0x292   :  { %2318 = vmatpush.bf16.msrb.mxu3 %v5207_v7  ;;  %v5906_v7 = vld [vmem:[%s8004_s11 + $0x34] sm:$0xf] }
 0x296   :  { %v1711_v18 = vpop.f32.mrf.mxu1  ;;  %v7133_v24 = vpop.f32.mrf.mxu0  ;;  %2319 = vmatpush.bf16.msrb.mxu3 %v5195_v41  ;;  %v5938_v41 = vld [vmem:[%s8006_s13 + $0x70] sm:$0xff] }
 0x297   :  { %v1712_v62 = vadd.f32 %v1711_v18, %v1694_v61  ;;  %v1696_v12 = vadd.f32 %v6067_v54, %v7133_v24  ;;  %v5154_v61 = vld [vmem:[%s8004_s11 + $0x48] sm:$0xf] }
 0x29a   :  { %2320 = vmatpush.bf16.msrb.mxu3 %v5183_v50 }
 0x29e   :  { %v1713_v43 = vpop.f32.mrf.mxu1 }
 0x29f   :  { %v1714_v15 = vadd.f32 %v1713_v43, %v1696_v12  ;;  %v5178_v43 = vld [vmem:[%s8004_s11 + $0x78] sm:$0xf]  ;;  %v5908_v12 = vld [vmem:[%s8004_s11 + $0x40] sm:$0xf0] }
 0x2ce   :  { %v1698_v44 = vpop.f32.mrf.mxu0 }
 0x2cf   :  { %v1699_v22 = vadd.f32 %v6067_v54, %v1698_v44  ;;  %v5916_v44 = vld [vmem:[%s8004_s11 + $0x80] sm:$0xf0] }
 0x2d0   :  { %v5179_v46 = vor.u32 %v5916_v44, %v5178_v43  ;;  %v5912_v54 = vld [vmem:[%s8004_s11 + $0x64] sm:$0xf]  ;;  %v5954_v43 = vld [vmem:[%s8006_s13 + $0xf0] sm:$0xff] }
 0x2d2   :  { %2307 = vmatpush.bf16.msrb.mxu2 %v5179_v46  ;;  %v5937_v46 = vld [vmem:[%s8006_s13 + $0x68] sm:$0xff] }
 0x2d4   :  { %v1729_v55 = vpop.f32.mrf.mxu2 }
 0x2d5   :  { %v1730_v63 = vadd.f32 %v1729_v55, %v1712_v62  ;;  %v5167_v55 = vor.u32 %v5913_v53, %v5166_v52  ;;  %v5910_v62 = vld [vmem:[%s8004_s11 + $0x50] sm:$0xf0]  ;;  %v5936_v52 = vld [vmem:[%s8006_s13 + $0x60] sm:$0xff] }
 0x2d6   :  { %v1700_v0 = vpop.f32.mrf.mxu0  ;;  %v1716_v58 = vpop.f32.mrf.mxu1  ;;  %v5155_v1 = vor.u32 %v5910_v62, %v5154_v61  ;;  %v5944_v53 = vld [vmem:[%s8006_s13 + $0xa0] sm:$0xff]  ;;  %v5951_v61 = vld [vmem:[%s8006_s13 + $0xd8] sm:$0xff] }
 0x2d7   :  { %v1717_v26 = vadd.f32 %v1716_v58, %v1699_v22  ;;  %v5914_v0 = vld [vmem:[%s8004_s11 + $0x70] sm:$0xf0]  ;;  %v5171_v58 = vor.u32 %v5912_v54, %v5168_v56  ;;  %2308 = vmatpush.bf16.msrb.mxu2 %v5167_v55  ;;  %v5905_v22 = vld [vmem:[%s8004_s11 + $0x28] sm:$0xf0]  ;;  %v5952_v54 = vld [vmem:[%s8006_s13 + $0xe0] sm:$0xff] }
 0x2d8   :  { %v5175_v60 = vor.u32 %v5914_v0, %v5174_v57  ;;  %v1810_v55 = vld [vmem:[%s8003_s10] sm:$0x3]  ;;  %v5927_v57 = vld [vmem:[%s8006_s13 + $0x18] sm:$0xff] }
 0x2d9   :  { %2321 = vmatpush.bf16.msrb.mxu3 %v5171_v58  ;;  %v5935_v0 = vld [vmem:[%s8006_s13 + $0x58] sm:$0xff]  ;;  %v1812_v58 = vperm.slane %v1810_v55, 0 }
 0x2db   :  { %2309 = vmatpush.bf16.msrb.mxu2 %v5155_v1  ;;  %v1813_v1 = vperm.slane %v1810_v55, 1 }
 0x2dc   :  { %v1731_v3 = vpop.f32.mrf.mxu2  ;;  %v1747_v4 = vpop.f32.mrf.mxu3 }
 0x2dd   :  { %v1748_v6 = vadd.f32 %v1747_v4, %v1730_v63  ;;  %v1732_v17 = vadd.f32 %v1731_v3, %v1714_v15  ;;  %v5909_v63 = vld [vmem:[%s8004_s11 + $0x4c] sm:$0xf]  ;;  %v5911_v3 = vld [vmem:[%s8004_s11 + $0x58] sm:$0xf0]  ;;  %v5130_v15 = vld [vmem:[%s8004_s11 + $0x18] sm:$0xf] }
 0x2de   :  { %v1718_v11 = vpop.f32.mrf.mxu1  ;;  %v5159_v4 = vor.u32 %v5909_v63, %v5156_v2  ;;  %v5163_v5 = vor.u32 %v5911_v3, %v5162_v23 }
 0x2df   :  { %v1756_v13 = vmax.f32 %v1748_v6, 0.0  ;;  %v5907_v6 = vld [vmem:[%s8004_s11 + $0x38] sm:$0xf0]  ;;  %v5150_v11 = vld [vmem:[%s8004_s11 + $0x38] sm:$0xf] }
 0x2e0   :  { %2322 = vmatpush.bf16.msrb.mxu3 %v5159_v4  ;;  %v5143_v8 = vor.u32 %v5907_v6, %v5142_v59 }
 0x2e1   :  { %v1759_v16 = vpack.c.bf16 %v1756_v13, %v1756_v13  ;;  %v5147_v13 = vor.u32 %v5906_v7, %v5144_v10 }
 0x2e2   :  { %2310 = vmatpush.bf16.msrb.mxu2 %v5143_v8 }
 0x2e3   :  { %2064 = vmatmul.bf16.vlgmr.msra.gmra.mxu0 %v1759_v16  ;;  %2103 = vmatmul.bf16.vlgmr.msra.gmra.mxu3 %v1759_v16  ;;  %v5904_v16 = vld [vmem:[%s8004_s11 + $0x20] sm:$0xf0] }
 0x2e4   :  { %v1734_v18 = vpop.f32.mrf.mxu2  ;;  %v1749_v19 = vpop.f32.mrf.mxu3  ;;  %2331 = vmatpush.bf16.msra.mxu0 %v5211_v14  ;;  %v5151_v14 = vor.u32 %v5908_v12, %v5150_v11  ;;  %2323 = vmatpush.bf16.msrb.mxu3 %v5147_v13  ;;  %v5926_v13 = vld [vmem:[%s8006_s13 + $0x10] sm:$0xff] }
 0x2e5   :  { %v1750_v21 = vadd.f32 %v1749_v19, %v1732_v17  ;;  %v1735_v28 = vadd.f32 %v1734_v18, %v1717_v26  ;;  %v5903_v17 = vld [vmem:[%s8004_s11 + $0x1c] sm:$0xf]  ;;  %v5131_v18 = vor.u32 %v5904_v16, %v5130_v15  ;;  %v5132_v19 = vld [vmem:[%s8004_s11 + $0x24] sm:$0xf0]  ;;  %v5942_v15 = vld [vmem:[%s8006_s13 + $0x90] sm:$0xff] }
 0x2e6   :  { %v5950_v16 = vld [vmem:[%s8006_s13 + $0xd0] sm:$0xff] }
 0x2e7   :  { %v1757_v25 = vmax.f32 %v1750_v21, 0.0  ;;  %v5138_v21 = vld [vmem:[%s8004_s11 + $0x20] sm:$0xf]  ;;  %2311 = vmatpush.bf16.msrb.mxu2 %v5131_v18  ;;  %v5933_v18 = vld [vmem:[%s8006_s13 + $0x48] sm:$0xff] }
 0x2e8   :  { %2332 = vmatpush.bf16.msra.mxu0 %v5199_v42  ;;  %v5139_v26 = vor.u32 %v5905_v22, %v5138_v21  ;;  %v5946_v42 = vld [vmem:[%s8006_s13 + $0xb0] sm:$0xff]  ;;  %v5949_v21 = vld [vmem:[%s8006_s13 + $0xc8] sm:$0xff]  ;;  %v5924_v22 = vld [vmem:[%s8006_s13] sm:$0xff] }
 0x2e9   :  { %v1760_v27 = vpack.c.bf16 %v1757_v25, %v1757_v25  ;;  %v5135_v25 = vor.u32 %v5903_v17, %v5132_v19  ;;  %v5925_v17 = vld [vmem:[%s8006_s13 + $0x8] sm:$0xff] }
 0x2ea   :  { %v5941_v19 = vld [vmem:[%s8006_s13 + $0x88] sm:$0xff] }
 0x2eb   :  { %2077 = vmatmul.bf16.vlgmr.msra.gmra.mxu1 %v1760_v27  ;;  %2324 = vmatpush.bf16.msrb.mxu3 %v5135_v25  ;;  %v5932_v25 = vld [vmem:[%s8006_s13 + $0x40] sm:$0xff] }
 0x2ec   :  { %v1736_v29 = vpop.f32.mrf.mxu2  ;;  %v1752_v24 = vpop.f32.mrf.mxu3  ;;  %2333 = vmatpush.bf16.msra.mxu0 %v5187_v51  ;;  %2610 = vmatpush.bf16.msra.mxu1 %v5931_v35  ;;  %v5928_v51 = vld [vmem:[%s8006_s13 + $0x20] sm:$0xff]  ;;  %v5961_v35 = vld [vmem:[%s8008_s15 + $0x28] sm:$0xff] }
 0x2ed   :  { %v1753_v30 = vadd.f32 %v1752_v24, %v1735_v28  ;;  %v5901_v28 = vld [vmem:[%s8004_s11 + $0x8] sm:$0xf0]  ;;  %v5900_v29 = vld [vmem:[%s8004_s11 + $0x4] sm:$0xf] }
 0x2ef   :  { %v1758_v31 = vmax.f32 %v1753_v30, 0.0  ;;  %v5120_v30 = vld [vmem:[%s8004_s11 + $0xc] sm:$0xf0] }
 0x2f0   :  { %2334 = vmatpush.bf16.msra.mxu0 %v5175_v60  ;;  %2611 = vmatpush.bf16.msra.mxu1 %v5930_v40  ;;  %v5943_v60 = vld [vmem:[%s8006_s13 + $0x98] sm:$0xff]  ;;  %v5969_v40 = vld [vmem:[%s8008_s15 + $0x68] sm:$0xff] }
 0x2f1   :  { %v1761_v20 = vpack.c.bf16 %v1758_v31, %v1758_v31  ;;  %v5126_v31 = vld [vmem:[%s8004_s11 + $0x8] sm:$0xf] }
 0x2f3   :  { %2090 = vmatmul.bf16.vlgmr.msra.gmra.mxu2 %v1761_v20  ;;  %2116 = vmatmul.bf16.vlgmr.msrb.gmra.mxu0 %v1760_v27  ;;  %v5118_v27 = vld [vmem:[%s8004_s11] sm:$0xf] }
 0x2f4   :  { %v1754_v32 = vpop.f32.mrf.mxu3  ;;  %2335 = vmatpush.bf16.msra.mxu0 %v5163_v5  ;;  %v5119_v24 = vor.u32 %v5901_v28, %v5118_v27  ;;  %2612 = vmatpush.bf16.msra.mxu1 %v5929_v45  ;;  %v5948_v27 = vld [vmem:[%s8006_s13 + $0xc0] sm:$0xff]  ;;  %v5963_v28 = vld [vmem:[%s8008_s15 + $0x38] sm:$0xff] }
 0x2f5   :  { %v5123_v32 = vor.u32 %v5900_v29, %v5120_v30  ;;  %v5971_v29 = vld [vmem:[%s8008_s15 + $0x78] sm:$0xff] }
 0x2f6   :  { %2312 = vmatpush.bf16.msrb.mxu2 %v5119_v24  ;;  %v5962_v24 = vld [vmem:[%s8008_s15 + $0x30] sm:$0xff]  ;;  %v5979_v30 = vld [vmem:[%s8008_s15 + $0xb8] sm:$0xff] }
 0x2f7   :  { %2325 = vmatpush.bf16.msrb.mxu3 %v5123_v32  ;;  %v5987_v32 = vld [vmem:[%s8008_s15 + $0xf8] sm:$0xff] }
 0x2f8   :  { %2336 = vmatpush.bf16.msra.mxu0 %v5151_v14  ;;  %2613 = vmatpush.bf16.msra.mxu1 %v5928_v51  ;;  %v5934_v14 = vld [vmem:[%s8006_s13 + $0x50] sm:$0xff] }
 0x2fa   :  { %2629 = vmatpush.bf16.msra.mxu2 %v5939_v37  ;;  %v5986_v37 = vld [vmem:[%s8008_s15 + $0xf0] sm:$0xff] }
 0x2fb   :  { %2129 = vmatmul.bf16.vlgmr.msrb.gmra.mxu1 %v1761_v20  ;;  %v5902_v20 = vld [vmem:[%s8004_s11 + $0x10] sm:$0xf0]  ;;  %2648 = vmatpush.bf16.msra.mxu3 %v5947_v38  ;;  %s4394_s11 = sshll.u32 %s6240_s4, 4  ;;  %s4395_s11 = int_to_ptr.vmem [resolvable:$true] %s4394_s11 }
 0x2fc   :  { %2337 = vmatpush.bf16.msra.mxu0 %v5139_v26  ;;  %v5127_v33 = vor.u32 %v5902_v20, %v5126_v31  ;;  %2614 = vmatpush.bf16.msra.mxu1 %v5927_v57  ;;  %v5940_v26 = vld [vmem:[%s8006_s13 + $0x80] sm:$0xff]  ;;  %v5970_v31 = vld [vmem:[%s8008_s15 + $0x70] sm:$0xff] }
 0x2fd   :  { %v5978_v20 = vld [vmem:[%s8008_s15 + $0xb0] sm:$0xff] }
 0x2fe   :  { %2630 = vmatpush.bf16.msra.mxu2 %v5938_v41  ;;  %v5977_v41 = vld [vmem:[%s8008_s15 + $0xa8] sm:$0xff]  ;;  %v5958_v57 = vld [vmem:[%s8008_s15 + $0x10] sm:$0xff] }
 0x2ff   :  { %2649 = vmatpush.bf16.msra.mxu3 %v5946_v42 }
 0x300   :  { %2338 = vmatpush.bf16.msra.mxu0 %v5127_v33  ;;  %2615 = vmatpush.bf16.msra.mxu1 %v5926_v13  ;;  %v5980_v13 = vld [vmem:[%s8008_s15 + $0xc0] sm:$0xff] }
 0x302   :  { %2631 = vmatpush.bf16.msra.mxu2 %v5937_v46 }
 0x303   :  { %2650 = vmatpush.bf16.msra.mxu3 %v5945_v47 }
 0x304   :  { %2667 = vmatpush.bf16.msrb.mxu0 %v5955_v39  ;;  %2616 = vmatpush.bf16.msra.mxu1 %v5925_v17 }
 0x306   :  { %2632 = vmatpush.bf16.msra.mxu2 %v5936_v52  ;;  %v5968_v52 = vld [vmem:[%s8008_s15 + $0x60] sm:$0xff] }
 0x307   :  { %2651 = vmatpush.bf16.msra.mxu3 %v5944_v53  ;;  %v5976_v53 = vld [vmem:[%s8008_s15 + $0xa0] sm:$0xff] }
 0x308   :  { %2668 = vmatpush.bf16.msrb.mxu0 %v5954_v43  ;;  %2617 = vmatpush.bf16.msra.mxu1 %v5924_v22 }
 0x30a   :  { %2633 = vmatpush.bf16.msra.mxu2 %v5935_v0 }
 0x30b   :  { %2652 = vmatpush.bf16.msra.mxu3 %v5943_v60 }
 0x30c   :  { %2669 = vmatpush.bf16.msrb.mxu0 %v5953_v48  ;;  %2958 = vmatpush.bf16.msrb.mxu1 %v5963_v28 }
 0x30e   :  { %2634 = vmatpush.bf16.msra.mxu2 %v5934_v14 }
 0x30f   :  { %2653 = vmatpush.bf16.msra.mxu3 %v5942_v15  ;;  %v6068_v15 = vld [vmem:[%s8007_s14] ss:$0 sm:$0xff] }
 0x310   :  { %2670 = vmatpush.bf16.msrb.mxu0 %v5952_v54  ;;  %2959 = vmatpush.bf16.msrb.mxu1 %v5962_v24  ;;  %v5959_v54 = vld [vmem:[%s8008_s15 + $0x18] sm:$0xff] }
 0x312   :  { %2635 = vmatpush.bf16.msra.mxu2 %v5933_v18 }
 0x313   :  { %2654 = vmatpush.bf16.msra.mxu3 %v5941_v19 }
 0x314   :  { %2671 = vmatpush.bf16.msrb.mxu0 %v5951_v61  ;;  %2960 = vmatpush.bf16.msrb.mxu1 %v5961_v35  ;;  %v5956_v61 = vld [vmem:[%s8008_s15] sm:$0xff] }
 0x316   :  { %2636 = vmatpush.bf16.msra.mxu2 %v5932_v25 }
 0x317   :  { %2655 = vmatpush.bf16.msra.mxu3 %v5940_v26 }
 0x318   :  { %2672 = vmatpush.bf16.msrb.mxu0 %v5950_v16 }
 0x31c   :  { %2673 = vmatpush.bf16.msrb.mxu0 %v5949_v21 }
 0x320   :  { %2674 = vmatpush.bf16.msrb.mxu0 %v5948_v27 }
 0x360   :  { %v2065_v34 = vpop.f32.mrf.mxu0 }
 0x361   :  { %v2066_v2 = vadd.f32 %v2065_v34, %v1812_v58  ;;  %v2169_v34 = vld [vmem:[%s8005_s12] sm:$0x7]  ;;  %v5957_v58 = vld [vmem:[%s8008_s15 + $0x8] sm:$0xff] }
 0x362   :  { %v2171_v38 = vperm.slane %v2169_v34, 0  ;;  %v2172_v39 = vperm.slane %v2169_v34, 1  ;;  %v2173_v0 = vperm.slane %v2169_v34, 2 }
 0x366   :  { %v2104_v44 = vpop.f32.mrf.mxu3 }
 0x367   :  { %v2105_v23 = vadd.f32 %v2104_v44, %v1813_v1  ;;  %v5960_v44 = vld [vmem:[%s8008_s15 + $0x20] sm:$0xff]  ;;  %v5967_v1 = vld [vmem:[%s8008_s15 + $0x58] sm:$0xff] }
 0x368   :  { %v2067_v49 = vpop.f32.mrf.mxu0  ;;  %v2078_v50 = vpop.f32.mrf.mxu1  ;;  %2961 = vmatpush.bf16.msrb.mxu1 %v5960_v44 }
 0x369   :  { %v2079_v3 = vadd.f32 %v2078_v50, %v2066_v2  ;;  %v5975_v2 = vld [vmem:[%s8008_s15 + $0x98] sm:$0xff] }
 0x36c   :  { %2962 = vmatpush.bf16.msrb.mxu1 %v5959_v54  ;;  %v6011_v54 = vld [vmem:[%s8010_s17 + $0xb8] sm:$0xff] }
 0x36e   :  { %v2106_v56 = vpop.f32.mrf.mxu3 }
 0x370   :  { %v2080_v62 = vpop.f32.mrf.mxu1  ;;  %v2117_v63 = vpop.f32.mrf.mxu0  ;;  %2963 = vmatpush.bf16.msrb.mxu1 %v5958_v57  ;;  %v6019_v57 = vld [vmem:[%s8010_s17 + $0xf8] sm:$0xff] }
 0x371   :  { %v2118_v5 = vadd.f32 %v2117_v63, %v2105_v23  ;;  %v5985_v23 = vld [vmem:[%s8008_s15 + $0xe8] sm:$0xff] }
 0x374   :  { %2964 = vmatpush.bf16.msrb.mxu1 %v5957_v58  ;;  %v6002_v58 = vld [vmem:[%s8010_s17 + $0x70] sm:$0xff] }
 0x376   :  { %v2091_v4 = vpop.f32.mrf.mxu2 }
 0x377   :  { %v2092_v59 = vadd.f32 %v2091_v4, %v2079_v3  ;;  %v5966_v3 = vld [vmem:[%s8008_s15 + $0x50] sm:$0xff] }
 0x378   :  { %v2119_v6 = vpop.f32.mrf.mxu0  ;;  %v2130_v7 = vpop.f32.mrf.mxu1  ;;  %2965 = vmatpush.bf16.msrb.mxu1 %v5956_v61  ;;  %v5974_v4 = vld [vmem:[%s8008_s15 + $0x90] sm:$0xff] }
 0x379   :  { %v2136_v8 = vpack.c.bf16 %v2092_v59, %v2092_v59  ;;  %2134 = vst [vmem:[#allocation2] sm:$0xff] %v2092_v59  ;;  %v2131_v10 = vadd.f32 %v2130_v7, %v2118_v5  ;;  %v5984_v5 = vld [vmem:[%s8008_s15 + $0xe0] sm:$0xff]  ;;  %v5965_v59 = vld [vmem:[%s8008_s15 + $0x48] sm:$0xff]  ;;  %v5983_v7 = vld [vmem:[%s8008_s15 + $0xd8] sm:$0xff] }
 0x37a   :  { %v5973_v6 = vld [vmem:[%s8008_s15 + $0x88] sm:$0xff]  ;;  %v5994_v61 = vld [vmem:[%s8010_s17 + $0x30] sm:$0xff] }
 0x37b   :  { %2135 = vst [vmem:[#allocation4] sm:$0xff] %v2131_v10  ;;  %2313 = vmatmul.bf16.vlgmr.msrb.gmra.mxu2 %v2136_v8  ;;  %2326 = vmatmul.bf16.vlgmr.msrb.gmra.mxu3 %v2136_v8  ;;  %v5972_v10 = vld [vmem:[%s8008_s15 + $0x80] sm:$0xff] }
 0x37c   :  { %2339 = vmatmul.bf16.vlgmr.msra.gmra.mxu0 %v2136_v8  ;;  %2987 = vmatpush.bf16.msrb.mxu2 %v5971_v29  ;;  %v5964_v8 = vld [vmem:[%s8008_s15 + $0x40] sm:$0xff] }
 0x37d   :  { %3016 = vmatpush.bf16.msrb.mxu3 %v5979_v30  ;;  %3045 = vmatpush.bf16.msra.mxu0 %v5987_v32 }
 0x37e   :  { %v2093_v11 = vpop.f32.mrf.mxu2 }
 0x37f   :  { %v5982_v11 = vld [vmem:[%s8008_s15 + $0xd0] sm:$0xff] }
 0x380   :  { %v2132_v12 = vpop.f32.mrf.mxu1  ;;  %2988 = vmatpush.bf16.msrb.mxu2 %v5970_v31 }
 0x381   :  { %3017 = vmatpush.bf16.msrb.mxu3 %v5978_v20  ;;  %3046 = vmatpush.bf16.msra.mxu0 %v5986_v37  ;;  %v5981_v12 = vld [vmem:[%s8008_s15 + $0xc8] sm:$0xff] }
 0x384   :  { %2989 = vmatpush.bf16.msrb.mxu2 %v5969_v40 }
 0x385   :  { %3018 = vmatpush.bf16.msrb.mxu3 %v5977_v41  ;;  %3047 = vmatpush.bf16.msra.mxu0 %v5985_v23  ;;  %v6001_v23 = vld [vmem:[%s8010_s17 + $0x68] sm:$0xff] }
 0x388   :  { %2990 = vmatpush.bf16.msrb.mxu2 %v5968_v52 }
 0x389   :  { %3019 = vmatpush.bf16.msrb.mxu3 %v5976_v53  ;;  %3048 = vmatpush.bf16.msra.mxu0 %v5984_v5  ;;  %v6003_v53 = vld [vmem:[%s8010_s17 + $0x78] sm:$0xff]  ;;  %v6017_v5 = vld [vmem:[%s8010_s17 + $0xe8] sm:$0xff] }
 0x38c   :  { %2991 = vmatpush.bf16.msrb.mxu2 %v5967_v1 }
 0x38d   :  { %3020 = vmatpush.bf16.msrb.mxu3 %v5975_v2  ;;  %3049 = vmatpush.bf16.msra.mxu0 %v5983_v7  ;;  %v6008_v7 = vld [vmem:[%s8010_s17 + $0xa0] sm:$0xff] }
 0x390   :  { %2992 = vmatpush.bf16.msrb.mxu2 %v5966_v3  ;;  %v6009_v3 = vld [vmem:[%s8010_s17 + $0xa8] sm:$0xff] }
 0x391   :  { %3021 = vmatpush.bf16.msrb.mxu3 %v5974_v4  ;;  %3050 = vmatpush.bf16.msra.mxu0 %v5982_v11  ;;  %v5993_v4 = vld [vmem:[%s8010_s17 + $0x28] sm:$0xff] }
 0x394   :  { %2993 = vmatpush.bf16.msrb.mxu2 %v5965_v59 }
 0x395   :  { %3022 = vmatpush.bf16.msrb.mxu3 %v5973_v6  ;;  %3051 = vmatpush.bf16.msra.mxu0 %v5981_v12  ;;  %v6000_v6 = vld [vmem:[%s8010_s17 + $0x60] sm:$0xff]  ;;  %v5999_v12 = vld [vmem:[%s8010_s17 + $0x58] sm:$0xff] }
 0x398   :  { %2994 = vmatpush.bf16.msrb.mxu2 %v5964_v8  ;;  %v5992_v8 = vld [vmem:[%s8010_s17 + $0x20] sm:$0xff] }
 0x399   :  { %3023 = vmatpush.bf16.msrb.mxu3 %v5972_v10  ;;  %3052 = vmatpush.bf16.msra.mxu0 %v5980_v13  ;;  %v6016_v10 = vld [vmem:[%s8010_s17 + $0xe0] sm:$0xff]  ;;  %v6007_v13 = vld [vmem:[%s8010_s17 + $0x98] sm:$0xff] }
 0x3f9   :  { %v2340_v33 = vpop.f32.mrf.mxu0 }
 0x3fa   :  { %v2341_v60 = vadd.f32 %v2340_v33, %v2173_v0 }
 0x3fc   :  { %v2348_v62 = vpack.c.bf16 %v2341_v60, %v6237_v36  ;;  %v2349_v63 = vpack.c.bf16 0.0, %v2341_v60  ;;  %v6010_v60 = vld [vmem:[%s8010_s17 + $0xb0] sm:$0xff] }
 0x3fe   :  { %v2314_v42 = vpop.f32.mrf.mxu2  ;;  %v2327_v43 = vpop.f32.mrf.mxu3 }
 0x3ff   :  { %v2315_v45 = vadd.f32 %v2314_v42, %v2171_v38  ;;  %v2328_v46 = vadd.f32 %v2327_v43, %v2172_v39 }
 0x401   :  { %v2344_v47 = vpack.c.bf16 %v2315_v45, %v6237_v36  ;;  %v2345_v48 = vpack.c.bf16 0.0, %v2315_v45  ;;  %v2346_v49 = vpack.c.bf16 %v2328_v46, %v6237_v36  ;;  %v2347_v50 = vpack.c.bf16 0.0, %v2328_v46  ;;  %v2342_v51 = vpop.f32.mrf.mxu0 }
 0x403   :  { %2618 = vmatmul.bf16.vlgmr.msra.gmra.mxu1 %v2344_v47  ;;  %2637 = vmatmul.bf16.vlgmr.msra.gmra.mxu2 %v2345_v48 }
 0x404   :  { %2656 = vmatmul.bf16.vlgmr.msra.gmra.mxu3 %v2346_v49  ;;  %2675 = vmatmul.bf16.vlgmr.msrb.gmra.mxu0 %v2347_v50 }
 0x405   :  { %3402 = vmatpush.bf16.msra.mxu2 %v6003_v53  ;;  %3446 = vmatpush.bf16.msra.mxu3 %v6011_v54 }
 0x406   :  { %v2316_v55 = vpop.f32.mrf.mxu2  ;;  %v2329_v56 = vpop.f32.mrf.mxu3  ;;  %3490 = vmatpush.bf16.msrb.mxu0 %v6019_v57 }
 0x407   :  { %v5995_v55 = vld [vmem:[%s8010_s17 + $0x38] sm:$0xff] }
 0x408   :  { %3358 = vmatpush.bf16.msra.mxu1 %v5995_v55  ;;  %v6035_v55 = vld [vmem:[%s8012_s19 + $0x78] sm:$0xff] }
 0x409   :  { %3403 = vmatpush.bf16.msra.mxu2 %v6002_v58  ;;  %3447 = vmatpush.bf16.msra.mxu3 %v6010_v60  ;;  %v6043_v60 = vld [vmem:[%s8012_s19 + $0xb8] sm:$0xff] }
 0x40c   :  { %3359 = vmatpush.bf16.msra.mxu1 %v5994_v61 }
 0x40d   :  { %3404 = vmatpush.bf16.msra.mxu2 %v6001_v23  ;;  %3448 = vmatpush.bf16.msra.mxu3 %v6009_v3 }
 0x410   :  { %3360 = vmatpush.bf16.msra.mxu1 %v5993_v4 }
 0x411   :  { %3405 = vmatpush.bf16.msra.mxu2 %v6000_v6  ;;  %3449 = vmatpush.bf16.msra.mxu3 %v6008_v7  ;;  %v6042_v6 = vld [vmem:[%s8012_s19 + $0xb0] sm:$0xff] }
 0x413   :  { %2623 = vmatmul.bf16.gmra.mxu1 %v2346_v49  ;;  %2642 = vmatmul.bf16.gmra.mxu2 %v2347_v50 }
 0x414   :  { %2661 = vmatmul.bf16.gmra.mxu3 %v2348_v62  ;;  %2680 = vmatmul.bf16.gmra.mxu0 %v2349_v63  ;;  %v6018_v62 = vld [vmem:[%s8010_s17 + $0xf0] sm:$0xff] }
 0x415   :  { %3491 = vmatpush.bf16.msrb.mxu0 %v6018_v62  ;;  %3361 = vmatpush.bf16.msra.mxu1 %v5992_v8 }
 0x416   :  { %3406 = vmatpush.bf16.msra.mxu2 %v5999_v12  ;;  %3450 = vmatpush.bf16.msra.mxu3 %v6007_v13  ;;  %v7683_v12 = vld [vmem:[%s8012_s19 + $0xf8] sm:$0xff] }
 0x419   :  { %3492 = vmatpush.bf16.msrb.mxu0 %v6017_v5 }
 0x41d   :  { %3493 = vmatpush.bf16.msrb.mxu0 %v6016_v10 }
 0x423   :  { %2966 = vmatmul.bf16.vlgmr.msrb.gmra.mxu1 %v6238_v9 }
 0x480   :  { %v2619_v14 = vpop.f32.mrf.mxu1 }
 0x481   :  { %v2620_v16 = vadd.f32 %v6068_v15, %v2619_v14  ;;  %v2676_v21 = vpop.f32.mrf.mxu0  ;;  %v5991_v14 = vld [vmem:[%s8010_s17 + $0x18] sm:$0xff] }
 0x482   :  { %3362 = vmatpush.bf16.msra.mxu1 %v5991_v14 }
 0x486   :  { %v2638_v17 = vpop.f32.mrf.mxu2 }
 0x487   :  { %v2639_v18 = vadd.f32 %v2638_v17, %v2620_v16  ;;  %v2657_v19 = vpop.f32.mrf.mxu3  ;;  %v6006_v17 = vld [vmem:[%s8010_s17 + $0x90] sm:$0xff] }
 0x488   :  { %v2621_v22 = vpop.f32.mrf.mxu1  ;;  %3451 = vmatpush.bf16.msra.mxu3 %v6006_v17  ;;  %v6033_v17 = vld [vmem:[%s8012_s19 + $0x68] sm:$0xff] }
 0x489   :  { %v2658_v25 = vadd.f32 %v2657_v19, %v2639_v18  ;;  %v2622_v28 = vadd.f32 %v6068_v15, %v2621_v22  ;;  %v2678_v33 = vpop.f32.mrf.mxu0  ;;  %v6015_v18 = vld [vmem:[%s8010_s17 + $0xd8] sm:$0xff]  ;;  %v5990_v19 = vld [vmem:[%s8010_s17 + $0x10] sm:$0xff]  ;;  %v5989_v22 = vld [vmem:[%s8010_s17 + $0x8] sm:$0xff] }
 0x48a   :  { %3494 = vmatpush.bf16.msrb.mxu0 %v6015_v18  ;;  %3363 = vmatpush.bf16.msra.mxu1 %v5990_v19  ;;  %v6041_v18 = vld [vmem:[%s8012_s19 + $0xa8] sm:$0xff] }
 0x48b   :  { %v2677_v26 = vadd.f32 %v2676_v21, %v2658_v25  ;;  %v5997_v21 = vld [vmem:[%s8010_s17 + $0x48] sm:$0xff]  ;;  %v6014_v25 = vld [vmem:[%s8010_s17 + $0xd0] sm:$0xff] }
 0x48d   :  { %v2686_v27 = vmax.f32 %v2677_v26, 0.0  ;;  %v5988_v26 = vld [vmem:[%s8010_s17] sm:$0xff] }
 0x48e   :  { %v2640_v29 = vpop.f32.mrf.mxu2  ;;  %3364 = vmatpush.bf16.msra.mxu1 %v5989_v22  ;;  %3495 = vmatpush.bf16.msrb.mxu0 %v6014_v25 }
 0x48f   :  { %v2690_v24 = vpack.c.bf16 %v2686_v27, %v6237_v36  ;;  %v2641_v30 = vadd.f32 %v2640_v29, %v2622_v28  ;;  %v2691_v31 = vpack.c.bf16 0.0, %v2686_v27  ;;  %v2659_v20 = vpop.f32.mrf.mxu3  ;;  %v5996_v27 = vld [vmem:[%s8010_s17 + $0x40] sm:$0xff]  ;;  %v6005_v28 = vld [vmem:[%s8010_s17 + $0x88] sm:$0xff] }
 0x490   :  { %v2624_v34 = vpop.f32.mrf.mxu1  ;;  %3452 = vmatpush.bf16.msra.mxu3 %v6005_v28  ;;  %v6013_v29 = vld [vmem:[%s8010_s17 + $0xc8] sm:$0xff] }
 0x491   :  { %v2660_v32 = vadd.f32 %v2659_v20, %v2641_v30  ;;  %2971 = vmatmul.bf16.gmra.mxu1 %v2691_v31  ;;  %2995 = vmatmul.bf16.vlgmr.msrb.gmra.mxu2 %v2690_v24  ;;  %v2625_v38 = vadd.f32 %v6068_v15, %v2624_v34  ;;  %v2681_v44 = vpop.f32.mrf.mxu0  ;;  %v6004_v24 = vld [vmem:[%s8010_s17 + $0x80] sm:$0xff] }
 0x492   :  { %3024 = vmatmul.bf16.vlgmr.msrb.gmra.mxu3 %v2691_v31  ;;  %3365 = vmatpush.bf16.msra.mxu1 %v5988_v26  ;;  %v6012_v30 = vld [vmem:[%s8010_s17 + $0xc0] sm:$0xff] }
 0x493   :  { %v2679_v35 = vadd.f32 %v2678_v33, %v2660_v32  ;;  %3496 = vmatpush.bf16.msrb.mxu0 %v6013_v29  ;;  %v7650_v20 = vld [vmem:[%s8009_s16] ss:$0 sm:$0xff] }
 0x494   :  { %3453 = vmatpush.bf16.msra.mxu3 %v6004_v24  ;;  %v6024_v29 = vld [vmem:[%s8012_s19 + $0x20] sm:$0xff]  ;;  %v7700_v24 = vld [vmem:[%s8012_s19 + $0xf0] sm:$0xff] }
 0x495   :  { %v2687_v37 = vmax.f32 %v2679_v35, 0.0 }
 0x496   :  { %v2643_v39 = vpop.f32.mrf.mxu2 }
 0x497   :  { %v2692_v40 = vpack.c.bf16 %v2687_v37, %v6237_v36  ;;  %v2644_v41 = vadd.f32 %v2643_v39, %v2625_v38  ;;  %v2662_v42 = vpop.f32.mrf.mxu3  ;;  %v2693_v46 = vpack.c.bf16 0.0, %v2687_v37  ;;  %3497 = vmatpush.bf16.msrb.mxu0 %v6012_v30  ;;  %v6032_v30 = vld [vmem:[%s8012_s19 + $0x60] sm:$0xff] }
 0x498   :  { %v2626_v47 = vpop.f32.mrf.mxu1  ;;  %3994 = vmatpush.bf16.msrb.mxu3 %v6043_v60  ;;  %v6048_v60 = vld [vmem:[%s8012_s19 + $0xe0] sm:$0xff] }
 0x499   :  { %3053 = vmatmul.bf16.vlgmr.msra.gmra.mxu0 %v2692_v40  ;;  %v2663_v43 = vadd.f32 %v2662_v42, %v2644_v41  ;;  %v2627_v50 = vadd.f32 %v6068_v15, %v2626_v47  ;;  %v2683_v63 = vpop.f32.mrf.mxu0  ;;  %v5998_v15 = vld [vmem:[%s8010_s17 + $0x50] sm:$0xff] }
 0x49a   :  { %3407 = vmatpush.bf16.msra.mxu2 %v5998_v15 }
 0x49b   :  { %v2682_v45 = vadd.f32 %v2681_v44, %v2663_v43  ;;  %4073 = vmatpush.bf16.msra.mxu0 %v7683_v12 }
 0x49c   :  { %3995 = vmatpush.bf16.msrb.mxu3 %v6042_v6 }
 0x49d   :  { %v2688_v48 = vmax.f32 %v2682_v45, 0.0 }
 0x49e   :  { %v2645_v49 = vpop.f32.mrf.mxu2  ;;  %3408 = vmatpush.bf16.msra.mxu2 %v5997_v21 }
 0x49f   :  { %v2646_v51 = vadd.f32 %v2645_v49, %v2627_v50  ;;  %v2694_v52 = vpack.c.bf16 %v2688_v48, %v6237_v36  ;;  %v2664_v56 = vpop.f32.mrf.mxu3  ;;  %v2695_v2 = vpack.c.bf16 0.0, %v2688_v48  ;;  %v6027_v49 = vld [vmem:[%s8012_s19 + $0x38] sm:$0xff]  ;;  %4074 = vmatpush.bf16.msra.mxu0 %v7700_v24 }
 0x4a0   :  { %v2967_v31 = vpop.f32.mrf.mxu1  ;;  %3836 = vmatpush.bf16.msrb.mxu1 %v6027_v49  ;;  %3996 = vmatpush.bf16.msrb.mxu3 %v6041_v18 }
 0x4a1   :  { %2976 = vmatmul.bf16.gmra.mxu1 %v2693_v46  ;;  %3000 = vmatmul.bf16.gmra.mxu2 %v2692_v40  ;;  %v2665_v0 = vadd.f32 %v2664_v56, %v2646_v51  ;;  %v2968_v32 = vadd.f32 %v7650_v20, %v2967_v31 }
 0x4a2   :  { %3029 = vmatmul.bf16.gmra.mxu3 %v2693_v46  ;;  %3409 = vmatpush.bf16.msra.mxu2 %v5996_v27 }
 0x4a3   :  { %v2684_v1 = vadd.f32 %v2683_v63, %v2665_v0 }
 0x4a5   :  { %v2689_v59 = vmax.f32 %v2684_v1, 0.0 }
 0x4a6   :  { %3915 = vmatpush.bf16.msrb.mxu2 %v6035_v55 }
 0x4a7   :  { %v2696_v11 = vpack.c.bf16 %v2689_v59, %v6237_v36  ;;  %v2697_v16 = vpack.c.bf16 0.0, %v2689_v59  ;;  %v6034_v59 = vld [vmem:[%s8012_s19 + $0x70] sm:$0xff] }
 0x4a8   :  { %v2969_v37 = vpop.f32.mrf.mxu1 }
 0x4a9   :  { %3058 = vmatmul.bf16.gmra.mxu0 %v2694_v52  ;;  %v2970_v41 = vadd.f32 %v7650_v20, %v2969_v37  ;;  %v6023_v37 = vld [vmem:[%s8012_s19 + $0x18] sm:$0xff] }
 0x4aa   :  { %3916 = vmatpush.bf16.msrb.mxu2 %v6034_v59 }
 0x4ae   :  { %3917 = vmatpush.bf16.msrb.mxu2 %v6033_v17 }
 0x4b1   :  { %2981 = vmatmul.bf16.gmra.mxu1 %v2695_v2  ;;  %3005 = vmatmul.bf16.gmra.mxu2 %v2694_v52 }
 0x4b2   :  { %3034 = vmatmul.bf16.gmra.mxu3 %v2695_v2  ;;  %v6026_v2 = vld [vmem:[%s8012_s19 + $0x30] sm:$0xff]  ;;  %3918 = vmatpush.bf16.msrb.mxu2 %v6032_v30  ;;  %v7780_v30 = vld [vmem:[%s8011_s18] ss:$0 sm:$0xff] }
 0x4b3   :  { %3837 = vmatpush.bf16.msrb.mxu1 %v6026_v2 }
 0x4b9   :  { %3063 = vmatmul.bf16.gmra.mxu0 %v2696_v11 }
 0x4c1   :  { %3010 = vmatmul.bf16.gmra.mxu2 %v2696_v11  ;;  %v6025_v11 = vld [vmem:[%s8012_s19 + $0x28] sm:$0xff] }
 0x4c2   :  { %3039 = vmatmul.bf16.gmra.mxu3 %v2697_v16  ;;  %3838 = vmatpush.bf16.msrb.mxu1 %v6025_v11 }
 0x4c6   :  { %3839 = vmatpush.bf16.msrb.mxu1 %v6024_v29 }
 0x4c9   :  { %3068 = vmatmul.bf16.gmra.mxu0 %v6238_v9 }
 0x4ca   :  { %3840 = vmatpush.bf16.msrb.mxu1 %v6023_v37 }
 0x50e   :  { %v2972_v50 = vpop.f32.mrf.mxu1 }
 0x50f   :  { %v2973_v53 = vadd.f32 %v7650_v20, %v2972_v50 }
 0x514   :  { %v2996_v33 = vpop.f32.mrf.mxu2 }
 0x515   :  { %v2997_v34 = vadd.f32 %v2996_v33, %v2968_v32  ;;  %v3025_v35 = vpop.f32.mrf.mxu3 }
 0x516   :  { %v3054_v38 = vpop.f32.mrf.mxu0  ;;  %v2974_v23 = vpop.f32.mrf.mxu1 }
 0x517   :  { %v3026_v39 = vadd.f32 %v3025_v35, %v2997_v34  ;;  %v2975_v5 = vadd.f32 %v7650_v20, %v2974_v23  ;;  %v6040_v35 = vld [vmem:[%s8012_s19 + $0xa0] sm:$0xff]  ;;  %v6047_v23 = vld [vmem:[%s8012_s19 + $0xd8] sm:$0xff] }
 0x518   :  { %3997 = vmatpush.bf16.msrb.mxu3 %v6040_v35 }
 0x519   :  { %v3055_v40 = vadd.f32 %v3054_v38, %v3026_v39 }
 0x51b   :  { %v3074_v42 = vmax.f32 %v3055_v40, 0.0 }
 0x51c   :  { %v2998_v43 = vpop.f32.mrf.mxu2 }
 0x51d   :  { %v3082_v44 = vpack.c.bf16 %v3074_v42, %v6237_v36  ;;  %v3083_v45 = vpack.c.bf16 0.0, %v3074_v42  ;;  %v2999_v46 = vadd.f32 %v2998_v43, %v2970_v41  ;;  %v3027_v47 = vpop.f32.mrf.mxu3 }
 0x51e   :  { %v3056_v51 = vpop.f32.mrf.mxu0  ;;  %v2977_v19 = vpop.f32.mrf.mxu1 }
 0x51f   :  { %v3028_v48 = vadd.f32 %v3027_v47, %v2999_v46  ;;  %3366 = vmatmul.bf16.vlgmr.msra.gmra.mxu1 %v3082_v44  ;;  %3410 = vmatmul.bf16.vlgmr.msra.gmra.mxu2 %v3083_v45  ;;  %v2978_v25 = vadd.f32 %v7650_v20, %v2977_v19  ;;  %v7717_v45 = vld [vmem:[%s8012_s19 + $0xe8] sm:$0xff]  ;;  %v6031_v46 = vld [vmem:[%s8012_s19 + $0x58] sm:$0xff]  ;;  %v6020_v19 = vld [vmem:[%s8012_s19] sm:$0xff] }
 0x520   :  { %v6039_v47 = vld [vmem:[%s8012_s19 + $0x98] sm:$0xff]  ;;  %4075 = vmatpush.bf16.msra.mxu0 %v7717_v45  ;;  %3919 = vmatpush.bf16.msrb.mxu2 %v6031_v46 }
 0x521   :  { %v3057_v52 = vadd.f32 %v3056_v51, %v3028_v48  ;;  %3998 = vmatpush.bf16.msrb.mxu3 %v6039_v47 }
 0x523   :  { %v3075_v54 = vmax.f32 %v3057_v52, 0.0  ;;  %v6022_v52 = vld [vmem:[%s8012_s19 + $0x10] sm:$0xff] }
 0x524   :  { %v3001_v56 = vpop.f32.mrf.mxu2  ;;  %3841 = vmatpush.bf16.msrb.mxu1 %v6022_v52  ;;  %4076 = vmatpush.bf16.msra.mxu0 %v6048_v60 }
 0x525   :  { %v3084_v57 = vpack.c.bf16 %v3075_v54, %v6237_v36  ;;  %v3085_v0 = vpack.c.bf16 0.0, %v3075_v54  ;;  %v3002_v58 = vadd.f32 %v3001_v56, %v2973_v53  ;;  %v3030_v61 = vpop.f32.mrf.mxu3 }
 0x526   :  { %v3059_v63 = vpop.f32.mrf.mxu0  ;;  %v2979_v38 = vpop.f32.mrf.mxu1 }
 0x527   :  { %3454 = vmatmul.bf16.vlgmr.msra.gmra.mxu3 %v3084_v57  ;;  %3498 = vmatmul.bf16.vlgmr.msrb.gmra.mxu0 %v3085_v0  ;;  %v3031_v62 = vadd.f32 %v3030_v61, %v3002_v58  ;;  %v2980_v41 = vadd.f32 %v7650_v20, %v2979_v38  ;;  %v6030_v61 = vld [vmem:[%s8012_s19 + $0x50] sm:$0xff] }
 0x528   :  { %3920 = vmatpush.bf16.msrb.mxu2 %v6030_v61  ;;  %4077 = vmatpush.bf16.msra.mxu0 %v6047_v23 }
 0x529   :  { %v3060_v1 = vadd.f32 %v3059_v63, %v3031_v62  ;;  %v6038_v62 = vld [vmem:[%s8012_s19 + $0x90] sm:$0xff] }
 0x52a   :  { %3999 = vmatpush.bf16.msrb.mxu3 %v6038_v62 }
 0x52b   :  { %v3076_v3 = vmax.f32 %v3060_v1, 0.0  ;;  %v6021_v1 = vld [vmem:[%s8012_s19 + $0x8] sm:$0xff] }
 0x52c   :  { %v3003_v4 = vpop.f32.mrf.mxu2  ;;  %3842 = vmatpush.bf16.msrb.mxu1 %v6021_v1 }
 0x52d   :  { %v3086_v7 = vpack.c.bf16 %v3076_v3, %v6237_v36  ;;  %v3087_v8 = vpack.c.bf16 0.0, %v3076_v3  ;;  %v3004_v10 = vadd.f32 %v3003_v4, %v2975_v5  ;;  %v3032_v13 = vpop.f32.mrf.mxu3  ;;  %v6029_v3 = vld [vmem:[%s8012_s19 + $0x48] sm:$0xff] }
 0x52e   :  { %v3061_v15 = vpop.f32.mrf.mxu0  ;;  %v2982_v53 = vpop.f32.mrf.mxu1  ;;  %v6037_v5 = vld [vmem:[%s8012_s19 + $0x88] sm:$0xff]  ;;  %3921 = vmatpush.bf16.msrb.mxu2 %v6029_v3 }
 0x52f   :  { %3371 = vmatmul.bf16.gmra.mxu1 %v3084_v57  ;;  %3415 = vmatmul.bf16.gmra.mxu2 %v3085_v0  ;;  %v3033_v14 = vadd.f32 %v3032_v13, %v3004_v10  ;;  %v2983_v56 = vadd.f32 %v7650_v20, %v2982_v53 }
 0x530   :  { %4000 = vmatpush.bf16.msrb.mxu3 %v6037_v5  ;;  %3843 = vmatpush.bf16.msrb.mxu1 %v6020_v19 }
 0x531   :  { %v3062_v16 = vadd.f32 %v3061_v15, %v3033_v14 }
 0x533   :  { %v3077_v21 = vmax.f32 %v3062_v16, 0.0 }
 0x534   :  { %v3006_v22 = vpop.f32.mrf.mxu2  ;;  %6052 = vmatpush.bf16.msra.mxu1 %v7683_v12  ;;  %v6045_v12 = vld [vmem:[%s8012_s19 + $0xc8] sm:$0xff] }
 0x535   :  { %v3007_v26 = vadd.f32 %v3006_v22, %v2978_v25  ;;  %v3088_v27 = vpack.c.bf16 %v3077_v21, %v6237_v36  ;;  %v3089_v28 = vpack.c.bf16 0.0, %v3077_v21  ;;  %v3035_v31 = vpop.f32.mrf.mxu3 }
 0x536   :  { %v3064_v33 = vpop.f32.mrf.mxu0  ;;  %v2984_v6 = vpop.f32.mrf.mxu1 }
 0x537   :  { %3459 = vmatmul.bf16.gmra.mxu3 %v3086_v7  ;;  %3503 = vmatmul.bf16.gmra.mxu0 %v3087_v8  ;;  %v3036_v32 = vadd.f32 %v3035_v31, %v3007_v26  ;;  %v2985_v10 = vadd.f32 %v7650_v20, %v2984_v6  ;;  %v6046_v20 = vld [vmem:[%s8012_s19 + $0xd0] sm:$0xff]  ;;  %v6028_v26 = vld [vmem:[%s8012_s19 + $0x40] sm:$0xff] }
 0x538   :  { %4078 = vmatpush.bf16.msra.mxu0 %v6046_v20  ;;  %6053 = vmatpush.bf16.msra.mxu1 %v7700_v24 }
 0x539   :  { %v3065_v34 = vadd.f32 %v3064_v33, %v3036_v32  ;;  %3922 = vmatpush.bf16.msrb.mxu2 %v6028_v26 }
 0x53b   :  { %v3078_v39 = vmax.f32 %v3065_v34, 0.0 }
 0x53c   :  { %v3008_v40 = vpop.f32.mrf.mxu2  ;;  %6054 = vmatpush.bf16.msra.mxu1 %v7717_v45  ;;  %4079 = vmatpush.bf16.msra.mxu0 %v6045_v12 }
 0x53d   :  { %v3090_v42 = vpack.c.bf16 %v3078_v39, %v6237_v36  ;;  %v3091_v43 = vpack.c.bf16 0.0, %v3078_v39  ;;  %v3009_v44 = vadd.f32 %v3008_v40, %v2980_v41  ;;  %v3037_v48 = vpop.f32.mrf.mxu3 }
 0x53e   :  { %v3066_v50 = vpop.f32.mrf.mxu0 }
 0x53f   :  { %3376 = vmatmul.bf16.gmra.mxu1 %v3086_v7  ;;  %3420 = vmatmul.bf16.gmra.mxu2 %v3087_v8  ;;  %v3038_v49 = vadd.f32 %v3037_v48, %v3009_v44 }
 0x540   :  { %6055 = vmatpush.bf16.msra.mxu1 %v6048_v60 }
 0x541   :  { %v3067_v51 = vadd.f32 %v3066_v50, %v3038_v49 }
 0x543   :  { %v3079_v54 = vmax.f32 %v3067_v51, 0.0 }
 0x544   :  { %v3011_v55 = vpop.f32.mrf.mxu2  ;;  %6056 = vmatpush.bf16.msra.mxu1 %v6047_v23 }
 0x545   :  { %v3012_v57 = vadd.f32 %v3011_v55, %v2983_v56  ;;  %v3092_v0 = vpack.c.bf16 %v3079_v54, %v6237_v36  ;;  %v3093_v58 = vpack.c.bf16 0.0, %v3079_v54  ;;  %v3040_v63 = vpop.f32.mrf.mxu3 }
 0x546   :  { %v3069_v4 = vpop.f32.mrf.mxu0 }
 0x547   :  { %3464 = vmatmul.bf16.gmra.mxu3 %v3088_v27  ;;  %3508 = vmatmul.bf16.gmra.mxu0 %v3089_v28  ;;  %v3041_v2 = vadd.f32 %v3040_v63, %v3012_v57 }
 0x548   :  { %6057 = vmatpush.bf16.msra.mxu1 %v6046_v20 }
 0x549   :  { %v3070_v59 = vadd.f32 %v3069_v4, %v3041_v2 }
 0x54b   :  { %v3080_v7 = vmax.f32 %v3070_v59, 0.0 }
 0x54c   :  { %v3013_v8 = vpop.f32.mrf.mxu2  ;;  %6058 = vmatpush.bf16.msra.mxu1 %v6045_v12 }
 0x54d   :  { %v3094_v11 = vpack.c.bf16 %v3080_v7, %v6237_v36  ;;  %v3095_v13 = vpack.c.bf16 0.0, %v3080_v7  ;;  %v3014_v14 = vadd.f32 %v3013_v8, %v2985_v10  ;;  %v3042_v15 = vpop.f32.mrf.mxu3 }
 0x54e   :  { %v3071_v17 = vpop.f32.mrf.mxu0 }
 0x54f   :  { %3381 = vmatmul.bf16.gmra.mxu1 %v3088_v27  ;;  %3425 = vmatmul.bf16.gmra.mxu2 %v3089_v28  ;;  %v3043_v16 = vadd.f32 %v3042_v15, %v3014_v14  ;;  %v6036_v27 = vld [vmem:[%s8012_s19 + $0x80] sm:$0xff] }
 0x550   :  { %4001 = vmatpush.bf16.msrb.mxu3 %v6036_v27  ;;  %v6044_v28 = vld [vmem:[%s8012_s19 + $0xc0] sm:$0xff]  ;;  %s4385_s19 = sshll.u32 %s8015_s22, 4  ;;  %s4396_s22 = sshll.u32 %s8016_s23, 4  ;;  %s4386_s19 = int_to_ptr.hbm [resolvable:$true] %s4385_s19  ;;  %s4397_s22 = int_to_ptr.hbm [resolvable:$true] %s4396_s22 }
 0x551   :  { %v3072_v18 = vadd.f32 %v3071_v17, %v3043_v16  ;;  %4080 = vmatpush.bf16.msra.mxu0 %v6044_v28  ;;  %6059 = vmatpush.bf16.msra.mxu1 %v6044_v28  ;;  %4388 = dma.vmem_to_hbm [thread:$0]  %s4384_s29, 128, %s4386_s19, [#allocation3]  }
 0x552   :  { %4399 = dma.vmem_to_hbm [thread:$0]  %s4395_s11, 128, %s4397_s22, [#allocation5]  }
 0x553   :  { %v3081_v21 = vmax.f32 %v3072_v18, 0.0 }
 0x555   :  { %v3096_v22 = vpack.c.bf16 %v3081_v21, %v6237_v36  ;;  %v3097_v25 = vpack.c.bf16 0.0, %v3081_v21 }
 0x557   :  { %3469 = vmatmul.bf16.gmra.mxu3 %v3090_v42  ;;  %3513 = vmatmul.bf16.gmra.mxu0 %v3091_v43 }
 0x55f   :  { %3386 = vmatmul.bf16.gmra.mxu1 %v3090_v42  ;;  %3430 = vmatmul.bf16.gmra.mxu2 %v3091_v43 }
 0x567   :  { %3474 = vmatmul.bf16.gmra.mxu3 %v3092_v0  ;;  %3518 = vmatmul.bf16.gmra.mxu0 %v3093_v58 }
 0x56f   :  { %3391 = vmatmul.bf16.gmra.mxu1 %v3092_v0  ;;  %3435 = vmatmul.bf16.gmra.mxu2 %v3093_v58 }
 0x577   :  { %3479 = vmatmul.bf16.gmra.mxu3 %v3094_v11  ;;  %3523 = vmatmul.bf16.gmra.mxu0 %v3095_v13 }
 0x57f   :  { %3396 = vmatmul.bf16.gmra.mxu1 %v3094_v11  ;;  %3440 = vmatmul.bf16.gmra.mxu2 %v3095_v13 }
 0x587   :  { %3484 = vmatmul.bf16.gmra.mxu3 %v3096_v22  ;;  %3528 = vmatmul.bf16.gmra.mxu0 %v3097_v25 }
 0x58f   :  { %3844 = vmatmul.bf16.vlgmr.msrb.gmra.mxu1 %v6238_v9 }
 0x59c   :  { %v3367_v29 = vpop.f32.mrf.mxu1 }
 0x59d   :  { %v3368_v33 = vadd.f32 %v7780_v30, %v3367_v29 }
 0x5a2   :  { %v3411_v24 = vpop.f32.mrf.mxu2 }
 0x5a3   :  { %v3412_v34 = vadd.f32 %v3411_v24, %v3368_v33 }
 0x5a4   :  { %v3369_v31 = vpop.f32.mrf.mxu1  ;;  %v3499_v32 = vpop.f32.mrf.mxu0 }
 0x5a5   :  { %v3370_v42 = vadd.f32 %v7780_v30, %v3369_v31 }
 0x5aa   :  { %v3413_v35 = vpop.f32.mrf.mxu2  ;;  %v3455_v37 = vpop.f32.mrf.mxu3 }
 0x5ab   :  { %v3456_v38 = vadd.f32 %v3455_v37, %v3412_v34  ;;  %v3414_v44 = vadd.f32 %v3413_v35, %v3370_v42 }
 0x5ac   :  { %v3372_v39 = vpop.f32.mrf.mxu1  ;;  %v3501_v40 = vpop.f32.mrf.mxu0 }
 0x5ad   :  { %v3500_v41 = vadd.f32 %v3499_v32, %v3456_v38  ;;  %v3373_v54 = vadd.f32 %v7780_v30, %v3372_v39 }
 0x5af   :  { %v3534_v43 = vmax.f32 %v3500_v41, 0.0 }
 0x5b1   :  { %v3548_v45 = vpack.c.bf16 %v3534_v43, %v6237_v36  ;;  %v3549_v46 = vpack.c.bf16 0.0, %v3534_v43 }
 0x5b2   :  { %v3416_v47 = vpop.f32.mrf.mxu2  ;;  %v3457_v48 = vpop.f32.mrf.mxu3 }
 0x5b3   :  { %v3458_v49 = vadd.f32 %v3457_v48, %v3414_v44  ;;  %3849 = vmatmul.bf16.gmra.mxu1 %v3549_v46  ;;  %3923 = vmatmul.bf16.vlgmr.msrb.gmra.mxu2 %v3548_v45  ;;  %v3417_v0 = vadd.f32 %v3416_v47, %v3373_v54 }
 0x5b4   :  { %4002 = vmatmul.bf16.vlgmr.msrb.gmra.mxu3 %v3549_v46  ;;  %v3374_v50 = vpop.f32.mrf.mxu1  ;;  %v3504_v51 = vpop.f32.mrf.mxu0 }
 0x5b5   :  { %v3502_v52 = vadd.f32 %v3501_v40, %v3458_v49  ;;  %v3375_v5 = vadd.f32 %v7780_v30, %v3374_v50 }
 0x5b7   :  { %v3535_v53 = vmax.f32 %v3502_v52, 0.0 }
 0x5b9   :  { %v3550_v55 = vpack.c.bf16 %v3535_v53, %v6237_v36  ;;  %v3551_v63 = vpack.c.bf16 0.0, %v3535_v53 }
 0x5ba   :  { %v3418_v56 = vpop.f32.mrf.mxu2  ;;  %v3460_v57 = vpop.f32.mrf.mxu3 }
 0x5bb   :  { %4081 = vmatmul.bf16.vlgmr.msra.gmra.mxu0 %v3550_v55  ;;  %v3461_v61 = vadd.f32 %v3460_v57, %v3417_v0  ;;  %v3419_v8 = vadd.f32 %v3418_v56, %v3375_v5 }
 0x5bc   :  { %v3377_v58 = vpop.f32.mrf.mxu1  ;;  %v3506_v60 = vpop.f32.mrf.mxu0 }
 0x5bd   :  { %v3505_v62 = vadd.f32 %v3504_v51, %v3461_v61  ;;  %v3378_v20 = vadd.f32 %v7780_v30, %v3377_v58 }
 0x5bf   :  { %v3536_v4 = vmax.f32 %v3505_v62, 0.0 }
 0x5c1   :  { %v3552_v59 = vpack.c.bf16 %v3536_v4, %v6237_v36  ;;  %v3553_v15 = vpack.c.bf16 0.0, %v3536_v4 }
 0x5c2   :  { %v3421_v1 = vpop.f32.mrf.mxu2  ;;  %v3462_v2 = vpop.f32.mrf.mxu3 }
 0x5c3   :  { %3854 = vmatmul.bf16.gmra.mxu1 %v3551_v63  ;;  %3928 = vmatmul.bf16.gmra.mxu2 %v3550_v55  ;;  %v3463_v13 = vadd.f32 %v3462_v2, %v3419_v8  ;;  %v3422_v27 = vadd.f32 %v3421_v1, %v3378_v20 }
 0x5c4   :  { %4007 = vmatmul.bf16.gmra.mxu3 %v3551_v63  ;;  %v3379_v23 = vpop.f32.mrf.mxu1  ;;  %v3509_v3 = vpop.f32.mrf.mxu0 }
 0x5c5   :  { %v3507_v14 = vadd.f32 %v3506_v60, %v3463_v13  ;;  %v3380_v38 = vadd.f32 %v7780_v30, %v3379_v23 }
 0x5c7   :  { %v3537_v21 = vmax.f32 %v3507_v14, 0.0 }
 0x5c9   :  { %v3554_v22 = vpack.c.bf16 %v3537_v21, %v6237_v36  ;;  %v3555_v31 = vpack.c.bf16 0.0, %v3537_v21 }
 0x5ca   :  { %v3423_v6 = vpop.f32.mrf.mxu2  ;;  %v3465_v7 = vpop.f32.mrf.mxu3 }
 0x5cb   :  { %4086 = vmatmul.bf16.gmra.mxu0 %v3552_v59  ;;  %v3466_v29 = vadd.f32 %v3465_v7, %v3422_v27  ;;  %v3424_v42 = vadd.f32 %v3423_v6, %v3380_v38 }
 0x5cc   :  { %v3382_v10 = vpop.f32.mrf.mxu1  ;;  %v3511_v11 = vpop.f32.mrf.mxu0 }
 0x5cd   :  { %v3510_v24 = vadd.f32 %v3509_v3, %v3466_v29  ;;  %v3383_v53 = vadd.f32 %v7780_v30, %v3382_v10 }
 0x5cf   :  { %v3538_v37 = vmax.f32 %v3510_v24, 0.0 }
 0x5d1   :  { %v3556_v39 = vpack.c.bf16 %v3538_v37, %v6237_v36  ;;  %v3557_v47 = vpack.c.bf16 0.0, %v3538_v37 }
 0x5d2   :  { %v3426_v16 = vpop.f32.mrf.mxu2  ;;  %v3467_v17 = vpop.f32.mrf.mxu3 }
 0x5d3   :  { %3859 = vmatmul.bf16.gmra.mxu1 %v3553_v15  ;;  %3933 = vmatmul.bf16.gmra.mxu2 %v3552_v59  ;;  %v3468_v44 = vadd.f32 %v3467_v17, %v3424_v42  ;;  %v3427_v57 = vadd.f32 %v3426_v16, %v3383_v53 }
 0x5d4   :  { %4012 = vmatmul.bf16.gmra.mxu3 %v3553_v15  ;;  %v3384_v18 = vpop.f32.mrf.mxu1  ;;  %v3514_v19 = vpop.f32.mrf.mxu0 }
 0x5d5   :  { %v3512_v46 = vadd.f32 %v3511_v11, %v3468_v44  ;;  %v3385_v23 = vadd.f32 %v7780_v30, %v3384_v18 }
 0x5d7   :  { %v3539_v50 = vmax.f32 %v3512_v46, 0.0 }
 0x5d9   :  { %v3558_v54 = vpack.c.bf16 %v3539_v50, %v6237_v36  ;;  %v3559_v61 = vpack.c.bf16 0.0, %v3539_v50 }
 0x5da   :  { %v3428_v25 = vpop.f32.mrf.mxu2  ;;  %v3470_v26 = vpop.f32.mrf.mxu3 }
 0x5db   :  { %4091 = vmatmul.bf16.gmra.mxu0 %v3554_v22  ;;  %v3471_v0 = vadd.f32 %v3470_v26, %v3427_v57  ;;  %v3429_v59 = vadd.f32 %v3428_v25, %v3385_v23 }
 0x5dc   :  { %v7791_v12 = vpop.f32.mrf.mxu1  ;;  %v3516_v28 = vpop.f32.mrf.mxu0 }
 0x5dd   :  { %v3515_v60 = vadd.f32 %v3514_v19, %v3471_v0  ;;  %v3388_v21 = vadd.f32 %v7780_v30, %v7791_v12 }
 0x5df   :  { %v3540_v2 = vmax.f32 %v3515_v60, 0.0 }
 0x5e1   :  { %v3560_v3 = vpack.c.bf16 %v3540_v2, %v6237_v36  ;;  %v3561_v14 = vpack.c.bf16 0.0, %v3540_v2 }
 0x5e2   :  { %v7793_v32 = vpop.f32.mrf.mxu2  ;;  %v3472_v33 = vpop.f32.mrf.mxu3 }
 0x5e3   :  { %3864 = vmatmul.bf16.gmra.mxu1 %v3555_v31  ;;  %3938 = vmatmul.bf16.gmra.mxu2 %v3554_v22  ;;  %v3473_v7 = vadd.f32 %v3472_v33, %v3429_v59  ;;  %v3432_v22 = vadd.f32 %v7793_v32, %v3388_v21 }
 0x5e4   :  { %4017 = vmatmul.bf16.gmra.mxu3 %v3555_v31  ;;  %v7795_v34 = vpop.f32.mrf.mxu1  ;;  %v7797_v35 = vpop.f32.mrf.mxu0 }
 0x5e5   :  { %v3517_v11 = vadd.f32 %v3516_v28, %v3473_v7  ;;  %v3390_v31 = vadd.f32 %v7780_v30, %v7795_v34 }
 0x5e7   :  { %v3541_v18 = vmax.f32 %v3517_v11, 0.0 }
 0x5e9   :  { %v3562_v20 = vpack.c.bf16 %v3541_v18, %v6237_v36  ;;  %v3563_v28 = vpack.c.bf16 0.0, %v3541_v18 }
 0x5ea   :  { %v7801_v40 = vpop.f32.mrf.mxu2  ;;  %v3475_v41 = vpop.f32.mrf.mxu3 }
 0x5eb   :  { %4096 = vmatmul.bf16.gmra.mxu0 %v3556_v39  ;;  %v3476_v26 = vadd.f32 %v3475_v41, %v3432_v22  ;;  %v3434_v33 = vadd.f32 %v7801_v40, %v3390_v31 }
 0x5ec   :  { %v7803_v43 = vpop.f32.mrf.mxu0  ;;  %v7805_v45 = vpop.f32.mrf.mxu1 }
 0x5ed   :  { %v3520_v27 = vadd.f32 %v7797_v35, %v3476_v26  ;;  %v7849_v35 = vld [vmem:[%s8013_s20] ss:$0 sm:$0xff] }
 0x5ef   :  { %v3542_v29 = vmax.f32 %v3520_v27, 0.0 }
 0x5f1   :  { %v3564_v12 = vpack.c.bf16 %v3542_v29, %v6237_v36 }
 0x5f2   :  { %v7807_v48 = vpop.f32.mrf.mxu2  ;;  %v3477_v49 = vpop.f32.mrf.mxu3 }
 0x5f3   :  { %3869 = vmatmul.bf16.gmra.mxu1 %v3557_v47  ;;  %3943 = vmatmul.bf16.gmra.mxu2 %v3556_v39  ;;  %v3478_v32 = vadd.f32 %v3477_v49, %v3434_v33  ;;  %v3565_v39 = vpack.c.bf16 0.0, %v3542_v29 }
 0x5f4   :  { %4022 = vmatmul.bf16.gmra.mxu3 %v3557_v47  ;;  %v7809_v51 = vpop.f32.mrf.mxu0  ;;  %v7811_v52 = vpop.f32.mrf.mxu1 }
 0x5f5   :  { %v3522_v38 = vadd.f32 %v7803_v43, %v3478_v32  ;;  %v3393_v43 = vadd.f32 %v7780_v30, %v7805_v45 }
 0x5f7   :  { %v3543_v41 = vmax.f32 %v3522_v38, 0.0  ;;  %v3437_v53 = vadd.f32 %v7807_v48, %v3393_v43 }
 0x5f9   :  { %v3566_v50 = vpack.c.bf16 %v3543_v41, %v6237_v36 }
 0x5fa   :  { %v7815_v55 = vpop.f32.mrf.mxu2  ;;  %v7817_v56 = vpop.f32.mrf.mxu3 }
 0x5fb   :  { %4101 = vmatmul.bf16.gmra.mxu0 %v3558_v54  ;;  %v3481_v57 = vadd.f32 %v7817_v56, %v3437_v53 }
 0x5fc   :  { %v7819_v58 = vpop.f32.mrf.mxu0  ;;  %v7821_v62 = vpop.f32.mrf.mxu1 }
 0x5fd   :  { %v3525_v45 = vadd.f32 %v7809_v51, %v3481_v57  ;;  %v3395_v51 = vadd.f32 %v7780_v30, %v7811_v52 }
 0x5ff   :  { %v3544_v48 = vmax.f32 %v3525_v45, 0.0  ;;  %v3439_v26 = vadd.f32 %v7815_v55, %v3395_v51 }
 0x602   :  { %v7823_v63 = vpop.f32.mrf.mxu3  ;;  %v7825_v1 = vpop.f32.mrf.mxu2 }
 0x603   :  { %3874 = vmatmul.bf16.gmra.mxu1 %v3559_v61  ;;  %3948 = vmatmul.bf16.gmra.mxu2 %v3558_v54 }
 0x604   :  { %4027 = vmatmul.bf16.gmra.mxu3 %v3559_v61  ;;  %v7829_v4 = vpop.f32.mrf.mxu0  ;;  %v3399_v6 = vpop.f32.mrf.mxu1 }
 0x605   :  { %v3400_v10 = vadd.f32 %v7780_v30, %v3399_v6 }
 0x60a   :  { %v7831_v5 = vpop.f32.mrf.mxu3  ;;  %v3443_v8 = vpop.f32.mrf.mxu2 }
 0x60b   :  { %4106 = vmatmul.bf16.gmra.mxu0 %v3560_v3  ;;  %v3444_v13 = vadd.f32 %v3443_v8, %v3400_v10  ;;  %v3567_v8 = vpack.c.bf16 0.0, %v3543_v41 }
 0x60c   :  { %v3531_v17 = vpop.f32.mrf.mxu0  ;;  %v3845_v25 = vpop.f32.mrf.mxu1 }
 0x60d   :  { %v3846_v34 = vadd.f32 %v7849_v35, %v3845_v25  ;;  %v3568_v25 = vpack.c.bf16 %v3544_v48, %v6237_v36 }
 0x612   :  { %v3487_v15 = vpop.f32.mrf.mxu3 }
 0x613   :  { %v3488_v16 = vadd.f32 %v3487_v15, %v3444_v13  ;;  %3879 = vmatmul.bf16.gmra.mxu1 %v3561_v14  ;;  %3953 = vmatmul.bf16.gmra.mxu2 %v3560_v3 }
 0x614   :  { %4032 = vmatmul.bf16.gmra.mxu3 %v3561_v14  ;;  %v3847_v24 = vpop.f32.mrf.mxu1 }
 0x615   :  { %v7834_v19 = vadd.f32 %v3531_v17, %v3488_v16  ;;  %v3848_v0 = vadd.f32 %v7849_v35, %v3847_v24 }
 0x61b   :  { %4111 = vmatmul.bf16.gmra.mxu0 %v3562_v20 }
 0x623   :  { %3884 = vmatmul.bf16.gmra.mxu1 %v3563_v28  ;;  %3958 = vmatmul.bf16.gmra.mxu2 %v3562_v20 }
 0x624   :  { %4037 = vmatmul.bf16.gmra.mxu3 %v3563_v28  ;;  %v3483_v28 = vadd.f32 %v7823_v63, %v3439_v26 }
 0x62b   :  { %4116 = vmatmul.bf16.gmra.mxu0 %v3564_v12 }
 0x630   :  { %v3850_v37 = vpop.f32.mrf.mxu1 }
 0x631   :  { %v3851_v56 = vadd.f32 %v7849_v35, %v3850_v37 }
 0x633   :  { %3889 = vmatmul.bf16.gmra.mxu1 %v3565_v39  ;;  %3963 = vmatmul.bf16.gmra.mxu2 %v3564_v12 }
 0x634   :  { %4042 = vmatmul.bf16.gmra.mxu3 %v3565_v39 }
 0x636   :  { %v3924_v42 = vpop.f32.mrf.mxu2 }
 0x637   :  { %v3925_v44 = vadd.f32 %v3924_v42, %v3846_v34  ;;  %v4003_v40 = vpop.f32.mrf.mxu3  ;;  %v3569_v34 = vpack.c.bf16 0.0, %v3544_v48  ;;  %v3527_v42 = vadd.f32 %v7819_v58, %v3483_v28 }
 0x638   :  { %v3852_v46 = vpop.f32.mrf.mxu1  ;;  %v4082_v47 = vpop.f32.mrf.mxu0 }
 0x639   :  { %v4004_v49 = vadd.f32 %v4003_v40, %v3925_v44  ;;  %v3853_v29 = vadd.f32 %v7849_v35, %v3852_v46  ;;  %v3545_v46 = vmax.f32 %v3527_v42, 0.0 }
 0x63b   :  { %v4083_v54 = vadd.f32 %v4082_v47, %v4004_v49  ;;  %4121 = vmatmul.bf16.gmra.mxu0 %v3566_v50 }
 0x63d   :  { %v4152_v60 = vsub.f32 0.0, %v4083_v54 }
 0x63e   :  { %v3926_v61 = vpop.f32.mrf.mxu2 }
 0x63f   :  { %v4180_v2 = vmul.f32 1.442695, %v4152_v60  ;;  %v3927_v23 = vadd.f32 %v3926_v61, %v3848_v0  ;;  %v4005_v3 = vpop.f32.mrf.mxu3  ;;  %v3398_v0 = vadd.f32 %v7780_v30, %v7821_v62 }
 0x640   :  { %v3855_v59 = vpop.f32.mrf.mxu1  ;;  %v4084_v6 = vpop.f32.mrf.mxu0 }
 0x641   :  { %6072 = vpow2.f32 %v4180_v2  ;;  %v4006_v7 = vadd.f32 %v4005_v3, %v3927_v23  ;;  %v3856_v47 = vadd.f32 %v7849_v35, %v3855_v59  ;;  %v3442_v59 = vadd.f32 %v7825_v1, %v3398_v0 }
 0x643   :  { %v4085_v10 = vadd.f32 %v4084_v6, %v4006_v7  ;;  %3894 = vmatmul.bf16.gmra.mxu1 %v3567_v8  ;;  %3968 = vmatmul.bf16.gmra.mxu2 %v3566_v50  ;;  %v3570_v6 = vpack.c.bf16 %v3545_v46, %v6237_v36 }
 0x644   :  { %4047 = vmatmul.bf16.gmra.mxu3 %v3567_v8  ;;  %v3486_v8 = vadd.f32 %v7831_v5, %v3442_v59 }
 0x645   :  { %v4153_v11 = vsub.f32 0.0, %v4085_v10 }
 0x646   :  { %v3929_v13 = vpop.f32.mrf.mxu2 }
 0x647   :  { %v6073_v14 = vpop.eup %6072  ;;  %v4182_v15 = vmul.f32 1.442695, %v4153_v11  ;;  %v3930_v16 = vadd.f32 %v3929_v13, %v3851_v56  ;;  %v4008_v17 = vpop.f32.mrf.mxu3 }
 0x648   :  { %v4236_v18 = vadd.f32 1.0, %v6073_v14  ;;  %v3857_v21 = vpop.f32.mrf.mxu1  ;;  %v4087_v20 = vpop.f32.mrf.mxu0 }
 0x649   :  { %6074 = vpow2.f32 %v4182_v15  ;;  %v4009_v22 = vadd.f32 %v4008_v17, %v3930_v16  ;;  %v3858_v30 = vadd.f32 %v7849_v35, %v3857_v21  ;;  %v3571_v17 = vpack.c.bf16 0.0, %v3545_v46 }
 0x64a   :  { %6076 = vrcp.f32 %v4236_v18  ;;  %v3530_v18 = vadd.f32 %v7829_v4, %v3486_v8 }
 0x64b   :  { %v4088_v27 = vadd.f32 %v4087_v20, %v4009_v22  ;;  %4126 = vmatmul.bf16.gmra.mxu0 %v3568_v25 }
 0x64c   :  { %v3546_v21 = vmax.f32 %v3530_v18, 0.0 }
 0x64d   :  { %v4154_v24 = vsub.f32 0.0, %v4088_v27 }
 0x64e   :  { %v3931_v31 = vpop.f32.mrf.mxu2 }
 0x64f   :  { %v6075_v12 = vpop.eup %6074  ;;  %v4184_v33 = vmul.f32 1.442695, %v4154_v24  ;;  %v3932_v32 = vadd.f32 %v3931_v31, %v3853_v29  ;;  %v4010_v37 = vpop.f32.mrf.mxu3 }
 0x650   :  { %v6077_v52 = vpop.eup %6076  ;;  %v4237_v38 = vadd.f32 1.0, %v6075_v12  ;;  %v3860_v39 = vpop.f32.mrf.mxu1 }
 0x651   :  { %v4089_v41 = vpop.f32.mrf.mxu0  ;;  %v4292_v55 = vmax.f32 %v6077_v52, 0.0  ;;  %6078 = vpow2.f32 %v4184_v33  ;;  %v4011_v44 = vadd.f32 %v4010_v37, %v3932_v32 }
 0x652   :  { %6080 = vrcp.f32 %v4237_v38  ;;  %v3572_v38 = vpack.c.bf16 %v3546_v21, %v6237_v36 }
 0x653   :  { %v4320_v63 = vmin.f32 %v4292_v55, 1.0  ;;  %v4090_v40 = vadd.f32 %v4089_v41, %v4011_v44  ;;  %3899 = vmatmul.bf16.gmra.mxu1 %v3569_v34  ;;  %3973 = vmatmul.bf16.gmra.mxu2 %v3568_v25  ;;  %v3861_v25 = vadd.f32 %v7849_v35, %v3860_v39 }
 0x654   :  { %4052 = vmatmul.bf16.gmra.mxu3 %v3569_v34 }
 0x655   :  { %4348 = vst [vmem:[%s8014_s21] sm:$0xff] %v4320_v63  ;;  %v4155_v43 = vsub.f32 0.0, %v4090_v40 }
 0x656   :  { %v3934_v49 = vpop.f32.mrf.mxu2 }
 0x657   :  { %v6079_v50 = vpop.eup %6078  ;;  %v4186_v58 = vmul.f32 1.442695, %v4155_v43  ;;  %v3935_v53 = vadd.f32 %v3934_v49, %v3856_v47  ;;  %v4013_v54 = vpop.f32.mrf.mxu3 }
 0x658   :  { %v6081_v57 = vpop.eup %6080  ;;  %v4238_v60 = vadd.f32 1.0, %v6079_v50  ;;  %v3862_v61 = vpop.f32.mrf.mxu1 }
 0x659   :  { %v4092_v2 = vpop.f32.mrf.mxu0  ;;  %v4293_v23 = vmax.f32 %v6081_v57, 0.0  ;;  %6082 = vpow2.f32 %v4186_v58  ;;  %v4014_v3 = vadd.f32 %v4013_v54, %v3935_v53  ;;  %v3863_v39 = vadd.f32 %v7849_v35, %v3862_v61 }
 0x65a   :  { %6084 = vrcp.f32 %v4238_v60  ;;  %v3573_v54 = vpack.c.bf16 0.0, %v3546_v21  ;;  %v3547_v60 = vmax.f32 %v7834_v19, 0.0 }
 0x65b   :  { %v4321_v45 = vmin.f32 %v4293_v23, 1.0  ;;  %v4093_v7 = vadd.f32 %v4092_v2, %v4014_v3  ;;  %4131 = vmatmul.bf16.gmra.mxu0 %v3570_v6 }
 0x65c   :  { %v3574_v19 = vpack.c.bf16 %v3547_v60, %v6237_v36 }
 0x65d   :  { %4349 = vst [vmem:[%s8014_s21 + $0x8] sm:$0xff] %v4321_v45  ;;  %v4156_v62 = vsub.f32 0.0, %v4093_v7 }
 0x65e   :  { %v3936_v10 = vpop.f32.mrf.mxu2 }
 0x65f   :  { %v6083_v48 = vpop.eup %6082  ;;  %v4188_v56 = vmul.f32 1.442695, %v4156_v62  ;;  %v3937_v11 = vadd.f32 %v3936_v10, %v3858_v30  ;;  %v4015_v13 = vpop.f32.mrf.mxu3 }
 0x660   :  { %v6085_v14 = vpop.eup %6084  ;;  %v4239_v15 = vadd.f32 1.0, %v6083_v48  ;;  %v3865_v1 = vpop.f32.mrf.mxu1 }
 0x661   :  { %v4094_v16 = vpop.f32.mrf.mxu0  ;;  %v4294_v5 = vmax.f32 %v6085_v14, 0.0  ;;  %6086 = vpow2.f32 %v4188_v56  ;;  %v4016_v20 = vadd.f32 %v4015_v13, %v3937_v11  ;;  %v3866_v61 = vadd.f32 %v7849_v35, %v3865_v1 }
 0x662   :  { %6088 = vrcp.f32 %v4239_v15 }
 0x663   :  { %v4322_v51 = vmin.f32 %v4294_v5, 1.0  ;;  %v4095_v22 = vadd.f32 %v4094_v16, %v4016_v20  ;;  %3904 = vmatmul.bf16.gmra.mxu1 %v3571_v17  ;;  %3978 = vmatmul.bf16.gmra.mxu2 %v3570_v6 }
 0x664   :  { %4057 = vmatmul.bf16.gmra.mxu3 %v3571_v17 }
 0x665   :  { %4350 = vst [vmem:[%s8014_s21 + $0x10] sm:$0xff] %v4322_v51  ;;  %v4157_v26 = vsub.f32 0.0, %v4095_v22 }
 0x666   :  { %v3939_v27 = vpop.f32.mrf.mxu2 }
 0x667   :  { %v6087_v28 = vpop.eup %6086  ;;  %v4190_v4 = vmul.f32 1.442695, %v4157_v26  ;;  %v3940_v29 = vadd.f32 %v3939_v27, %v3861_v25  ;;  %v4018_v24 = vpop.f32.mrf.mxu3  ;;  %v3575_v25 = vpack.c.bf16 0.0, %v3547_v60 }
 0x668   :  { %v6089_v31 = vpop.eup %6088  ;;  %v4240_v12 = vadd.f32 1.0, %v6087_v28  ;;  %v3867_v33 = vpop.f32.mrf.mxu1 }
 0x669   :  { %v4097_v32 = vpop.f32.mrf.mxu0  ;;  %v4295_v37 = vmax.f32 %v6089_v31, 0.0  ;;  %6090 = vpow2.f32 %v4190_v4  ;;  %v4019_v52 = vadd.f32 %v4018_v24, %v3940_v29  ;;  %v3868_v13 = vadd.f32 %v7849_v35, %v3867_v33 }
 0x66a   :  { %6092 = vrcp.f32 %v4240_v12 }
 0x66b   :  { %v4323_v41 = vmin.f32 %v4295_v37, 1.0  ;;  %v4098_v34 = vadd.f32 %v4097_v32, %v4019_v52  ;;  %4136 = vmatmul.bf16.gmra.mxu0 %v3572_v38 }
 0x66d   :  { %4351 = vst [vmem:[%s8014_s21 + $0x18] sm:$0xff] %v4323_v41  ;;  %v4158_v42 = vsub.f32 0.0, %v4098_v34 }
 0x66e   :  { %v3941_v55 = vpop.f32.mrf.mxu2 }
 0x66f   :  { %v6091_v44 = vpop.eup %6090  ;;  %v4192_v63 = vmul.f32 1.442695, %v4158_v42  ;;  %v3942_v40 = vadd.f32 %v3941_v55, %v3863_v39  ;;  %v4020_v46 = vpop.f32.mrf.mxu3 }
 0x670   :  { %v6093_v47 = vpop.eup %6092  ;;  %v4241_v43 = vadd.f32 1.0, %v6091_v44  ;;  %v3870_v49 = vpop.f32.mrf.mxu1 }
 0x671   :  { %v4099_v50 = vpop.f32.mrf.mxu0  ;;  %v4296_v58 = vmax.f32 %v6093_v47, 0.0  ;;  %6094 = vpow2.f32 %v4192_v63  ;;  %v4021_v53 = vadd.f32 %v4020_v46, %v3942_v40  ;;  %v3871_v28 = vadd.f32 %v7849_v35, %v3870_v49 }
 0x672   :  { %6096 = vrcp.f32 %v4241_v43 }
 0x673   :  { %v4324_v57 = vmin.f32 %v4296_v58, 1.0  ;;  %v4100_v0 = vadd.f32 %v4099_v50, %v4021_v53  ;;  %3909 = vmatmul.bf16.gmra.mxu1 %v3573_v54  ;;  %3983 = vmatmul.bf16.gmra.mxu2 %v3572_v38 }
 0x674   :  { %4062 = vmatmul.bf16.gmra.mxu3 %v3573_v54 }
 0x675   :  { %4352 = vst [vmem:[%s8014_s21 + $0x20] sm:$0xff] %v4324_v57  ;;  %v4159_v2 = vsub.f32 0.0, %v4100_v0 }
 0x676   :  { %v3944_v23 = vpop.f32.mrf.mxu2 }
 0x677   :  { %v6095_v3 = vpop.eup %6094  ;;  %v4194_v6 = vmul.f32 1.442695, %v4159_v2  ;;  %v3945_v59 = vadd.f32 %v3944_v23, %v3866_v61  ;;  %v4023_v45 = vpop.f32.mrf.mxu3 }
 0x678   :  { %v6097_v7 = vpop.eup %6096  ;;  %v4242_v8 = vadd.f32 1.0, %v6095_v3  ;;  %v3872_v30 = vpop.f32.mrf.mxu1 }
 0x679   :  { %v4102_v62 = vpop.f32.mrf.mxu0  ;;  %v4297_v10 = vmax.f32 %v6097_v7, 0.0  ;;  %6098 = vpow2.f32 %v4194_v6  ;;  %v4024_v48 = vadd.f32 %v4023_v45, %v3945_v59  ;;  %v3873_v42 = vadd.f32 %v7849_v35, %v3872_v30 }
 0x67a   :  { %6100 = vrcp.f32 %v4242_v8 }
 0x67b   :  { %v4325_v56 = vmin.f32 %v4297_v10, 1.0  ;;  %v4103_v11 = vadd.f32 %v4102_v62, %v4024_v48  ;;  %4141 = vmatmul.bf16.gmra.mxu0 %v3574_v19 }
 0x67d   :  { %4353 = vst [vmem:[%s8014_s21 + $0x28] sm:$0xff] %v4325_v56  ;;  %v4160_v14 = vsub.f32 0.0, %v4103_v11 }
 0x67e   :  { %v3946_v15 = vpop.f32.mrf.mxu2 }
 0x67f   :  { %v6099_v1 = vpop.eup %6098  ;;  %v4196_v16 = vmul.f32 1.442695, %v4160_v14  ;;  %v3947_v17 = vadd.f32 %v3946_v15, %v3868_v13  ;;  %v4025_v18 = vpop.f32.mrf.mxu3 }
 0x680   :  { %v6101_v5 = vpop.eup %6100  ;;  %v4243_v20 = vadd.f32 1.0, %v6099_v1  ;;  %v3875_v51 = vpop.f32.mrf.mxu1 }
 0x681   :  { %v4104_v36 = vpop.f32.mrf.mxu0  ;;  %v4298_v22 = vmax.f32 %v6101_v5, 0.0  ;;  %6102 = vpow2.f32 %v4196_v16  ;;  %v4026_v21 = vadd.f32 %v4025_v18, %v3947_v17  ;;  %v3876_v60 = vadd.f32 %v7849_v35, %v3875_v51 }
 0x682   :  { %6104 = vrcp.f32 %v4243_v20 }
 0x683   :  { %v4326_v26 = vmin.f32 %v4298_v22, 1.0  ;;  %v4105_v27 = vadd.f32 %v4104_v36, %v4026_v21  ;;  %3988 = vmatmul.bf16.gmra.mxu2 %v3574_v19  ;;  %4146 = vmatmul.bf16.vlgmr.msra.gmra.mxu1 %v6238_v9 }
 0x684   :  { %4067 = vmatmul.bf16.gmra.mxu3 %v3575_v25 }
 0x685   :  { %4354 = vst [vmem:[%s8014_s21 + $0x30] sm:$0xff] %v4326_v26  ;;  %v4161_v4 = vsub.f32 0.0, %v4105_v27 }
 0x686   :  { %v3949_v29 = vpop.f32.mrf.mxu2 }
 0x687   :  { %v6103_v24 = vpop.eup %6102  ;;  %v4198_v31 = vmul.f32 1.442695, %v4161_v4  ;;  %v3950_v12 = vadd.f32 %v3949_v29, %v3871_v28  ;;  %v4028_v33 = vpop.f32.mrf.mxu3 }
 0x688   :  { %v6105_v32 = vpop.eup %6104  ;;  %v4244_v37 = vadd.f32 1.0, %v6103_v24  ;;  %v3877_v52 = vpop.f32.mrf.mxu1 }
 0x689   :  { %v4107_v38 = vpop.f32.mrf.mxu0  ;;  %v4299_v41 = vmax.f32 %v6105_v32, 0.0  ;;  %6106 = vpow2.f32 %v4198_v31  ;;  %v4029_v9 = vadd.f32 %v4028_v33, %v3950_v12  ;;  %v3878_v56 = vadd.f32 %v7849_v35, %v3877_v52 }
 0x68a   :  { %6108 = vrcp.f32 %v4244_v37 }
 0x68b   :  { %v4327_v34 = vmin.f32 %v4299_v41, 1.0  ;;  %v4108_v39 = vadd.f32 %v4107_v38, %v4029_v9 }
 0x68d   :  { %4355 = vst [vmem:[%s8014_s21 + $0x38] sm:$0xff] %v4327_v34  ;;  %v4162_v55 = vsub.f32 0.0, %v4108_v39 }
 0x68e   :  { %v3951_v44 = vpop.f32.mrf.mxu2 }
 0x68f   :  { %v6107_v63 = vpop.eup %6106  ;;  %v4200_v40 = vmul.f32 1.442695, %v4162_v55  ;;  %v3952_v46 = vadd.f32 %v3951_v44, %v3873_v42  ;;  %v4030_v47 = vpop.f32.mrf.mxu3 }
 0x690   :  { %v6109_v43 = vpop.eup %6108  ;;  %v4245_v49 = vadd.f32 1.0, %v6107_v63  ;;  %v3880_v50 = vpop.f32.mrf.mxu1 }
 0x691   :  { %v4109_v58 = vpop.f32.mrf.mxu0  ;;  %v4300_v53 = vmax.f32 %v6109_v43, 0.0  ;;  %6110 = vpow2.f32 %v4200_v40  ;;  %v4031_v54 = vadd.f32 %v4030_v47, %v3952_v46  ;;  %v3881_v25 = vadd.f32 %v7849_v35, %v3880_v50 }
 0x692   :  { %6112 = vrcp.f32 %v4245_v49 }
 0x693   :  { %v4328_v57 = vmin.f32 %v4300_v53, 1.0  ;;  %v4110_v0 = vadd.f32 %v4109_v58, %v4031_v54 }
 0x695   :  { %4356 = vst [vmem:[%s8014_s21 + $0x40] sm:$0xff] %v4328_v57  ;;  %v4163_v61 = vsub.f32 0.0, %v4110_v0 }
 0x696   :  { %v3954_v2 = vpop.f32.mrf.mxu2 }
 0x697   :  { %v6111_v23 = vpop.eup %6110  ;;  %v4202_v3 = vmul.f32 1.442695, %v4163_v61  ;;  %v3955_v6 = vadd.f32 %v3954_v2, %v3876_v60  ;;  %v4033_v59 = vpop.f32.mrf.mxu3 }
 0x698   :  { %v6113_v45 = vpop.eup %6112  ;;  %v4246_v7 = vadd.f32 1.0, %v6111_v23  ;;  %v3882_v8 = vpop.f32.mrf.mxu1 }
 0x699   :  { %v4112_v30 = vpop.f32.mrf.mxu0  ;;  %v4301_v62 = vmax.f32 %v6113_v45, 0.0  ;;  %6114 = vpow2.f32 %v4202_v3  ;;  %v4034_v10 = vadd.f32 %v4033_v59, %v3955_v6  ;;  %v3883_v9 = vadd.f32 %v7849_v35, %v3882_v8 }
 0x69a   :  { %6116 = vrcp.f32 %v4246_v7 }
 0x69b   :  { %v4329_v48 = vmin.f32 %v4301_v62, 1.0  ;;  %v4113_v19 = vadd.f32 %v4112_v30, %v4034_v10 }
 0x69d   :  { %4357 = vst [vmem:[%s8014_s21 + $0x48] sm:$0xff] %v4329_v48  ;;  %v4164_v11 = vsub.f32 0.0, %v4113_v19 }
 0x69e   :  { %v3956_v13 = vpop.f32.mrf.mxu2 }
 0x69f   :  { %v6115_v14 = vpop.eup %6114  ;;  %v4204_v15 = vmul.f32 1.442695, %v4164_v11  ;;  %v3957_v1 = vadd.f32 %v3956_v13, %v3878_v56  ;;  %v4035_v16 = vpop.f32.mrf.mxu3 }
 0x6a0   :  { %v6117_v17 = vpop.eup %6116  ;;  %v4247_v18 = vadd.f32 1.0, %v6115_v14  ;;  %v3885_v5 = vpop.f32.mrf.mxu1 }
 0x6a1   :  { %v4114_v20 = vpop.f32.mrf.mxu0  ;;  %v4302_v51 = vmax.f32 %v6117_v17, 0.0  ;;  %6118 = vpow2.f32 %v4204_v15  ;;  %v4036_v36 = vadd.f32 %v4035_v16, %v3957_v1  ;;  %v3886_v54 = vadd.f32 %v7849_v35, %v3885_v5 }
 0x6a2   :  { %6120 = vrcp.f32 %v4247_v18 }
 0x6a3   :  { %v4330_v22 = vmin.f32 %v4302_v51, 1.0  ;;  %v4115_v21 = vadd.f32 %v4114_v20, %v4036_v36 }
 0x6a5   :  { %4358 = vst [vmem:[%s8014_s21 + $0x50] sm:$0xff] %v4330_v22  ;;  %v4165_v26 = vsub.f32 0.0, %v4115_v21 }
 0x6a6   :  { %v3959_v27 = vpop.f32.mrf.mxu2 }
 0x6a7   :  { %v6119_v28 = vpop.eup %6118  ;;  %v4206_v4 = vmul.f32 1.442695, %v4165_v26  ;;  %v3960_v29 = vadd.f32 %v3959_v27, %v3881_v25  ;;  %v4038_v24 = vpop.f32.mrf.mxu3 }
 0x6a8   :  { %v6121_v31 = vpop.eup %6120  ;;  %v4248_v12 = vadd.f32 1.0, %v6119_v28  ;;  %v3887_v33 = vpop.f32.mrf.mxu1 }
 0x6a9   :  { %v4117_v32 = vpop.f32.mrf.mxu0  ;;  %v4303_v37 = vmax.f32 %v6121_v31, 0.0  ;;  %6122 = vpow2.f32 %v4206_v4  ;;  %v4039_v52 = vadd.f32 %v4038_v24, %v3960_v29  ;;  %v3888_v10 = vadd.f32 %v7849_v35, %v3887_v33 }
 0x6aa   :  { %6124 = vrcp.f32 %v4248_v12 }
 0x6ab   :  { %v4331_v38 = vmin.f32 %v4303_v37, 1.0  ;;  %v4118_v41 = vadd.f32 %v4117_v32, %v4039_v52 }
 0x6ad   :  { %4359 = vst [vmem:[%s8014_s21 + $0x58] sm:$0xff] %v4331_v38  ;;  %v4166_v34 = vsub.f32 0.0, %v4118_v41 }
 0x6ae   :  { %v3961_v39 = vpop.f32.mrf.mxu2 }
 0x6af   :  { %v6123_v42 = vpop.eup %6122  ;;  %v4208_v55 = vmul.f32 1.442695, %v4166_v34  ;;  %v3962_v44 = vadd.f32 %v3961_v39, %v3883_v9  ;;  %v4040_v63 = vpop.f32.mrf.mxu3 }
 0x6b0   :  { %v6125_v40 = vpop.eup %6124  ;;  %v4249_v46 = vadd.f32 1.0, %v6123_v42  ;;  %v3890_v47 = vpop.f32.mrf.mxu1 }
 0x6b1   :  { %v4119_v43 = vpop.f32.mrf.mxu0  ;;  %v4304_v49 = vmax.f32 %v6125_v40, 0.0  ;;  %6126 = vpow2.f32 %v4208_v55  ;;  %v4041_v50 = vadd.f32 %v4040_v63, %v3962_v44  ;;  %v3891_v36 = vadd.f32 %v7849_v35, %v3890_v47 }
 0x6b2   :  { %6128 = vrcp.f32 %v4249_v46 }
 0x6b3   :  { %v4332_v58 = vmin.f32 %v4304_v49, 1.0  ;;  %v4120_v53 = vadd.f32 %v4119_v43, %v4041_v50 }
 0x6b5   :  { %4360 = vst [vmem:[%s8014_s21 + $0x60] sm:$0xff] %v4332_v58  ;;  %v4167_v57 = vsub.f32 0.0, %v4120_v53 }
 0x6b6   :  { %v3964_v0 = vpop.f32.mrf.mxu2 }
 0x6b7   :  { %v6127_v60 = vpop.eup %6126  ;;  %v4210_v61 = vmul.f32 1.442695, %v4167_v57  ;;  %v3965_v2 = vadd.f32 %v3964_v0, %v3886_v54  ;;  %v4043_v23 = vpop.f32.mrf.mxu3 }
 0x6b8   :  { %v6129_v3 = vpop.eup %6128  ;;  %v4250_v6 = vadd.f32 1.0, %v6127_v60  ;;  %v3892_v59 = vpop.f32.mrf.mxu1 }
 0x6b9   :  { %v4122_v45 = vpop.f32.mrf.mxu0  ;;  %v4305_v7 = vmax.f32 %v6129_v3, 0.0  ;;  %6130 = vpow2.f32 %v4210_v61  ;;  %v4044_v8 = vadd.f32 %v4043_v23, %v3965_v2  ;;  %v3893_v52 = vadd.f32 %v7849_v35, %v3892_v59 }
 0x6ba   :  { %6132 = vrcp.f32 %v4250_v6 }
 0x6bb   :  { %v4333_v30 = vmin.f32 %v4305_v7, 1.0  ;;  %v4123_v62 = vadd.f32 %v4122_v45, %v4044_v8 }
 0x6bd   :  { %4361 = vst [vmem:[%s8014_s21 + $0x68] sm:$0xff] %v4333_v30  ;;  %v4168_v48 = vsub.f32 0.0, %v4123_v62 }
 0x6be   :  { %v3966_v19 = vpop.f32.mrf.mxu2 }
 0x6bf   :  { %v6131_v56 = vpop.eup %6130  ;;  %v4212_v11 = vmul.f32 1.442695, %v4168_v48  ;;  %v3967_v13 = vadd.f32 %v3966_v19, %v3888_v10  ;;  %v4045_v14 = vpop.f32.mrf.mxu3 }
 0x6c0   :  { %v6133_v15 = vpop.eup %6132  ;;  %v4251_v1 = vadd.f32 1.0, %v6131_v56  ;;  %v3895_v16 = vpop.f32.mrf.mxu1 }
 0x6c1   :  { %v4124_v17 = vpop.f32.mrf.mxu0  ;;  %v4306_v18 = vmax.f32 %v6133_v15, 0.0  ;;  %6134 = vpow2.f32 %v4212_v11  ;;  %v4046_v5 = vadd.f32 %v4045_v14, %v3967_v13  ;;  %v3896_v50 = vadd.f32 %v7849_v35, %v3895_v16 }
 0x6c2   :  { %6136 = vrcp.f32 %v4251_v1 }
 0x6c3   :  { %v4334_v20 = vmin.f32 %v4306_v18, 1.0  ;;  %v4125_v51 = vadd.f32 %v4124_v17, %v4046_v5 }
 0x6c5   :  { %4362 = vst [vmem:[%s8014_s21 + $0x70] sm:$0xff] %v4334_v20  ;;  %v4169_v22 = vsub.f32 0.0, %v4125_v51 }
 0x6c6   :  { %v3969_v21 = vpop.f32.mrf.mxu2 }
 0x6c7   :  { %v6135_v25 = vpop.eup %6134  ;;  %v4214_v26 = vmul.f32 1.442695, %v4169_v22  ;;  %v3970_v27 = vadd.f32 %v3969_v21, %v3891_v36  ;;  %v4048_v28 = vpop.f32.mrf.mxu3 }
 0x6c8   :  { %v6137_v4 = vpop.eup %6136  ;;  %v4252_v29 = vadd.f32 1.0, %v6135_v25  ;;  %v3897_v24 = vpop.f32.mrf.mxu1 }
 0x6c9   :  { %v4127_v31 = vpop.f32.mrf.mxu0  ;;  %v4307_v12 = vmax.f32 %v6137_v4, 0.0  ;;  %6138 = vpow2.f32 %v4214_v26  ;;  %v4049_v33 = vadd.f32 %v4048_v28, %v3970_v27  ;;  %v3898_v8 = vadd.f32 %v7849_v35, %v3897_v24 }
 0x6ca   :  { %6140 = vrcp.f32 %v4252_v29 }
 0x6cb   :  { %v4335_v32 = vmin.f32 %v4307_v12, 1.0  ;;  %v4128_v37 = vadd.f32 %v4127_v31, %v4049_v33 }
 0x6cd   :  { %4363 = vst [vmem:[%s8014_s21 + $0x78] sm:$0xff] %v4335_v32  ;;  %v4170_v38 = vsub.f32 0.0, %v4128_v37 }
 0x6ce   :  { %v3971_v41 = vpop.f32.mrf.mxu2 }
 0x6cf   :  { %v6139_v9 = vpop.eup %6138  ;;  %v4216_v34 = vmul.f32 1.442695, %v4170_v38  ;;  %v3972_v39 = vadd.f32 %v3971_v41, %v3893_v52  ;;  %v4050_v42 = vpop.f32.mrf.mxu3 }
 0x6d0   :  { %v6141_v55 = vpop.eup %6140  ;;  %v4253_v44 = vadd.f32 1.0, %v6139_v9  ;;  %v3900_v63 = vpop.f32.mrf.mxu1 }
 0x6d1   :  { %v4129_v40 = vpop.f32.mrf.mxu0  ;;  %v4308_v46 = vmax.f32 %v6141_v55, 0.0  ;;  %6142 = vpow2.f32 %v4216_v34  ;;  %v4051_v47 = vadd.f32 %v4050_v42, %v3972_v39  ;;  %v3901_v5 = vadd.f32 %v7849_v35, %v3900_v63 }
 0x6d2   :  { %6144 = vrcp.f32 %v4253_v44 }
 0x6d3   :  { %v4336_v43 = vmin.f32 %v4308_v46, 1.0  ;;  %v4130_v49 = vadd.f32 %v4129_v40, %v4051_v47 }
 0x6d5   :  { %4364 = vst [vmem:[%s8014_s21 + $0x80] sm:$0xff] %v4336_v43  ;;  %v4171_v58 = vsub.f32 0.0, %v4130_v49 }
 0x6d6   :  { %v3974_v53 = vpop.f32.mrf.mxu2 }
 0x6d7   :  { %v6143_v54 = vpop.eup %6142  ;;  %v4218_v57 = vmul.f32 1.442695, %v4171_v58  ;;  %v3975_v0 = vadd.f32 %v3974_v53, %v3896_v50  ;;  %v4053_v60 = vpop.f32.mrf.mxu3 }
 0x6d8   :  { %v6145_v61 = vpop.eup %6144  ;;  %v4254_v2 = vadd.f32 1.0, %v6143_v54  ;;  %v3902_v23 = vpop.f32.mrf.mxu1 }
 0x6d9   :  { %v4132_v3 = vpop.f32.mrf.mxu0  ;;  %v4309_v6 = vmax.f32 %v6145_v61, 0.0  ;;  %6146 = vpow2.f32 %v4218_v57  ;;  %v4054_v59 = vadd.f32 %v4053_v60, %v3975_v0  ;;  %v3903_v33 = vadd.f32 %v7849_v35, %v3902_v23 }
 0x6da   :  { %6148 = vrcp.f32 %v4254_v2 }
 0x6db   :  { %v4337_v45 = vmin.f32 %v4309_v6, 1.0  ;;  %v4133_v7 = vadd.f32 %v4132_v3, %v4054_v59 }
 0x6dd   :  { %4365 = vst [vmem:[%s8014_s21 + $0x88] sm:$0xff] %v4337_v45  ;;  %v4172_v30 = vsub.f32 0.0, %v4133_v7 }
 0x6de   :  { %v3976_v62 = vpop.f32.mrf.mxu2 }
 0x6df   :  { %v6147_v10 = vpop.eup %6146  ;;  %v4220_v48 = vmul.f32 1.442695, %v4172_v30  ;;  %v3977_v19 = vadd.f32 %v3976_v62, %v3898_v8  ;;  %v4055_v56 = vpop.f32.mrf.mxu3 }
 0x6e0   :  { %v6149_v11 = vpop.eup %6148  ;;  %v4255_v13 = vadd.f32 1.0, %v6147_v10  ;;  %v3905_v16 = vpop.f32.mrf.mxu1 }
 0x6e1   :  { %v4134_v14 = vpop.f32.mrf.mxu0  ;;  %v4310_v15 = vmax.f32 %v6149_v11, 0.0  ;;  %6150 = vpow2.f32 %v4220_v48  ;;  %v4056_v1 = vadd.f32 %v4055_v56, %v3977_v19  ;;  %v3906_v46 = vadd.f32 %v7849_v35, %v3905_v16 }
 0x6e2   :  { %6152 = vrcp.f32 %v4255_v13 }
 0x6e3   :  { %v4338_v17 = vmin.f32 %v4310_v15, 1.0  ;;  %v4135_v18 = vadd.f32 %v4134_v14, %v4056_v1 }
 0x6e5   :  { %4366 = vst [vmem:[%s8014_s21 + $0x90] sm:$0xff] %v4338_v17  ;;  %v4173_v20 = vsub.f32 0.0, %v4135_v18 }
 0x6e6   :  { %v3979_v51 = vpop.f32.mrf.mxu2 }
 0x6e7   :  { %v6151_v36 = vpop.eup %6150  ;;  %v4222_v22 = vmul.f32 1.442695, %v4173_v20  ;;  %v3980_v21 = vadd.f32 %v3979_v51, %v3901_v5  ;;  %v4058_v25 = vpop.f32.mrf.mxu3 }
 0x6e8   :  { %v6153_v26 = vpop.eup %6152  ;;  %v4256_v27 = vadd.f32 1.0, %v6151_v36  ;;  %v3907_v12 = vpop.f32.mrf.mxu1 }
 0x6e9   :  { %v4137_v28 = vpop.f32.mrf.mxu0  ;;  %v4311_v4 = vmax.f32 %v6153_v26, 0.0  ;;  %6154 = vpow2.f32 %v4222_v22  ;;  %v4059_v29 = vadd.f32 %v4058_v25, %v3980_v21  ;;  %v3908_v6 = vadd.f32 %v7849_v35, %v3907_v12 }
 0x6ea   :  { %6156 = vrcp.f32 %v4256_v27 }
 0x6eb   :  { %v4339_v24 = vmin.f32 %v4311_v4, 1.0  ;;  %v4138_v31 = vadd.f32 %v4137_v28, %v4059_v29 }
 0x6ed   :  { %4367 = vst [vmem:[%s8014_s21 + $0x98] sm:$0xff] %v4339_v24  ;;  %v4174_v32 = vsub.f32 0.0, %v4138_v31 }
 0x6ee   :  { %v3981_v37 = vpop.f32.mrf.mxu2 }
 0x6ef   :  { %v6155_v52 = vpop.eup %6154  ;;  %v4224_v38 = vmul.f32 1.442695, %v4174_v32  ;;  %v3982_v41 = vadd.f32 %v3981_v37, %v3903_v33  ;;  %v4060_v9 = vpop.f32.mrf.mxu3 }
 0x6f0   :  { %v6157_v34 = vpop.eup %6156  ;;  %v4257_v39 = vadd.f32 1.0, %v6155_v52  ;;  %v3910_v43 = vpop.f32.mrf.mxu1 }
 0x6f1   :  { %v4139_v42 = vpop.f32.mrf.mxu0  ;;  %v4312_v55 = vmax.f32 %v6157_v34, 0.0  ;;  %6158 = vpow2.f32 %v4224_v38  ;;  %v4061_v44 = vadd.f32 %v4060_v9, %v3982_v41  ;;  %v3911_v1 = vadd.f32 %v7849_v35, %v3910_v43  ;;  %v6184_v35 = vld [vmem:[%s8013_s20] ss:$0 sm:$0xff] }
 0x6f2   :  { %6160 = vrcp.f32 %v4257_v39 }
 0x6f3   :  { %v4340_v63 = vmin.f32 %v4312_v55, 1.0  ;;  %v4140_v40 = vadd.f32 %v4139_v42, %v4061_v44 }
 0x6f5   :  { %4368 = vst [vmem:[%s8014_s21 + $0xa0] sm:$0xff] %v4340_v63  ;;  %v4175_v47 = vsub.f32 0.0, %v4140_v40 }
 0x6f6   :  { %v3984_v49 = vpop.f32.mrf.mxu2 }
 0x6f7   :  { %v6159_v50 = vpop.eup %6158  ;;  %v4226_v58 = vmul.f32 1.442695, %v4175_v47  ;;  %v3985_v53 = vadd.f32 %v3984_v49, %v3906_v46  ;;  %v4063_v54 = vpop.f32.mrf.mxu3 }
 0x6f8   :  { %v6161_v57 = vpop.eup %6160  ;;  %v4258_v0 = vadd.f32 1.0, %v6159_v50  ;;  %v3912_v19 = vpop.f32.mrf.mxu1 }
 0x6f9   :  { %v4142_v60 = vpop.f32.mrf.mxu0  ;;  %v4313_v61 = vmax.f32 %v6161_v57, 0.0  ;;  %6162 = vpow2.f32 %v4226_v58  ;;  %v4064_v2 = vadd.f32 %v4063_v54, %v3985_v53  ;;  %v3913_v4 = vadd.f32 %v6184_v35, %v3912_v19 }
 0x6fa   :  { %6164 = vrcp.f32 %v4258_v0 }
 0x6fb   :  { %v4341_v23 = vmin.f32 %v4313_v61, 1.0  ;;  %v4143_v3 = vadd.f32 %v4142_v60, %v4064_v2 }
 0x6fd   :  { %4369 = vst [vmem:[%s8014_s21 + $0xa8] sm:$0xff] %v4341_v23  ;;  %v4176_v59 = vsub.f32 0.0, %v4143_v3 }
 0x6fe   :  { %v3986_v45 = vpop.f32.mrf.mxu2 }
 0x6ff   :  { %v6163_v7 = vpop.eup %6162  ;;  %v4228_v8 = vmul.f32 1.442695, %v4176_v59  ;;  %v3987_v30 = vadd.f32 %v3986_v45, %v3908_v6  ;;  %v4065_v62 = vpop.f32.mrf.mxu3 }
 0x700   :  { %v6165_v10 = vpop.eup %6164  ;;  %v4259_v48 = vadd.f32 1.0, %v6163_v7  ;;  %v4147_v21 = vpop.f32.mrf.mxu1 }
 0x701   :  { %v4314_v56 = vmax.f32 %v6165_v10, 0.0  ;;  %6166 = vpow2.f32 %v4228_v8  ;;  %v4066_v11 = vadd.f32 %v4065_v62, %v3987_v30  ;;  %v4144_v13 = vpop.f32.mrf.mxu0 }
 0x702   :  { %6168 = vrcp.f32 %v4259_v48 }
 0x703   :  { %v4342_v14 = vmin.f32 %v4314_v56, 1.0  ;;  %v4145_v15 = vadd.f32 %v4144_v13, %v4066_v11 }
 0x705   :  { %4370 = vst [vmem:[%s8014_s21 + $0xb0] sm:$0xff] %v4342_v14  ;;  %v4177_v16 = vsub.f32 0.0, %v4145_v15 }
 0x706   :  { %v3989_v17 = vpop.f32.mrf.mxu2 }
 0x707   :  { %v6167_v18 = vpop.eup %6166  ;;  %v4230_v5 = vmul.f32 1.442695, %v4177_v16  ;;  %v3990_v20 = vadd.f32 %v3989_v17, %v3911_v1  ;;  %v4068_v51 = vpop.f32.mrf.mxu3 }
 0x708   :  { %v6169_v36 = vpop.eup %6168  ;;  %v4260_v22 = vadd.f32 1.0, %v6167_v18  ;;  %v4149_v9 = vpop.f32.mrf.mxu1 }
 0x709   :  { %v4315_v25 = vmax.f32 %v6169_v36, 0.0  ;;  %6170 = vpow2.f32 %v4230_v5  ;;  %v4069_v26 = vadd.f32 %v4068_v51, %v3990_v20 }
 0x70a   :  { %6172 = vrcp.f32 %v4260_v22 }
 0x70b   :  { %v4343_v27 = vmin.f32 %v4315_v25, 1.0  ;;  %v4148_v28 = vadd.f32 %v4147_v21, %v4069_v26 }
 0x70d   :  { %4371 = vst [vmem:[%s8014_s21 + $0xb8] sm:$0xff] %v4343_v27  ;;  %v4178_v29 = vsub.f32 0.0, %v4148_v28 }
 0x70e   :  { %v3991_v24 = vpop.f32.mrf.mxu2 }
 0x70f   :  { %v6171_v31 = vpop.eup %6170  ;;  %v4232_v12 = vmul.f32 1.442695, %v4178_v29  ;;  %v3992_v33 = vadd.f32 %v3991_v24, %v3913_v4  ;;  %v4070_v52 = vpop.f32.mrf.mxu3 }
 0x710   :  { %v6173_v32 = vpop.eup %6172  ;;  %v4261_v37 = vadd.f32 1.0, %v6171_v31 }
 0x711   :  { %v4316_v38 = vmax.f32 %v6173_v32, 0.0  ;;  %6174 = vpow2.f32 %v4232_v12  ;;  %v4071_v41 = vadd.f32 %v4070_v52, %v3992_v33 }
 0x712   :  { %6176 = vrcp.f32 %v4261_v37 }
 0x713   :  { %v4344_v34 = vmin.f32 %v4316_v38, 1.0  ;;  %v4150_v39 = vadd.f32 %v4149_v9, %v4071_v41 }
 0x715   :  { %4372 = vst [vmem:[%s8014_s21 + $0xc0] sm:$0xff] %v4344_v34  ;;  %v4179_v42 = vsub.f32 0.0, %v4150_v39 }
 0x717   :  { %v6175_v55 = vpop.eup %6174  ;;  %v4234_v44 = vmul.f32 1.442695, %v4179_v42 }
 0x718   :  { %v6177_v63 = vpop.eup %6176  ;;  %v4262_v40 = vadd.f32 1.0, %v6175_v55 }
 0x719   :  { %v4317_v46 = vmax.f32 %v6177_v63, 0.0  ;;  %6178 = vpow2.f32 %v4234_v44 }
 0x71a   :  { %6180 = vrcp.f32 %v4262_v40 }
 0x71b   :  { %v4345_v47 = vmin.f32 %v4317_v46, 1.0 }
 0x71d   :  { %4373 = vst [vmem:[%s8014_s21 + $0xc8] sm:$0xff] %v4345_v47 }
 0x71f   :  { %v6179_v43 = vpop.eup %6178 }
 0x720   :  { %v6181_v49 = vpop.eup %6180  ;;  %v4263_v50 = vadd.f32 1.0, %v6179_v43 }
 0x721   :  { %v4318_v58 = vmax.f32 %v6181_v49, 0.0 }
 0x722   :  { %6182 = vrcp.f32 %v4263_v50 }
 0x723   :  { %v4346_v53 = vmin.f32 %v4318_v58, 1.0 }
 0x725   :  { %4374 = vst [vmem:[%s8014_s21 + $0xd0] sm:$0xff] %v4346_v53 }
 0x728   :  { %v6183_v54 = vpop.eup %6182 }
 0x729   :  { %v4319_v57 = vmax.f32 %v6183_v54, 0.0 }
 0x72b   :  { %v4347_v0 = vmin.f32 %v4319_v57, 1.0 }
 0x72d   :  { %4375 = vst [vmem:[%s8014_s21 + $0xd8] sm:$0xff] %v4347_v0 }
 0x72e   :  { %6233 = dma.done.wait [#allocation3], 128  }
 0x72f   :  { %6234 = vsyncadd [#allocation3], 4294967168 }
 0x730   :  { %6235 = dma.done.wait [#allocation5], 128  }
 0x731   :  { %6236 = vsyncadd [#allocation5], 4294967168 }
 0x732   :  { %4410 = vsyncpa [#allocation3], 1 }
 0x733   :  { %4411 = vsyncpa [#allocation5], 1 }

</bundles_post_ra>
